<compile_context>
chip_gen: v7x
topology: tpu7x:2x2x1
jax: 0.10.0
libtpu: 0.0.40
codegen_flags: <defaults>
</compile_context>

<pallas_src>
import functools

import numpy as np
import jax
import jax.numpy as jnp
from jax.experimental import pallas as pl
from jax.experimental.pallas import tpu as pltpu


def _round_up(a, b):
    return (a + b - 1) // b * b


def _gcc_phat_kernel(z_ref, f_ref, ic_ref, cc_ref, r_ref, *, epsilon, nfp, tb):
    """One grid step = (batch tile i, output-column tile j).

    j == 0: forward rfft of the stacked [x; y] tile (one MXU dot), PHAT
    weighting, result cached in VMEM scratch for the whole batch tile.
    every j: irfft + fftshift-style reordering fused into one MXU dot against
    the column-permuted inverse-DFT basis tile.
    """
    @pl.when(pl.program_id(1) == 0)
    def _forward():
        zf = jnp.dot(z_ref[...], f_ref[...],
                     precision=jax.lax.Precision.HIGHEST,
                     preferred_element_type=jnp.float32)
        xr, xi = zf[:tb, :nfp], zf[:tb, nfp:]
        yr, yi = zf[tb:, :nfp], zf[tb:, nfp:]

        # Gxy = X * conj(Y)
        gr = xr * yr + xi * yi
        gi = xi * yr - xr * yi

        # PHAT weighting: phi = 1 / (|Gxy| + eps).  The max() guards padded
        # freq lanes / batch rows (gr = gi = 0) against 0 * inf = NaN when
        # epsilon == 0.
        # TODO(synk): only filt='phat', beta=None, dim=2 (module defaults) are implemented.
        denom = jnp.maximum(jnp.sqrt(gr * gr + gi * gi) + epsilon, 1e-30)
        phi = pl.reciprocal(denom, approx=False)  # approx=True breaks 1e-4 tolerance
        r_ref[:, :nfp] = (gr * phi).astype(r_ref.dtype)
        r_ref[:, nfp:] = (gi * phi).astype(r_ref.dtype)

    cc_ref[...] = jnp.dot(r_ref[...], ic_ref[...],
                          precision=jax.lax.Precision.HIGHEST,
                          preferred_element_type=jnp.float32)


def _forward_basis(l_pad, n, nf, nfp, dtype):
    """(l_pad, 2*nfp) basis so [x;y] @ F = [Re rfft(., n) | Im rfft(., n)]."""
    t = np.arange(l_pad, dtype=np.float64)[:, None]
    k = np.arange(nf, dtype=np.float64)[None, :]
    ang = 2.0 * np.pi * t * k / n
    f = np.zeros((l_pad, 2 * nfp), np.float64)
    f[:, :nf] = np.cos(ang)
    f[:, nfp:nfp + nf] = -np.sin(ang)
    return jnp.asarray(f, dtype=dtype)


def _inverse_basis(n, nf, nfp, max_shift, out_len, out_pad, dtype):
    """(2*nfp, out_pad) inverse-rfft basis with the fftshift-style lag order
    [n-max_shift .. n-1, 0 .. max_shift] folded into the columns."""
    lags = np.concatenate([np.arange(n - max_shift, n), np.arange(0, max_shift + 1)])
    assert lags.shape[0] == out_len
    k = np.arange(nf, dtype=np.float64)[:, None]
    t = lags[None, :].astype(np.float64)
    ang = 2.0 * np.pi * k * t / n
    w = np.full((nf, 1), 2.0)
    w[0, 0] = 1.0
    if n % 2 == 0:
        w[nf - 1, 0] = 1.0
    ic = np.zeros((2 * nfp, out_pad), np.float64)
    ic[:nf, :out_len] = (w * np.cos(ang)) / n
    ic[nfp:nfp + nf, :out_len] = (-(w * np.sin(ang))) / n
    return jnp.asarray(ic, dtype=dtype)


def _device_info():
    kind = ""
    try:
        kind = jax.devices()[0].device_kind.lower()
    except Exception:
        pass
    try:
        vmem_cap = int(pltpu.get_tpu_info().vmem_capacity_bytes)
    except Exception:
        vmem_cap = 64 * 2**20 if "v7" in kind else 128 * 2**20
    return kind, vmem_cap


def gcc_phat(x, y, max_tau=None, epsilon=1e-3, use_bf16_bases=False):
    """GCC.forward with filt='phat', dim=2, beta=None."""
    B, lx = x.shape
    by, ly = y.shape
    assert by == B, "x and y must share the batch dimension"
    n = lx + ly
    nf = n // 2 + 1

    max_shift = n // 2
    if max_tau:  # truthiness check matches the PyTorch module (`if self.max_tau:`)
        max_shift = int(min(int(max_tau), max_shift))
    out_len = 2 * max_shift + 1

    kind, vmem_cap = _device_info()
    vmem_budget = int(vmem_cap * 0.85)          # ~15% headroom

    # ---- lane/sublane-aligned padded sizes --------------------------------
    compute_dtype = jnp.bfloat16 if use_bf16_bases else jnp.float32
    in_bytes = 2 if use_bf16_bases else 4
    l_pad = _round_up(max(lx, ly), 128)         # aligned K for the forward dot
    nfp = _round_up(nf, 128)                    # lane-dense frequency axis
    out_128 = _round_up(out_len, 128)           # minimal lane-dense output width

    tb_cap = 128 if "v5" in kind else 256       # v6e/v7x MXU is 256 wide
    tb = min(tb_cap, _round_up(B, 8))
    bp = _round_up(B, tb)
    # v7x has 2 TensorCores: make sure the "parallel" batch axis has >=2 blocks.
    if "v7" in kind and bp // tb < 2 and _round_up(B, 8) >= 16:
        tb = _round_up((tb + 1) // 2, 8)
        bp = _round_up(B, tb)
    nb = bp // tb

    # ---- VMEM sizing: keep the inverse basis resident whenever it fits ----
    fwd_bytes = l_pad * 2 * nfp * in_bytes           # single-buffered (resident)
    z_bytes = 2 * (2 * tb) * l_pad * in_bytes        # double-buffered input tile
    r_bytes = tb * 2 * nfp * in_bytes                # cross-spectrum scratch
    fixed = fwd_bytes + z_bytes + r_bytes

    resident_cost = 2 * nfp * out_128 * in_bytes + 2 * tb * out_128 * 4
    if fixed + resident_cost <= vmem_budget:
        inv_resident = True
        tn = out_128
    else:
        inv_resident = False
        per_col = 2 * (2 * nfp * in_bytes + tb * 4)  # dbl-buffered inv + out tile
        tn = max(128, min(out_128, ((vmem_budget - fixed) // per_col) // 128 * 128))
        # TODO(synk): for very large n (forward basis alone exceeding VMEM) add a
        # K grid axis tiling the contraction instead of keeping it resident.
    out_pad = _round_up(out_len, tn)

    need = (fixed
            + (2 * nfp * tn * in_bytes) * (1 if inv_resident else 2)
            + 2 * tb * tn * 4)
    vmem_limit = int(min(vmem_cap, max(need + (4 << 20), 32 << 20)))

    # ---- host-built DFT bases ----------------------------------------------
    fwd = _forward_basis(l_pad, n, nf, nfp, compute_dtype)
    inv = _inverse_basis(n, nf, nfp, max_shift, out_len, out_pad, compute_dtype)

    # ---- pre-stack x and y so each batch tile is one contiguous block ------
    xp = jnp.zeros((bp, l_pad), compute_dtype).at[:B, :lx].set(x.astype(compute_dtype))
    yp = jnp.zeros((bp, l_pad), compute_dtype).at[:B, :ly].set(y.astype(compute_dtype))
    z = jnp.concatenate([xp.reshape(nb, tb, l_pad),
                         yp.reshape(nb, tb, l_pad)], axis=1).reshape(nb * 2 * tb, l_pad)

    kernel = functools.partial(_gcc_phat_kernel, epsilon=float(epsilon),
                               nfp=nfp, tb=tb)
    grid = (nb, out_pad // tn)

    def _run(single_buffer):
        res_kw = {"pipeline_mode": pl.Buffered(1)} if single_buffer else {}
        fwd_spec = pl.BlockSpec((l_pad, 2 * nfp), lambda i, j: (0, 0), **res_kw)
        if inv_resident:
            inv_spec = pl.BlockSpec((2 * nfp, tn), lambda i, j: (0, 0), **res_kw)
        else:
            inv_spec = pl.BlockSpec((2 * nfp, tn), lambda i, j: (0, j))
        return pl.pallas_call(
            kernel,
            out_shape=jax.ShapeDtypeStruct((bp, out_pad), jnp.float32),
            grid_spec=pltpu.PrefetchScalarGridSpec(
                num_scalar_prefetch=0,
                grid=grid,
                in_specs=[
                    pl.BlockSpec((2 * tb, l_pad), lambda i, j: (i, 0)),  # stacked [x;y]
                    fwd_spec,                                            # fwd basis (resident)
                    inv_spec,                                            # inv basis
                ],
                out_specs=pl.BlockSpec((tb, tn), lambda i, j: (i, j)),
                scratch_shapes=[pltpu.VMEM((tb, 2 * nfp), compute_dtype)],
            ),
            compiler_params=pltpu.CompilerParams(
                dimension_semantics=("parallel", "arbitrary"),
                vmem_limit_bytes=vmem_limit,
            ),
        )(z, fwd, inv)

    try:
        cc = _run(single_buffer=True)
    except Exception:
        # Fallback for jax versions without BlockSpec(pipeline_mode=...):
        # identical numerics, just double-buffers the resident bases.
        cc = _run(single_buffer=False)

    # Only a cheap slice remains in the wrapper (shift/concat is in-kernel).
    return cc[:B, :out_len]


def _reference(x, y, max_tau=None, epsilon=1e-3):
    """Plain-JAX reference matching the PyTorch forward (phat, dim=2, beta=None)."""
    n = x.shape[-1] + y.shape[-1]
    X = jnp.fft.rfft(x, n=n)
    Y = jnp.fft.rfft(y, n=n)
    Gxy = X * jnp.conj(Y)
    phi = 1.0 / (jnp.abs(Gxy) + epsilon)
    cc = jnp.fft.irfft(Gxy * phi, n)
    max_shift = n // 2
    if max_tau:
        max_shift = int(min(int(max_tau), max_shift))
    return jnp.concatenate([cc[:, -max_shift:], cc[:, :max_shift + 1]], axis=-1)


if __name__ == "__main__":
    # Small case (module's natural shapes): B=2, L=8 -> n=16, out_len=17.
    kx, ky = jax.random.split(jax.random.PRNGKey(0))
    x = jax.random.normal(kx, (2, 8), dtype=jnp.float32)
    y = jax.random.normal(ky, (2, 8), dtype=jnp.float32)
    out = jax.block_until_ready(gcc_phat(x, y))
    ref = jax.block_until_ready(_reference(x, y))
    assert out.shape == ref.shape == (2, 17)
    np.testing.assert_allclose(np.asarray(out), np.asarray(ref),
                               rtol=1e-4, atol=1e-4)

    # Larger case exercising batch padding / resident inverse basis:
    # B=20, L=300 -> n=600, out_len=601 (out_pad=640, single column tile).
    kx2, ky2 = jax.random.split(jax.random.PRNGKey(0), 2)
    x2 = jax.random.normal(kx2, (20, 300), dtype=jnp.float32)
    y2 = jax.random.normal(ky2, (20, 300), dtype=jnp.float32)
    out2 = jax.block_until_ready(gcc_phat(x2, y2))
    ref2 = jax.block_until_ready(_reference(x2, y2))
    assert out2.shape == ref2.shape == (20, 601)
    np.testing.assert_allclose(np.asarray(out2), np.asarray(ref2),
                               rtol=1e-4, atol=2e-4)

    print("KERNEL_OK")
</pallas_src>

<mosaic_0001>
module attributes {stable_mosaic.version = 11 : i64} {
  func.func @_gcc_phat_kernel(%arg0: i32, %arg1: i32, %arg2: memref<16x128xf32, #tpu.memory_space<vmem>>, %arg3: memref<128x256xf32, #tpu.memory_space<vmem>>, %arg4: memref<256x128xf32, #tpu.memory_space<vmem>>, %arg5: memref<8x128xf32, #tpu.memory_space<vmem>>, %arg6: memref<8x256xf32, #tpu.memory_space<vmem>>) attributes {dimension_semantics = [#tpu.dimension_semantics<parallel>, #tpu.dimension_semantics<arbitrary>], iteration_bounds = array<i64: 1, 1>, scalar_prefetch = 0 : i64, scratch_operands = 1 : i64, tpu.core_type = #tpu.core_type<tc>, window_params = [{transform_indices = @transform_0, window_bounds = array<i64: 16, 128>}, {pipeline_mode = #tpu.pipeline_mode<synchronous>, transform_indices = @transform_1, window_bounds = array<i64: 128, 256>}, {pipeline_mode = #tpu.pipeline_mode<synchronous>, transform_indices = @transform_2, window_bounds = array<i64: 256, 128>}, {transform_indices = @transform_3, window_bounds = array<i64: 8, 128>}]} {
    %c0_i32 = arith.constant 0 : i32
    %0 = arith.cmpi eq, %arg1, %c0_i32 : i32
    %1 = arith.extui %0 : i1 to i32
    %c0_i32_0 = arith.constant 0 : i32
    %2 = arith.cmpi ne, %1, %c0_i32_0 : i32
    scf.if %2 {
      %c0_6 = arith.constant 0 : index
      %c0_7 = arith.constant 0 : index
      %7 = vector.load %arg2[%c0_6, %c0_7] : memref<16x128xf32, #tpu.memory_space<vmem>>, vector<16x128xf32>
      %c0_8 = arith.constant 0 : index
      %c0_9 = arith.constant 0 : index
      %8 = vector.load %arg3[%c0_8, %c0_9] : memref<128x256xf32, #tpu.memory_space<vmem>>, vector<128x256xf32>
      %cst_10 = arith.constant dense<0.000000e+00> : vector<16x256xf32>
      %9 = tpu.matmul %7, %8, %cst_10 {dimension_numbers = #tpu.dot_dimension_numbers<[1], [0], [0], [1], [0, 0, 1, 1], [], []>, precision = #tpu.contract_precision<fp32>} : vector<16x128xf32>, vector<128x256xf32>, vector<16x256xf32> -> vector<16x256xf32>
      %10 = vector.extract_strided_slice %9 {offsets = [0, 0], sizes = [8, 128], strides = [1, 1]} : vector<16x256xf32> to vector<8x128xf32>
      %11 = vector.extract_strided_slice %9 {offsets = [0, 128], sizes = [8, 128], strides = [1, 1]} : vector<16x256xf32> to vector<8x128xf32>
      %12 = vector.extract_strided_slice %9 {offsets = [8, 0], sizes = [8, 128], strides = [1, 1]} : vector<16x256xf32> to vector<8x128xf32>
      %13 = vector.extract_strided_slice %9 {offsets = [8, 128], sizes = [8, 128], strides = [1, 1]} : vector<16x256xf32> to vector<8x128xf32>
      %14 = arith.mulf %10, %12 : vector<8x128xf32>
      %15 = arith.mulf %11, %13 : vector<8x128xf32>
      %16 = arith.addf %14, %15 : vector<8x128xf32>
      %17 = arith.mulf %11, %12 : vector<8x128xf32>
      %18 = arith.mulf %10, %13 : vector<8x128xf32>
      %19 = arith.subf %17, %18 : vector<8x128xf32>
      %20 = arith.mulf %16, %16 : vector<8x128xf32>
      %21 = arith.mulf %19, %19 : vector<8x128xf32>
      %22 = arith.addf %20, %21 : vector<8x128xf32>
      %23 = math.sqrt %22 : vector<8x128xf32>
      %cst_11 = arith.constant 1.000000e-03 : f32
      %24 = vector.broadcast %cst_11 : f32 to vector<8x128xf32>
      %25 = arith.addf %23, %24 : vector<8x128xf32>
      %cst_12 = arith.constant 1.000000e-30 : f32
      %26 = vector.broadcast %cst_12 : f32 to vector<8x128xf32>
      %27 = arith.maximumf %25, %26 : vector<8x128xf32>
      %28 = tpu.reciprocal %27 : vector<8x128xf32> -> vector<8x128xf32>
      %29 = arith.mulf %16, %28 : vector<8x128xf32>
      %c0_13 = arith.constant 0 : index
      %c0_14 = arith.constant 0 : index
      %30 = vector.load %arg6[%c0_13, %c0_14] : memref<8x256xf32, #tpu.memory_space<vmem>>, vector<8x128xf32>
      tpu.vector_store %arg6[%c0_13, %c0_14], %29 {strides = array<i32>} : memref<8x256xf32, #tpu.memory_space<vmem>>, vector<8x128xf32>,
      %31 = arith.mulf %19, %28 : vector<8x128xf32>
      %c0_15 = arith.constant 0 : index
      %c128 = arith.constant 128 : index
      %32 = vector.load %arg6[%c0_15, %c128] : memref<8x256xf32, #tpu.memory_space<vmem>>, vector<8x128xf32>
      tpu.vector_store %arg6[%c0_15, %c128], %31 {strides = array<i32>} : memref<8x256xf32, #tpu.memory_space<vmem>>, vector<8x128xf32>,
    } else {
    }
    %c0 = arith.constant 0 : index
    %c0_1 = arith.constant 0 : index
    %3 = vector.load %arg6[%c0, %c0_1] : memref<8x256xf32, #tpu.memory_space<vmem>>, vector<8x256xf32>
    %c0_2 = arith.constant 0 : index
    %c0_3 = arith.constant 0 : index
    %4 = vector.load %arg4[%c0_2, %c0_3] : memref<256x128xf32, #tpu.memory_space<vmem>>, vector<256x128xf32>
    %cst = arith.constant dense<0.000000e+00> : vector<8x128xf32>
    %5 = tpu.matmul %3, %4, %cst {dimension_numbers = #tpu.dot_dimension_numbers<[1], [0], [0], [1], [0, 0, 1, 1], [], []>, precision = #tpu.contract_precision<fp32>} : vector<8x256xf32>, vector<256x128xf32>, vector<8x128xf32> -> vector<8x128xf32>
    %c0_4 = arith.constant 0 : index
    %c0_5 = arith.constant 0 : index
    %6 = vector.load %arg5[%c0_4, %c0_5] : memref<8x128xf32, #tpu.memory_space<vmem>>, vector<8x128xf32>
    tpu.vector_store %arg5[%c0_4, %c0_5], %5 {strides = array<i32>} : memref<8x128xf32, #tpu.memory_space<vmem>>, vector<8x128xf32>,
    return
  }
  func.func @transform_0(%arg0: i32, %arg1: i32) -> (i32, i32) {
    %c0_i32 = arith.constant 0 : i32
    %c0_i32_0 = arith.constant 0 : i32
    return %arg0, %c0_i32 : i32, i32
  }
  func.func @transform_1(%arg0: i32, %arg1: i32) -> (i32, i32) {
    %c0_i32 = arith.constant 0 : i32
    %c0_i32_0 = arith.constant 0 : i32
    %c0_i32_1 = arith.constant 0 : i32
    return %c0_i32, %c0_i32_0 : i32, i32
  }
  func.func @transform_2(%arg0: i32, %arg1: i32) -> (i32, i32) {
    %c0_i32 = arith.constant 0 : i32
    %c0_i32_0 = arith.constant 0 : i32
    %c0_i32_1 = arith.constant 0 : i32
    return %c0_i32, %c0_i32_0 : i32, i32
  }
  func.func @transform_3(%arg0: i32, %arg1: i32) -> (i32, i32) {
    %c0_i32 = arith.constant 0 : i32
    return %arg0, %arg1 : i32, i32
  }
}

module attributes {stable_mosaic.version = 11 : i64} {
  func.func @_gcc_phat_kernel(%arg0: i32, %arg1: i32, %arg2: memref<16x128xf32, #tpu.memory_space<vmem>>, %arg3: memref<128x256xf32, #tpu.memory_space<vmem>>, %arg4: memref<256x128xf32, #tpu.memory_space<vmem>>, %arg5: memref<8x128xf32, #tpu.memory_space<vmem>>, %arg6: memref<8x256xf32, #tpu.memory_space<vmem>>) attributes {dimension_semantics = [#tpu.dimension_semantics<parallel>, #tpu.dimension_semantics<arbitrary>], iteration_bounds = array<i64: 1, 1>, scalar_prefetch = 0 : i64, scratch_operands = 1 : i64, tpu.core_type = #tpu.core_type<tc>, window_params = [{transform_indices = @transform_0, window_bounds = array<i64: 16, 128>}, {pipeline_mode = #tpu.pipeline_mode<synchronous>, transform_indices = @transform_1, window_bounds = array<i64: 128, 256>}, {pipeline_mode = #tpu.pipeline_mode<synchronous>, transform_indices = @transform_2, window_bounds = array<i64: 256, 128>}, {transform_indices = @transform_3, window_bounds = array<i64: 8, 128>}]} {
    %c0_i32 = arith.constant 0 : i32
    %0 = arith.cmpi eq, %arg1, %c0_i32 : i32
    %1 = arith.extui %0 : i1 to i32
    %c0_i32_0 = arith.constant 0 : i32
    %2 = arith.cmpi ne, %1, %c0_i32_0 : i32
    scf.if %2 {
      %c0_6 = arith.constant 0 : index
      %c0_7 = arith.constant 0 : index
      %7 = vector.load %arg2[%c0_6, %c0_7] : memref<16x128xf32, #tpu.memory_space<vmem>>, vector<16x128xf32>
      %c0_8 = arith.constant 0 : index
      %c0_9 = arith.constant 0 : index
      %8 = vector.load %arg3[%c0_8, %c0_9] : memref<128x256xf32, #tpu.memory_space<vmem>>, vector<128x256xf32>
      %cst_10 = arith.constant dense<0.000000e+00> : vector<16x256xf32>
      %9 = tpu.matmul %7, %8, %cst_10 {dimension_numbers = #tpu.dot_dimension_numbers<[1], [0], [0], [1], [0, 0, 1, 1], [], []>, precision = #tpu.contract_precision<fp32>} : vector<16x128xf32>, vector<128x256xf32>, vector<16x256xf32> -> vector<16x256xf32>
      %10 = vector.extract_strided_slice %9 {offsets = [0, 0], sizes = [8, 128], strides = [1, 1]} : vector<16x256xf32> to vector<8x128xf32>
      %11 = vector.extract_strided_slice %9 {offsets = [0, 128], sizes = [8, 128], strides = [1, 1]} : vector<16x256xf32> to vector<8x128xf32>
      %12 = vector.extract_strided_slice %9 {offsets = [8, 0], sizes = [8, 128], strides = [1, 1]} : vector<16x256xf32> to vector<8x128xf32>
      %13 = vector.extract_strided_slice %9 {offsets = [8, 128], sizes = [8, 128], strides = [1, 1]} : vector<16x256xf32> to vector<8x128xf32>
      %14 = arith.mulf %10, %12 : vector<8x128xf32>
      %15 = arith.mulf %11, %13 : vector<8x128xf32>
      %16 = arith.addf %14, %15 : vector<8x128xf32>
      %17 = arith.mulf %11, %12 : vector<8x128xf32>
      %18 = arith.mulf %10, %13 : vector<8x128xf32>
      %19 = arith.subf %17, %18 : vector<8x128xf32>
      %20 = arith.mulf %16, %16 : vector<8x128xf32>
      %21 = arith.mulf %19, %19 : vector<8x128xf32>
      %22 = arith.addf %20, %21 : vector<8x128xf32>
      %23 = math.sqrt %22 : vector<8x128xf32>
      %cst_11 = arith.constant 1.000000e-03 : f32
      %24 = vector.broadcast %cst_11 : f32 to vector<8x128xf32>
      %25 = arith.addf %23, %24 : vector<8x128xf32>
      %cst_12 = arith.constant 1.000000e-30 : f32
      %26 = vector.broadcast %cst_12 : f32 to vector<8x128xf32>
      %27 = arith.maximumf %25, %26 : vector<8x128xf32>
      %28 = tpu.reciprocal %27 : vector<8x128xf32> -> vector<8x128xf32>
      %29 = arith.mulf %16, %28 : vector<8x128xf32>
      %c0_13 = arith.constant 0 : index
      %c0_14 = arith.constant 0 : index
      %30 = vector.load %arg6[%c0_13, %c0_14] : memref<8x256xf32, #tpu.memory_space<vmem>>, vector<8x128xf32>
      tpu.vector_store %arg6[%c0_13, %c0_14], %29 {strides = array<i32>} : memref<8x256xf32, #tpu.memory_space<vmem>>, vector<8x128xf32>,
      %31 = arith.mulf %19, %28 : vector<8x128xf32>
      %c0_15 = arith.constant 0 : index
      %c128 = arith.constant 128 : index
      %32 = vector.load %arg6[%c0_15, %c128] : memref<8x256xf32, #tpu.memory_space<vmem>>, vector<8x128xf32>
      tpu.vector_store %arg6[%c0_15, %c128], %31 {strides = array<i32>} : memref<8x256xf32, #tpu.memory_space<vmem>>, vector<8x128xf32>,
    } else {
    }
    %c0 = arith.constant 0 : index
    %c0_1 = arith.constant 0 : index
    %3 = vector.load %arg6[%c0, %c0_1] : memref<8x256xf32, #tpu.memory_space<vmem>>, vector<8x256xf32>
    %c0_2 = arith.constant 0 : index
    %c0_3 = arith.constant 0 : index
    %4 = vector.load %arg4[%c0_2, %c0_3] : memref<256x128xf32, #tpu.memory_space<vmem>>, vector<256x128xf32>
    %cst = arith.constant dense<0.000000e+00> : vector<8x128xf32>
    %5 = tpu.matmul %3, %4, %cst {dimension_numbers = #tpu.dot_dimension_numbers<[1], [0], [0], [1], [0, 0, 1, 1], [], []>, precision = #tpu.contract_precision<fp32>} : vector<8x256xf32>, vector<256x128xf32>, vector<8x128xf32> -> vector<8x128xf32>
    %c0_4 = arith.constant 0 : index
    %c0_5 = arith.constant 0 : index
    %6 = vector.load %arg5[%c0_4, %c0_5] : memref<8x128xf32, #tpu.memory_space<vmem>>, vector<8x128xf32>
    tpu.vector_store %arg5[%c0_4, %c0_5], %5 {strides = array<i32>} : memref<8x128xf32, #tpu.memory_space<vmem>>, vector<8x128xf32>,
    return
  }
  func.func @transform_0(%arg0: i32, %arg1: i32) -> (i32, i32) {
    %c0_i32 = arith.constant 0 : i32
    %c0_i32_0 = arith.constant 0 : i32
    return %arg0, %c0_i32 : i32, i32
  }
  func.func @transform_1(%arg0: i32, %arg1: i32) -> (i32, i32) {
    %c0_i32 = arith.constant 0 : i32
    %c0_i32_0 = arith.constant 0 : i32
    %c0_i32_1 = arith.constant 0 : i32
    return %c0_i32, %c0_i32_0 : i32, i32
  }
  func.func @transform_2(%arg0: i32, %arg1: i32) -> (i32, i32) {
    %c0_i32 = arith.constant 0 : i32
    %c0_i32_0 = arith.constant 0 : i32
    %c0_i32_1 = arith.constant 0 : i32
    return %c0_i32, %c0_i32_0 : i32, i32
  }
  func.func @transform_3(%arg0: i32, %arg1: i32) -> (i32, i32) {
    %c0_i32 = arith.constant 0 : i32
    return %arg0, %arg1 : i32, i32
  }
}

</mosaic_0001>

<bundles_post_ra>
// kernel: tpu_custom_call.1
= control target key start
LH: loop header
LB: loop body
LE: loop exit
PB: predicated region body
PF: predicated region fallthrough
CT: control target
= control target key end

     0   :  { %8 = vsyncpa [#allocation4], 0  ;;  %s3764_s0 = inlined_call_operand.hbm [shape: f32[16,128], index: 0, kind: input, shape index: {}]   ;;  %s3765_s1 = inlined_call_operand.hbm [shape: f32[128,256], index: 1, kind: input, shape index: {}]   ;;  %s3766_s2 = inlined_call_operand.hbm [shape: f32[256,128], index: 2, kind: input, shape index: {}]   ;;  %s3767_s3 = inlined_call_operand.hbm [shape: f32[8,128], index: 3, kind: output, shape index: {}]  }
   0x1   :  { %9 = vsyncpa [#allocation7], 0 }
   0x2   :  { %10 = vsyncpa [#allocation5], 0  ;;  %s2655_s12 = smov [#allocation6]   ;;  %s2561_s16 = scalar_lea.hbm %s3765_s1, 4096 }
   0x3   :  { %s28_s13 = sshll.u32 %s2655_s12, 4  ;;  %p2562_p0 = scmp.ne.s32.totalorder %s3765_s1, %s2561_s16  ;;  %s29_s13 = int_to_ptr.vmem [resolvable:$true] %s28_s13 }
   0x4   :  { %p2565_p1 = scmp.lt.u32.totalorder %s2561_s16, %s3765_s1 }
   0x6   :  { %p2567_p2 = pnand %p2565_p1, %p2562_p0 }
   0x8   :  { %2570 = shalt.err (!%p2567_p2)
}
   0x9   :  { %s2571_s21 = scalar_lea.vmem %s29_s13, 4096  ;;  %p2576_p4 = scmp.lt.s32.totalorder %s29_s13, %s29_s13 }
   0xa   :  { %p2572_p3 = scmp.ne.s32.totalorder %s29_s13, %s2571_s21  ;;  %p2577_p5 = scmp.lt.s32.totalorder %s2571_s21, %s2571_s21 }
   0xc   :  { %p2578_p6 = por %p2577_p5, %p2576_p4 }
   0xe   :  { %p2579_p7 = pnand %p2578_p6, %p2572_p3 }
  0x10   :  { %2582 = shalt.err (!%p2579_p7)
}
  0x11   :  { %s2656_s22 = smov 256   ;;  %s2657_s23 = smov 16  }
  0x12   :  { %34 = dma.hbm_to_vmem [thread:$0]  %s3765_s1, 4096, %s29_s13, [#allocation7], %s2656_s22, %s2656_s22, %s2657_s23  }
  0x13   :  { %s2658_s26 = smov [#allocation3]   ;;  %s2583_s30 = scalar_lea.hbm %s3764_s0, 256 }
  0x14   :  { %s16_s27 = sshll.u32 %s2658_s26, 4  ;;  %p2584_p8 = scmp.ne.s32.totalorder %s3764_s0, %s2583_s30  ;;  %s17_s27 = int_to_ptr.vmem [resolvable:$true] %s16_s27 }
  0x15   :  { %p2587_p9 = scmp.lt.u32.totalorder %s2583_s30, %s3764_s0 }
  0x17   :  { %p2589_p10 = pnand %p2587_p9, %p2584_p8 }
  0x19   :  { %2592 = shalt.err (!%p2589_p10)
}
  0x1a   :  { %s2593_s8 = scalar_lea.vmem %s17_s27, 256  ;;  %p2598_p12 = scmp.lt.s32.totalorder %s17_s27, %s17_s27 }
  0x1b   :  { %p2594_p11 = scmp.ne.s32.totalorder %s17_s27, %s2593_s8  ;;  %p2599_p13 = scmp.lt.s32.totalorder %s2593_s8, %s2593_s8 }
  0x1d   :  { %p2600_p0 = por %p2599_p13, %p2598_p12 }
  0x1f   :  { %p2601_p1 = pnand %p2600_p0, %p2594_p11 }
  0x21   :  { %2604 = shalt.err (!%p2601_p1)
}
  0x22   :  { %s2659_s1 = smov 128   ;;  %s2660_s9 = smov 8  }
  0x23   :  { %22 = dma.hbm_to_vmem [thread:$0]  %s3764_s0, 256, %s17_s27, [#allocation4], %s2659_s1, %s2659_s1, %s2660_s9  }
  0x24   :  { %s2661_s12 = smov [#allocation8]   ;;  %s2605_s16 = scalar_lea.hbm %s3766_s2, 4096 }
  0x25   :  { %s40_s13 = sshll.u32 %s2661_s12, 4  ;;  %p2606_p2 = scmp.ne.s32.totalorder %s3766_s2, %s2605_s16  ;;  %s41_s13 = int_to_ptr.vmem [resolvable:$true] %s40_s13 }
  0x26   :  { %p2609_p3 = scmp.lt.u32.totalorder %s2605_s16, %s3766_s2 }
  0x28   :  { %p2611_p4 = pnand %p2609_p3, %p2606_p2 }
  0x2a   :  { %2614 = shalt.err (!%p2611_p4)
}
  0x2b   :  { %s2615_s21 = scalar_lea.vmem %s41_s13, 4096  ;;  %p2620_p6 = scmp.lt.s32.totalorder %s41_s13, %s41_s13 }
  0x2c   :  { %p2616_p5 = scmp.ne.s32.totalorder %s41_s13, %s2615_s21  ;;  %p2621_p7 = scmp.lt.s32.totalorder %s2615_s21, %s2615_s21 }
  0x2e   :  { %p2622_p8 = por %p2621_p7, %p2620_p6 }
  0x30   :  { %p2623_p9 = pnand %p2622_p8, %p2616_p5 }
  0x32   :  { %2626 = shalt.err (!%p2623_p9)
}
  0x33   :  { %46 = dma.hbm_to_vmem [thread:$0]  %s3766_s2, 4096, %s41_s13, [#allocation7], %s2659_s1, %s2659_s1, %s2660_s9  }
  0x34   :  { %2649 = dma.done.wait [#allocation4], 256  }
  0x35   :  { %2650 = vsyncadd [#allocation4], 4294967040 }
  0x36   :  { %2651 = dma.done.wait [#allocation7], 8192  }
  0x37   :  { %2652 = vsyncadd [#allocation7], 4294959104  ;;  %v3770_v0 = vmov 0.0   ;;  %v63_v1 = vld [vmem:[#allocation6 + $0x8] sm:$0xff]  ;;  %v65_v2 = vld [vmem:[#allocation6 + $0x18] sm:$0xff]  ;;  %s2663_s2 = smov [#allocation9]  }
  0x38   :  { %190 = vmatprep.mubr.f32.mxu0 %v3770_v0  ;;  %v62_v3 = vld [vmem:[#allocation6] sm:$0xff]  ;;  %v94_v4 = vand.u32 4294901760, %v63_v1  ;;  %v98_v5 = vand.u32 4294901760, %v65_v2  ;;  %v64_v6 = vld [vmem:[#allocation6 + $0x10] sm:$0xff]  ;;  %v67_v8 = vld [vmem:[#allocation6 + $0x28] sm:$0xff]  ;;  %s1924_s23 = sshll.u32 %s2663_s2, 4  ;;  %s1925_s23 = int_to_ptr.vmem [resolvable:$true] %s1924_s23 }
  0x39   :  { %v96_v7 = vand.u32 4294901760, %v62_v3  ;;  %v69_v9 = vld [vmem:[#allocation6 + $0x38] sm:$0xff]  ;;  %v100_v10 = vand.u32 4294901760, %v64_v6  ;;  %v102_v11 = vand.u32 4294901760, %v67_v8  ;;  %v66_v13 = vld [vmem:[#allocation6 + $0x20] sm:$0xff]  ;;  %v68_v14 = vld [vmem:[#allocation6 + $0x30] sm:$0xff]  ;;  %p2632_p11 = scmp.lt.s32.totalorder %s1925_s23, %s1925_s23 }
  0x3a   :  { %v106_v12 = vand.u32 4294901760, %v69_v9  ;;  %v71_v15 = vld [vmem:[#allocation6 + $0x48] sm:$0xff]  ;;  %v2721_v16 = vpack.c.bf16 %v98_v5, %v94_v4  ;;  %v73_v17 = vld [vmem:[#allocation6 + $0x58] sm:$0xff]  ;;  %v70_v18 = vld [vmem:[#allocation6 + $0x40] sm:$0xff]  ;;  %v104_v23 = vand.u32 4294901760, %v66_v13  ;;  %v108_v24 = vand.u32 4294901760, %v68_v14 }
  0x3b   :  { %v72_v19 = vld [vmem:[#allocation6 + $0x50] sm:$0xff]  ;;  %v2723_v20 = vpack.c.bf16 %v100_v10, %v96_v7  ;;  %v75_v22 = vld [vmem:[#allocation6 + $0x68] sm:$0xff]  ;;  %v110_v25 = vand.u32 4294901760, %v71_v15  ;;  %v114_v26 = vand.u32 4294901760, %v73_v17  ;;  %v112_v27 = vand.u32 4294901760, %v70_v18  ;;  %v77_v29 = vld [vmem:[#allocation6 + $0x78] sm:$0xff] }
  0x3c   :  { %3912 = vst [vmem:[#allocation13_spill] sm:$0xff] %v2721_v16  ;;  %v2725_v21 = vpack.c.bf16 %v106_v12, %v102_v11  ;;  %2145 = vmatprep.subr.bf16.mxu0 %v2721_v16  ;;  %v116_v28 = vand.u32 4294901760, %v72_v19  ;;  %v74_v30 = vld [vmem:[#allocation6 + $0x60] sm:$0xff]  ;;  %v2729_v31 = vsub.f32 %v63_v1, %v94_v4  ;;  %v2732_v32 = vpack.c.bf16 %v108_v24, %v104_v23  ;;  %v76_v34 = vld [vmem:[#allocation6 + $0x70] sm:$0xff]  ;;  %v79_v39 = vld [vmem:[#allocation6 + $0x88] sm:$0xff]  ;;  %s2627_s24 = scalar_lea.vmem %s1925_s23, 128 }
  0x3d   :  { %3913 = vst [vmem:[#allocation14_spill] sm:$0xff] %v2723_v20  ;;  %2147 = vmatpush1.bf16.msra.mxu0 %v2723_v20  ;;  %v118_v33 = vand.u32 4294901760, %v75_v22  ;;  %v2734_v35 = vsub.f32 %v65_v2, %v98_v5  ;;  %v2736_v36 = vsub.f32 %v62_v3, %v96_v7  ;;  %v2738_v37 = vsub.f32 %v64_v6, %v100_v10  ;;  %v81_v40 = vld [vmem:[#allocation6 + $0x98] sm:$0xff]  ;;  %v78_v45 = vld [vmem:[#allocation6 + $0x80] sm:$0xff]  ;;  %v80_v46 = vld [vmem:[#allocation6 + $0x90] sm:$0xff]  ;;  %p2628_p10 = scmp.ne.s32.totalorder %s1925_s23, %s2627_s24  ;;  %p2633_p12 = scmp.lt.s32.totalorder %s2627_s24, %s2627_s24 }
  0x3e   :  { %3914 = vst [vmem:[#allocation15_spill] sm:$0xff] %v2725_v21  ;;  %2149 = vmatprep.subr.bf16.mxu0 %v2725_v21  ;;  %3915 = vst [vmem:[#allocation16_spill] sm:$0xff] %v2732_v32  ;;  %v2740_v38 = vpack.c.bf16 %v114_v26, %v110_v25  ;;  %v2742_v41 = vsub.f32 %v67_v8, %v102_v11  ;;  %v2744_v42 = vsub.f32 %v69_v9, %v106_v12  ;;  %v83_v51 = vld [vmem:[#allocation6 + $0xa8] sm:$0xff]  ;;  %v85_v56 = vld [vmem:[#allocation6 + $0xb8] sm:$0xff] }
  0x3f   :  { %v122_v43 = vand.u32 4294901760, %v77_v29  ;;  %v120_v44 = vand.u32 4294901760, %v74_v30  ;;  %v2747_v47 = vsub.f32 %v66_v13, %v104_v23  ;;  %v2749_v48 = vsub.f32 %v68_v14, %v108_v24  ;;  %v82_v57 = vld [vmem:[#allocation6 + $0xa0] sm:$0xff]  ;;  %v84_v58 = vld [vmem:[#allocation6 + $0xb0] sm:$0xff]  ;;  %v87_v63 = vld [vmem:[#allocation6 + $0xc8] sm:$0xff]  ;;  %p2634_p13 = por %p2633_p12, %p2632_p11 }
  0x40   :  { %3916 = vst [vmem:[#allocation17_spill] sm:$0xff] %v2740_v38  ;;  %v2751_v49 = vpack.c.bf16 %v116_v28, %v112_v27  ;;  %v124_v50 = vand.u32 4294901760, %v76_v34  ;;  %v2754_v52 = vsub.f32 %v71_v15, %v110_v25  ;;  %v126_v54 = vand.u32 4294901760, %v79_v39  ;;  %v89_v1 = vld [vmem:[#allocation6 + $0xd8] sm:$0xff]  ;;  %v86_v10 = vld [vmem:[#allocation6 + $0xc0] sm:$0xff]  ;;  %v88_v11 = vld [vmem:[#allocation6 + $0xd0] sm:$0xff] }
  0x41   :  { %2151 = vmatpush1.bf16.msra.mxu0 %v2732_v32  ;;  %v2756_v53 = vpack.c.bf16 %v122_v43, %v118_v33  ;;  %v130_v55 = vand.u32 4294901760, %v81_v40  ;;  %v2758_v59 = vsub.f32 %v73_v17, %v114_v26  ;;  %v2760_v60 = vsub.f32 %v70_v18, %v112_v27  ;;  %v60_v27 = vld [vmem:[#allocation3] sm:$0xff]  ;;  %v61_v20 = vld [vmem:[#allocation3 + $0x8] sm:$0xff]  ;;  %p2635_p0 = pnand %p2634_p13, %p2628_p10 }
  0x42   :  { %3917 = vst [vmem:[#allocation18_spill] sm:$0xff] %v2751_v49  ;;  %2153 = vmatprep.subr.bf16.mxu0 %v2740_v38  ;;  %v128_v61 = vand.u32 4294901760, %v78_v45  ;;  %v132_v62 = vand.u32 4294901760, %v80_v46  ;;  %v2762_v2 = vsub.f32 %v72_v19, %v116_v28  ;;  %v2764_v3 = vsub.f32 %v75_v22, %v118_v33 }
  0x43   :  { %3918 = vst [vmem:[#allocation19_spill] sm:$0xff] %v2756_v53  ;;  %v2766_v4 = vsub.f32 %v77_v29, %v122_v43  ;;  %v2768_v5 = vpack.c.bf16 %v124_v50, %v120_v44  ;;  %v134_v6 = vand.u32 4294901760, %v83_v51  ;;  %v138_v7 = vand.u32 4294901760, %v85_v56 }
  0x44   :  { %v136_v8 = vand.u32 4294901760, %v82_v57  ;;  %v140_v9 = vand.u32 4294901760, %v84_v58  ;;  %v2772_v12 = vsub.f32 %v74_v30, %v120_v44  ;;  %v2774_v13 = vpack.c.bf16 %v130_v55, %v126_v54  ;;  %v91_v44 = vld [vmem:[#allocation6 + $0xe8] sm:$0xff] }
  0x45   :  { %3919 = vst [vmem:[#allocation20_spill] sm:$0xff] %v2768_v5  ;;  %2155 = vmatpush1.bf16.msra.mxu0 %v2751_v49  ;;  %v142_v14 = vand.u32 4294901760, %v87_v63  ;;  %v146_v15 = vand.u32 4294901760, %v89_v1  ;;  %v2776_v17 = vsub.f32 %v76_v34, %v124_v50  ;;  %v2778_v18 = vsub.f32 %v79_v39, %v126_v54 }
  0x46   :  { %2157 = vmatprep.subr.bf16.mxu0 %v2756_v53  ;;  %3920 = vst [vmem:[#allocation21_spill] sm:$0xff] %v2774_v13  ;;  %v2780_v19 = vsub.f32 %v81_v40, %v130_v55  ;;  %v2782_v22 = vpack.c.bf16 %v132_v62, %v128_v61  ;;  %v2784_v23 = vsub.f32 %v78_v45, %v128_v61  ;;  %v144_v25 = vand.u32 4294901760, %v86_v10  ;;  %v93_v45 = vld [vmem:[#allocation6 + $0xf8] sm:$0xff] }
  0x47   :  { %v2786_v24 = vsub.f32 %v80_v46, %v132_v62  ;;  %v148_v26 = vand.u32 4294901760, %v88_v11  ;;  %v2789_v28 = vpack.c.bf16 %v138_v7, %v134_v6  ;;  %v2791_v29 = vsub.f32 %v83_v51, %v134_v6  ;;  %v2806_v46 = vld [vmem:[#allocation6 + $0xe0] sm:$0xff]  ;;  %v2821_v62 = vld [vmem:[#allocation6 + $0xf0] sm:$0xff] }
  0x48   :  { %3921 = vst [vmem:[#allocation22_spill] sm:$0xff] %v2782_v22  ;;  %v2793_v30 = vsub.f32 %v85_v56, %v138_v7  ;;  %v2795_v33 = vpack.c.bf16 %v140_v9, %v136_v8  ;;  %v2798_v34 = vsub.f32 %v82_v57, %v136_v8  ;;  %v2800_v39 = vsub.f32 %v84_v58, %v140_v9 }
  0x49   :  { %2159 = vmatpush1.bf16.msra.mxu0 %v2768_v5  ;;  %3922 = vst [vmem:[#allocation23_spill] sm:$0xff] %v2789_v28  ;;  %v2802_v40 = vpack.c.bf16 %v146_v15, %v142_v14  ;;  %v2804_v43 = vsub.f32 %v87_v63, %v142_v14  ;;  %v3769_v50 = vand.u32 4294901760, %v2729_v31  ;;  %v3768_v51 = vand.u32 4294901760, %v2734_v35 }
  0x4a   :  { %3923 = vst [vmem:[#allocation24_spill] sm:$0xff] %v2795_v33  ;;  %2161 = vmatprep.subr.bf16.mxu0 %v2774_v13  ;;  %v2810_v54 = vand.u32 4294901760, %v60_v27  ;;  %v3772_v55 = vand.u32 4294901760, %v2736_v36  ;;  %v2813_v56 = vsub.f32 %v89_v1, %v146_v15  ;;  %v2815_v57 = vpack.c.bf16 %v148_v26, %v144_v25 }
  0x4b   :  { %3924 = vst [vmem:[#allocation25_spill] sm:$0xff] %v2802_v40  ;;  %v2817_v58 = vsub.f32 %v86_v10, %v144_v25  ;;  %v2819_v61 = vsub.f32 %v88_v11, %v148_v26  ;;  %v150_v63 = vand.u32 4294901760, %v91_v44  ;;  %v154_v6 = vand.u32 4294901760, %v93_v45 }
  0x4c   :  { %3925 = vst [vmem:[#allocation26_spill] sm:$0xff] %v2815_v57  ;;  %v216_v7 = vsub.f32 %v2729_v31, %v3769_v50  ;;  %v228_v1 = vsub.f32 %v2734_v35, %v3768_v51  ;;  %v2833_v9 = vsub.f32 %v60_v27, %v2810_v54  ;;  %v3773_v10 = vand.u32 4294901760, %v2738_v37 }
  0x4d   :  { %3926 = vst [vmem:[#allocation27_spill] sm:$0xff] %v2819_v61  ;;  %2163 = vmatpush1.bf16.msra.mxu0 %v2782_v22  ;;  %v3774_v11 = vand.u32 4294901760, %v2742_v41  ;;  %v222_v15 = vsub.f32 %v2736_v36, %v3772_v55  ;;  %v3777_v25 = vand.u32 4294901760, %v2744_v42  ;;  %v3782_v26 = vand.u32 4294901760, %v2747_v47 }
  0x4e   :  { %2165 = vmatprep.subr.bf16.mxu0 %v2789_v28  ;;  %3927 = vst [vmem:[#allocation28_spill] sm:$0xff] %v2833_v9  ;;  %v217_v51 = vand.u32 4294901760, %v216_v7  ;;  %v229_v50 = vand.u32 4294901760, %v228_v1  ;;  %v234_v27 = vsub.f32 %v2738_v37, %v3773_v10  ;;  %v3787_v1 = vand.u32 4294901760, %v2749_v48 }
  0x4f   :  { %v240_v14 = vsub.f32 %v2742_v41, %v3774_v11  ;;  %v252_v55 = vsub.f32 %v2744_v42, %v3777_v25  ;;  %v246_v7 = vsub.f32 %v2747_v47, %v3782_v26  ;;  %v2859_v0 = vpack.c.bf16 %v154_v6, %v150_v63 }
  0x50   :  { %v2861_v10 = vsub.f32 %v91_v44, %v150_v63  ;;  %v2863_v8 = vsub.f32 %v93_v45, %v154_v6  ;;  %v3932_v25 = vand.u32 4294901760, %v2821_v62  ;;  %v223_v22 = vand.u32 4294901760, %v222_v15 }
  0x51   :  { %2167 = vmatpush1.bf16.msra.mxu0 %v2795_v33  ;;  %3928 = vst [vmem:[#allocation29_spill] sm:$0xff] %v2859_v0  ;;  %v3931_v33 = vand.u32 4294901760, %v2806_v46  ;;  %v258_v26 = vsub.f32 %v2749_v48, %v3787_v1  ;;  %v2176_v13 = vpack.c.bf16 %v229_v50, %v217_v51  ;;  %v3934_v44 = vand.u32 4294901760, %v2833_v9 }
  0x52   :  { %2169 = vmatprep.subr.bf16.mxu0 %v2802_v40  ;;  %3929 = vst [vmem:[#allocation30_spill] sm:$0xff] %v2861_v10  ;;  %3930 = vst [vmem:[#allocation31_spill] sm:$0xff] %v2863_v8  ;;  %v3790_v40 = vand.u32 4294901760, %v2758_v59  ;;  %v235_v63 = vand.u32 4294901760, %v234_v27  ;;  %v241_v11 = vand.u32 4294901760, %v240_v14  ;;  %v3795_v15 = vand.u32 4294901760, %v2762_v2 }
  0x53   :  { %v2870_v28 = vpack.c.bf16 %v3932_v25, %v3931_v33  ;;  %v194_v45 = vsub.f32 %v2833_v9, %v3934_v44  ;;  %v253_v33 = vand.u32 4294901760, %v252_v55  ;;  %v247_v25 = vand.u32 4294901760, %v246_v7 }
  0x54   :  { %v3935_v1 = vand.u32 4294901760, %v2754_v52  ;;  %v276_v51 = vsub.f32 %v2758_v59, %v3790_v40  ;;  %v3800_v27 = vand.u32 4294901760, %v2764_v3  ;;  %v3801_v44 = vand.u32 4294901760, %v2766_v4 }
  0x55   :  { %3933 = vst [vmem:[#allocation32_spill] sm:$0xff] %v2870_v28  ;;  %2171 = vmatpush1.bf16.msra.mxu0 %v2815_v57  ;;  %v259_v6 = vand.u32 4294901760, %v258_v26  ;;  %v3936_v55 = vand.u32 4294901760, %v2760_v60  ;;  %v282_v7 = vsub.f32 %v2762_v2, %v3795_v15  ;;  %v3815_v26 = vand.u32 4294901760, %v2776_v17 }
  0x56   :  { %2173 = vmatprep.subr.bf16.mxu0 %v2859_v0  ;;  %v264_v50 = vsub.f32 %v2754_v52, %v3935_v1  ;;  %v3808_v0 = vand.u32 4294901760, %v2772_v12  ;;  %v195_v1 = vand.u32 4294901760, %v194_v45  ;;  %v288_v40 = vsub.f32 %v2764_v3, %v3800_v27 }
  0x57   :  { %v270_v14 = vsub.f32 %v2760_v60, %v3936_v55  ;;  %v300_v57 = vsub.f32 %v2766_v4, %v3801_v44  ;;  %v2178_v55 = vpack.c.bf16 %v235_v63, %v223_v22  ;;  %v2180_v5 = vpack.c.bf16 %v253_v33, %v241_v11 }
  0x58   :  { %v294_v15 = vsub.f32 %v2772_v12, %v3808_v0  ;;  %v3813_v45 = vand.u32 4294901760, %v2778_v18  ;;  %v265_v53 = vand.u32 4294901760, %v264_v50  ;;  %v277_v49 = vand.u32 4294901760, %v276_v51 }
  0x59   :  { %2175 = vmatpush1.bf16.msra.mxu0 %v2870_v28  ;;  %v306_v27 = vsub.f32 %v2776_v17, %v3815_v26  ;;  %v3811_v44 = vand.u32 4294901760, %v2780_v19  ;;  %v2182_v38 = vpack.c.bf16 %v259_v6, %v247_v25  ;;  %v271_v32 = vand.u32 4294901760, %v270_v14 }
  0x5a   :  { %2177 = vmatprep.subr.bf16.mxu0 %v2176_v13  ;;  %v283_v28 = vand.u32 4294901760, %v282_v7  ;;  %v3810_v22 = vand.u32 4294901760, %v2784_v23  ;;  %v289_v11 = vand.u32 4294901760, %v288_v40  ;;  %v301_v63 = vand.u32 4294901760, %v300_v57 }
  0x5b   :  { %v295_v33 = vand.u32 4294901760, %v294_v15  ;;  %v3809_v0 = vand.u32 4294901760, %v2786_v24  ;;  %v307_v13 = vand.u32 4294901760, %v306_v27  ;;  %v312_v50 = vsub.f32 %v2778_v18, %v3813_v45 }
  0x5c   :  { %196 = vmatmul.mubr.f32.vlgmr.msra.gmra.mrb[0].mxu0 %v195_v1  ;;  %v3812_v51 = vand.u32 4294901760, %v2791_v29  ;;  %v3814_v6 = vand.u32 4294901760, %v2793_v30  ;;  %v3937_v25 = vmov 0.0   ;;  %v2184_v14 = vpack.c.bf16 %v277_v49, %v265_v53 }
  0x5d   :  { %2179 = vmatpush1.bf16.msra.mxu0 %v2178_v55  ;;  %201 = vmatprep.mubr.f32.mxu0 %v3937_v25  ;;  %v324_v40 = vsub.f32 %v2780_v19, %v3811_v44  ;;  %v318_v57 = vsub.f32 %v2784_v23, %v3810_v22  ;;  %v330_v15 = vsub.f32 %v2786_v24, %v3809_v0  ;;  %v3938_v27 = vand.u32 4294901760, %v2806_v46 }
  0x5e   :  { %2181 = vmatprep.subr.bf16.mxu0 %v2180_v5  ;;  %v336_v49 = vsub.f32 %v2791_v29, %v3812_v51  ;;  %v348_v53 = vsub.f32 %v2793_v30, %v3814_v6  ;;  %v3939_v1 = vand.u32 4294901760, %v2821_v62  ;;  %v2186_v0 = vpack.c.bf16 %v283_v28, %v271_v32 }
  0x5f   :  { %v2934_v7 = vsub.f32 %v2806_v46, %v3938_v27  ;;  %v3822_v22 = vand.u32 4294901760, %v2800_v39  ;;  %v3820_v46 = vand.u32 4294901760, %v2804_v43  ;;  %v2188_v27 = vpack.c.bf16 %v301_v63, %v289_v11 }
  0x60   :  { %v2946_v55 = vsub.f32 %v2821_v62, %v3939_v1  ;;  %v2190_v44 = vpack.c.bf16 %v307_v13, %v295_v33  ;;  %v313_v51 = vand.u32 4294901760, %v312_v50  ;;  %v3821_v45 = vand.u32 4294901760, %v2813_v56 }
  0x61   :  { %2183 = vmatpush1.bf16.msra.mxu0 %v2182_v38  ;;  %v325_v6 = vand.u32 4294901760, %v324_v40  ;;  %v319_v26 = vand.u32 4294901760, %v318_v57  ;;  %v331_v5 = vand.u32 4294901760, %v330_v15  ;;  %v3823_v21 = vand.u32 4294901760, %v2817_v58 }
  0x62   :  { %2185 = vmatprep.subr.bf16.mxu0 %v2184_v14  ;;  %v337_v62 = vand.u32 4294901760, %v336_v49  ;;  %v349_v1 = vand.u32 4294901760, %v348_v53  ;;  %v3940_v32 = vand.u32 4294901760, %v2798_v34  ;;  %v377_v38 = vand.u32 4294901760, %v2819_v61 }
  0x63   :  { %v354_v11 = vsub.f32 %v2800_v39, %v3822_v22  ;;  %v360_v63 = vsub.f32 %v2804_v43, %v3820_v46  ;;  %v383_v33 = vand.u32 4294901760, %v2861_v10  ;;  %v395_v13 = vand.u32 4294901760, %v2863_v8 }
  0x64   :  { %v342_v28 = vsub.f32 %v2798_v34, %v3940_v32  ;;  %v372_v50 = vsub.f32 %v2813_v56, %v3821_v45  ;;  %v366_v14 = vsub.f32 %v2817_v58, %v3823_v21  ;;  %v378_v40 = vsub.f32 %v2819_v61, %v377_v38 }
  0x65   :  { %2187 = vmatpush1.bf16.msra.mxu0 %v2186_v0  ;;  %v2971_v57 = vand.u32 4294901760, %v61_v20  ;;  %v2192_v15 = vpack.c.bf16 %v325_v6, %v313_v51  ;;  %v384_v49 = vsub.f32 %v2861_v10, %v383_v33  ;;  %v396_v53 = vsub.f32 %v2863_v8, %v395_v13 }
  0x66   :  { %2189 = vmatprep.subr.bf16.mxu0 %v2188_v27  ;;  %v389_v0 = vand.u32 4294901760, %v2934_v7  ;;  %v2194_v32 = vpack.c.bf16 %v331_v5, %v319_v26  ;;  %v401_v45 = vand.u32 4294901760, %v2946_v55  ;;  %v2196_v22 = vpack.c.bf16 %v349_v1, %v337_v62 }
  0x67   :  { %v2977_v46 = vsub.f32 %v61_v20, %v2971_v57  ;;  %v343_v21 = vand.u32 4294901760, %v342_v28  ;;  %v355_v9 = vand.u32 4294901760, %v354_v11  ;;  %v361_v16 = vand.u32 4294901760, %v360_v63 }
  0x68   :  { %v373_v61 = vand.u32 4294901760, %v372_v50  ;;  %v367_v27 = vand.u32 4294901760, %v366_v14  ;;  %v379_v51 = vand.u32 4294901760, %v378_v40  ;;  %v385_v8 = vand.u32 4294901760, %v384_v49 }
  0x69   :  { %2191 = vmatpush1.bf16.msra.mxu0 %v2190_v44  ;;  %v3831_v6 = vand.u32 4294901760, %v2977_v46  ;;  %v397_v10 = vand.u32 4294901760, %v396_v53  ;;  %v390_v26 = vsub.f32 %v2934_v7, %v389_v0  ;;  %v402_v20 = vsub.f32 %v2946_v55, %v401_v45 }
  0x6a   :  { %2193 = vmatprep.subr.bf16.mxu0 %v2192_v15  ;;  %v2198_v62 = vpack.c.bf16 %v355_v9, %v343_v21  ;;  %v2200_v1 = vpack.c.bf16 %v373_v61, %v361_v16  ;;  %v2202_v28 = vpack.c.bf16 %v379_v51, %v367_v27  ;;  %v3941_v14 = vand.u32 4294901760, %v2729_v31 }
  0x6b   :  { %v205_v5 = vsub.f32 %v2977_v46, %v3831_v6  ;;  %v2204_v11 = vpack.c.bf16 %v397_v10, %v385_v8  ;;  %v391_v63 = vand.u32 4294901760, %v390_v26  ;;  %v403_v50 = vand.u32 4294901760, %v402_v20 }
  0x6c   :  { %v3942_v40 = vand.u32 4294901760, %v2734_v35  ;;  %v3943_v49 = vand.u32 4294901760, %v2736_v36  ;;  %v3944_v53 = vand.u32 4294901760, %v2738_v37  ;;  %v3945_v16 = vand.u32 4294901760, %v2742_v41 }
  0x6d   :  { %2195 = vmatpush1.bf16.msra.mxu0 %v2194_v32  ;;  %v206_v44 = vand.u32 4294901760, %v205_v5  ;;  %v3946_v21 = vand.u32 4294901760, %v2744_v42  ;;  %v3947_v8 = vand.u32 4294901760, %v2747_v47  ;;  %v3948_v9 = vand.u32 4294901760, %v2749_v48 }
  0x6e   :  { %2197 = vmatprep.subr.bf16.mxu0 %v2196_v22  ;;  %v2990_v15 = vpack.c.bf16 %v3942_v40, %v3941_v14  ;;  %v2996_v32 = vpack.c.bf16 %v3944_v53, %v3943_v49  ;;  %v3949_v22 = vand.u32 4294901760, %v2754_v52  ;;  %v3950_v27 = vand.u32 4294901760, %v2758_v59 }
  0x6f   :  { %207 = vmatmul.mubr.f32.gmra.mrb[2].mxu0 %v206_v44  ;;  %v3002_v61 = vpack.c.bf16 %v3946_v21, %v3945_v16  ;;  %v3008_v10 = vpack.c.bf16 %v3948_v9, %v3947_v8  ;;  %v3951_v26 = vand.u32 4294901760, %v2760_v60  ;;  %v3952_v20 = vand.u32 4294901760, %v2762_v2 }
  0x70   :  { %437 = vmatprep.mubr.f32.mxu0 %v3937_v25  ;;  %v3015_v51 = vpack.c.bf16 %v3950_v27, %v3949_v22  ;;  %v3953_v44 = vand.u32 4294901760, %v2764_v3  ;;  %v3954_v14 = vand.u32 4294901760, %v2766_v4  ;;  %v3955_v49 = vand.u32 4294901760, %v2772_v12 }
  0x71   :  { %v3021_v5 = vpack.c.bf16 %v3952_v20, %v3951_v26  ;;  %v3956_v53 = vand.u32 4294901760, %v2776_v17  ;;  %2199 = vmatpush1.bf16.msra.mxu0 %v2198_v62  ;;  %v3957_v21 = vand.u32 4294901760, %v2778_v18  ;;  %v3958_v8 = vand.u32 4294901760, %v2780_v19 }
  0x72   :  { %v3027_v40 = vpack.c.bf16 %v3954_v14, %v3953_v44  ;;  %v3959_v22 = vand.u32 4294901760, %v2784_v23  ;;  %v3960_v27 = vand.u32 4294901760, %v2786_v24  ;;  %v3962_v20 = vand.u32 4294901760, %v2791_v29  ;;  %2201 = vmatprep.subr.bf16.mxu0 %v2200_v1 }
  0x73   :  { %v3033_v16 = vpack.c.bf16 %v3956_v53, %v3955_v49  ;;  %v3039_v9 = vpack.c.bf16 %v3958_v8, %v3957_v21  ;;  %v3963_v44 = vand.u32 4294901760, %v2793_v30  ;;  %v3964_v62 = vand.u32 4294901760, %v2798_v34 }
  0x74   :  { %v3045_v26 = vpack.c.bf16 %v3960_v27, %v3959_v22  ;;  %v3965_v49 = vand.u32 4294901760, %v2800_v39  ;;  %v3966_v21 = vand.u32 4294901760, %v2804_v43  ;;  %v3967_v8 = vand.u32 4294901760, %v2813_v56 }
  0x75   :  { %v3051_v14 = vpack.c.bf16 %v3963_v44, %v3962_v20  ;;  %v3968_v22 = vand.u32 4294901760, %v2817_v58  ;;  %v3071_v20 = vpack.c.bf16 %v401_v45, %v389_v0  ;;  %2203 = vmatpush1.bf16.msra.mxu0 %v2202_v28  ;;  %v2206_v44 = vpack.c.bf16 %v403_v50, %v391_v63 }
  0x76   :  { %3961 = vst [vmem:[#allocation33_spill] sm:$0xff] %v3045_v26  ;;  %v3057_v53 = vpack.c.bf16 %v3965_v49, %v3964_v62  ;;  %v3063_v6 = vpack.c.bf16 %v3967_v8, %v3966_v21  ;;  %v3069_v26 = vpack.c.bf16 %v395_v13, %v383_v33  ;;  %2205 = vmatprep.subr.bf16.mxu0 %v2204_v11  ;;  %v3987_v33 = vld [vmem:[#allocation29_spill] sm:$0xff]  ;;  %v3988_v13 = vld [vmem:[#allocation32_spill] sm:$0xff]  ;;  %v3990_v28 = vand.u32 4294901760, %v2977_v46 }
  0x77   :  { %v3067_v27 = vpack.c.bf16 %v377_v38, %v3968_v22  ;;  %v2208_v1 = vpack.c.bf16 %v2734_v35, %v2729_v31  ;;  %v2210_v62 = vpack.c.bf16 %v2738_v37, %v2736_v36  ;;  %v2212_v49 = vpack.c.bf16 %v2744_v42, %v2742_v41  ;;  %v3986_v38 = vld [vmem:[#allocation26_spill] sm:$0xff]  ;;  %v3224_v8 = vld [vmem:[#allocation8 + $0xa0] sm:$0xff]  ;;  %v3226_v22 = vld [vmem:[#allocation8 + $0xa8] sm:$0xff] }
  0x78   :  { %v2214_v45 = vpack.c.bf16 %v2749_v48, %v2747_v47  ;;  %v2216_v31 = vpack.c.bf16 %v2758_v59, %v2754_v52  ;;  %v2218_v35 = vpack.c.bf16 %v2762_v2, %v2760_v60  ;;  %v2220_v36 = vpack.c.bf16 %v2766_v4, %v2764_v3  ;;  %v3969_v59 = vld [vmem:[#allocation27_spill] sm:$0xff]  ;;  %v3970_v2 = vld [vmem:[#allocation30_spill] sm:$0xff] }
  0x79   :  { %2207 = vmatpush1.bf16.msra.mxu0 %v2206_v44  ;;  %v2222_v37 = vpack.c.bf16 %v2776_v17, %v2772_v12  ;;  %v2224_v41 = vpack.c.bf16 %v2780_v19, %v2778_v18  ;;  %v2226_v42 = vpack.c.bf16 %v2786_v24, %v2784_v23  ;;  %v2228_v47 = vpack.c.bf16 %v2793_v30, %v2791_v29  ;;  %v3971_v3 = vld [vmem:[#allocation31_spill] sm:$0xff]  ;;  %v3972_v17 = vld [vmem:[#allocation13_spill] sm:$0xff]  ;;  %v3973_v18 = vld [vmem:[#allocation28_spill] sm:$0xff] }
  0x7a   :  { %2209 = vmatprep.subr.bf16.mxu0 %v2208_v1  ;;  %v2230_v48 = vpack.c.bf16 %v2800_v39, %v2798_v34  ;;  %v2232_v52 = vpack.c.bf16 %v2813_v56, %v2804_v43  ;;  %v2234_v60 = vpack.c.bf16 %v3969_v59, %v2817_v58  ;;  %v2236_v4 = vpack.c.bf16 %v3971_v3, %v3970_v2  ;;  %v3974_v19 = vld [vmem:[#allocation14_spill] sm:$0xff]  ;;  %v3975_v23 = vld [vmem:[#allocation15_spill] sm:$0xff]  ;;  %v3976_v24 = vld [vmem:[#allocation16_spill] sm:$0xff] }
  0x7b   :  { %v2238_v12 = vpack.c.bf16 %v2946_v55, %v2934_v7  ;;  %v3977_v29 = vld [vmem:[#allocation17_spill] sm:$0xff]  ;;  %v3978_v30 = vld [vmem:[#allocation18_spill] sm:$0xff]  ;;  %v3979_v34 = vld [vmem:[#allocation19_spill] sm:$0xff]  ;;  %v3989_v0 = vand.u32 4294901760, %v3973_v18 }
  0x7c   :  { %439 = vmatmul.mubr.f32.vlgmr.msra.gmra.mrb[0].mxu0 %v2810_v54  ;;  %v3980_v39 = vld [vmem:[#allocation20_spill] sm:$0xff]  ;;  %v3981_v43 = vld [vmem:[#allocation21_spill] sm:$0xff]  ;;  %v3982_v56 = vld [vmem:[#allocation22_spill] sm:$0xff] }
  0x7d   :  { %2211 = vmatpush1.bf16.msra.mxu0 %v2210_v62  ;;  %444 = vmatprep.mubr.f32.mxu0 %v3937_v25  ;;  %v3983_v58 = vld [vmem:[#allocation23_spill] sm:$0xff]  ;;  %v3984_v7 = vld [vmem:[#allocation24_spill] sm:$0xff]  ;;  %v3985_v55 = vld [vmem:[#allocation25_spill] sm:$0xff] }
  0x7e   :  { %2213 = vmatprep.subr.bf16.mxu0 %v2212_v49  ;;  %v3991_v11 = vld [vmem:[#allocation33_spill] sm:$0xff]  ;;  %v3231_v44 = vld [vmem:[#allocation8 + $0x20] sm:$0xff] }
  0x7f   :  { %v3233_v1 = vld [vmem:[#allocation8 + $0x28] sm:$0xff]  ;;  %v3833_v62 = vand.u32 4294901760, %v3231_v44  ;;  %v1047_v2 = vld [vmem:[#allocation8 + $0xc0] sm:$0xff] }
  0x80   :  { %446 = vmatmul.mubr.f32.gmra.mrb[2].mxu0 %v2971_v57  ;;  %v3832_v49 = vand.u32 4294901760, %v3233_v1  ;;  %v1048_v3 = vld [vmem:[#allocation8 + $0xc8] sm:$0xff] }
  0x81   :  { %2215 = vmatpush1.bf16.msra.mxu0 %v2214_v45  ;;  %580 = vmatprep.mubr.f32.mxu0 %v3937_v25 }
  0x82   :  { %2217 = vmatprep.subr.bf16.mxu0 %v2216_v31  ;;  %v3248_v31 = vpack.c.bf16 %v3832_v49, %v3833_v62  ;;  %v1035_v49 = vld [vmem:[#allocation8 + $0x60] sm:$0xff]  ;;  %v1036_v62 = vld [vmem:[#allocation8 + $0x68] sm:$0xff] }
  0x84   :  { %3997 = vst [vmem:[#allocation14_spill] sm:$0xff] %v3248_v31 }
  0x85   :  { %2219 = vmatpush1.bf16.msra.mxu0 %v2218_v35  ;;  %v1045_v35 = vld [vmem:[#allocation8 + $0xb0] sm:$0xff] }
  0x86   :  { %2221 = vmatprep.subr.bf16.mxu0 %v2220_v36  ;;  %v1046_v36 = vld [vmem:[#allocation8 + $0xb8] sm:$0xff] }
  0x89   :  { %2223 = vmatpush1.bf16.msra.mxu0 %v2222_v37  ;;  %v1122_v37 = vand.u32 4294901760, %v1045_v35 }
  0x8a   :  { %2225 = vmatprep.subr.bf16.mxu0 %v2224_v41  ;;  %v1125_v41 = vand.u32 4294901760, %v1046_v36 }
  0x8c   :  { %v3252_v59 = vpack.c.bf16 %v1125_v41, %v1122_v37 }
  0x8d   :  { %2227 = vmatpush1.bf16.msra.mxu0 %v2226_v42  ;;  %v1029_v42 = vld [vmem:[#allocation8 + $0x30] sm:$0xff] }
  0x8e   :  { %2229 = vmatprep.subr.bf16.mxu0 %v2228_v47  ;;  %v1030_v47 = vld [vmem:[#allocation8 + $0x38] sm:$0xff]  ;;  %3998 = vst [vmem:[#allocation15_spill] sm:$0xff] %v3252_v59 }
  0x91   :  { %2231 = vmatpush1.bf16.msra.mxu0 %v2230_v48  ;;  %v1074_v48 = vand.u32 4294901760, %v1029_v42 }
  0x92   :  { %2233 = vmatprep.subr.bf16.mxu0 %v2232_v52  ;;  %v1077_v52 = vand.u32 4294901760, %v1030_v47 }
  0x95   :  { %2235 = vmatpush1.bf16.msra.mxu0 %v2234_v60  ;;  %v3254_v60 = vpack.c.bf16 %v1077_v52, %v1074_v48 }
  0x96   :  { %2237 = vmatprep.subr.bf16.mxu0 %v2236_v4  ;;  %v1128_v4 = vand.u32 4294901760, %v1047_v2 }
  0x97   :  { %3999 = vst [vmem:[#allocation16_spill] sm:$0xff] %v3254_v60 }
  0x99   :  { %2239 = vmatpush1.bf16.msra.mxu0 %v2238_v12  ;;  %v1131_v12 = vand.u32 4294901760, %v1048_v3 }
  0x9a   :  { %2241 = vmatprep.subr.bf16.mxu0 %v3972_v17 }
  0x9c   :  { %583 = vmatmul.mubr.f32.vlgmr.msra.gmra.mrb[0].mxu0 %v3973_v18  ;;  %v1032_v18 = vld [vmem:[#allocation8 + $0x48] sm:$0xff] }
  0x9d   :  { %2243 = vmatpush1.bf16.msra.mxu0 %v3974_v19  ;;  %588 = vmatprep.mubr.f32.mxu0 %v3937_v25 }
  0x9e   :  { %2245 = vmatprep.subr.bf16.mxu0 %v3975_v23 }
  0xa0   :  { %591 = vmatmul.mubr.f32.gmra.mrb[2].mxu0 %v2977_v46  ;;  %v3174_v46 = vld [vmem:[#allocation8 + $0x80] sm:$0xff] }
  0xa1   :  { %2247 = vmatpush1.bf16.msra.mxu0 %v3976_v24  ;;  %693 = vmatprep.mubr.f32.mxu0 %v3937_v25  ;;  %v1104_v63 = vand.u32 4294901760, %v3174_v46 }
  0xa2   :  { %2249 = vmatprep.subr.bf16.mxu0 %v3977_v29 }
  0xa5   :  { %2251 = vmatpush1.bf16.msra.mxu0 %v3978_v30 }
  0xa6   :  { %2253 = vmatprep.subr.bf16.mxu0 %v3979_v34 }
  0xa9   :  { %2255 = vmatpush1.bf16.msra.mxu0 %v3980_v39 }
  0xaa   :  { %2257 = vmatprep.subr.bf16.mxu0 %v3981_v43 }
  0xad   :  { %2259 = vmatpush1.bf16.msra.mxu0 %v3982_v56 }
  0xae   :  { %2261 = vmatprep.subr.bf16.mxu0 %v3983_v58 }
  0xb1   :  { %2263 = vmatpush1.bf16.msra.mxu0 %v3984_v7 }
  0xb2   :  { %2265 = vmatprep.subr.bf16.mxu0 %v3985_v55 }
  0xb5   :  { %2267 = vmatpush1.bf16.msra.mxu0 %v3986_v38 }
  0xb6   :  { %2269 = vmatprep.subr.bf16.mxu0 %v3987_v33 }
  0xb9   :  { %2271 = vmatpush1.bf16.msra.mxu0 %v3988_v13 }
  0xba   :  { %2273 = vmatprep.subr.bf16.mxu0 %v2990_v15  ;;  %v3180_v15 = vld [vmem:[#allocation8] sm:$0xff] }
  0xbc   :  { %697 = vmatmul.mubr.f32.vlgmr.msra.gmra.mrb[0].mxu0 %v3989_v0  ;;  %v1052_v0 = vld [vmem:[#allocation8 + $0xe8] sm:$0xff] }
  0xbd   :  { %2275 = vmatpush1.bf16.msra.mxu0 %v2996_v32  ;;  %702 = vmatprep.mubr.f32.mxu0 %v3937_v25  ;;  %v3182_v32 = vld [vmem:[#allocation8 + $0x8] sm:$0xff] }
  0xbe   :  { %2277 = vmatprep.subr.bf16.mxu0 %v3002_v61  ;;  %v1056_v61 = vand.u32 4294901760, %v3180_v15 }
  0xc0   :  { %706 = vmatmul.mubr.f32.gmra.mrb[2].mxu0 %v3990_v28 }
  0xc1   :  { %2279 = vmatpush1.bf16.msra.mxu0 %v3008_v10  ;;  %872 = vmatprep.mubr.f32.mxu0 %v3937_v25  ;;  %v3198_v10 = vld [vmem:[#allocation8 + $0x90] sm:$0xff] }
  0xc2   :  { %2281 = vmatprep.subr.bf16.mxu0 %v3015_v51  ;;  %v3200_v51 = vld [vmem:[#allocation8 + $0x98] sm:$0xff] }
  0xc5   :  { %2283 = vmatpush1.bf16.msra.mxu0 %v3021_v5  ;;  %v3839_v5 = vand.u32 4294901760, %v3198_v10 }
  0xc6   :  { %2285 = vmatprep.subr.bf16.mxu0 %v3027_v40  ;;  %v3838_v40 = vand.u32 4294901760, %v3200_v51 }
  0xc9   :  { %2287 = vmatpush1.bf16.msra.mxu0 %v3033_v16  ;;  %v3205_v16 = vld [vmem:[#allocation8 + $0x10] sm:$0xff] }
  0xca   :  { %2289 = vmatprep.subr.bf16.mxu0 %v3039_v9  ;;  %v3207_v9 = vld [vmem:[#allocation8 + $0x18] sm:$0xff] }
  0xcd   :  { %2291 = vmatpush1.bf16.msra.mxu0 %v3991_v11  ;;  %v1143_v11 = vand.u32 4294901760, %v1052_v0 }
  0xce   :  { %2293 = vmatprep.subr.bf16.mxu0 %v3051_v14  ;;  %v3836_v14 = vand.u32 4294901760, %v3207_v9 }
  0xd1   :  { %2295 = vmatpush1.bf16.msra.mxu0 %v3057_v53  ;;  %v3216_v53 = vpack.c.bf16 %v3838_v40, %v3839_v5  ;;  %v3285_v5 = vsub.f32 %v3180_v15, %v1056_v61  ;;  %v4008_v15 = vand.u32 4294901760, %v3205_v16 }
  0xd2   :  { %2297 = vmatprep.subr.bf16.mxu0 %v3063_v6  ;;  %v3176_v6 = vld [vmem:[#allocation8 + $0x88] sm:$0xff] }
  0xd3   :  { %v1107_v50 = vand.u32 4294901760, %v3176_v6  ;;  %3994 = vst [vmem:[#allocation31_spill] sm:$0xff] %v3216_v53 }
  0xd5   :  { %2299 = vmatpush1.bf16.msra.mxu0 %v3067_v27  ;;  %v3835_v27 = vand.u32 4294901760, %v3224_v8  ;;  %v3280_v40 = vsub.f32 %v3176_v6, %v1107_v50  ;;  %v4007_v6 = vand.u32 4294901760, %v3200_v51 }
  0xd6   :  { %2301 = vmatprep.subr.bf16.mxu0 %v3069_v26  ;;  %v3837_v26 = vand.u32 4294901760, %v3205_v16 }
  0xd8   :  { %v3222_v21 = vpack.c.bf16 %v3836_v14, %v3837_v26  ;;  %v3273_v14 = vsub.f32 %v3174_v46, %v1104_v63  ;;  %v4006_v46 = vand.u32 4294901760, %v3198_v10 }
  0xd9   :  { %2303 = vmatpush1.bf16.msra.mxu0 %v3071_v20  ;;  %v3834_v20 = vand.u32 4294901760, %v3226_v22 }
  0xda   :  { %2305 = vmatprep.subr.bf16.mxu0 %v3972_v17  ;;  %3995 = vst [vmem:[#allocation13_spill] sm:$0xff] %v3222_v21  ;;  %v1031_v17 = vld [vmem:[#allocation8 + $0x40] sm:$0xff] }
  0xdb   :  { %v3242_v45 = vpack.c.bf16 %v3834_v20, %v3835_v27  ;;  %v1092_v20 = vand.u32 4294901760, %v1035_v49  ;;  %v1095_v27 = vand.u32 4294901760, %v1036_v62 }
  0xdc   :  { %874 = vmatmul.mubr.f32.vlgmr.msra.gmra.mrb[0].mxu0 %v2810_v54 }
  0xdd   :  { %2307 = vmatpush1.bf16.msra.mxu0 %v3974_v19  ;;  %879 = vmatprep.mubr.f32.mxu0 %v3937_v25  ;;  %3996 = vst [vmem:[#allocation28_spill] sm:$0xff] %v3242_v45  ;;  %v1080_v19 = vand.u32 4294901760, %v1031_v17 }
  0xde   :  { %2309 = vmatprep.subr.bf16.mxu0 %v3975_v23  ;;  %v1083_v23 = vand.u32 4294901760, %v1032_v18 }
  0xe0   :  { %881 = vmatmul.mubr.f32.gmra.mrb[2].mxu0 %v2971_v57 }
  0xe1   :  { %2311 = vmatpush1.bf16.msra.mxu0 %v3976_v24  ;;  %983 = vmatprep.mubr.f32.mxu0 %v3937_v25  ;;  %v3258_v24 = vpack.c.bf16 %v1131_v12, %v1128_v4 }
  0xe2   :  { %2313 = vmatprep.subr.bf16.mxu0 %v3977_v29  ;;  %v3260_v29 = vpack.c.bf16 %v1083_v23, %v1080_v19 }
  0xe3   :  { %4000 = vst [vmem:[#allocation17_spill] sm:$0xff] %v3258_v24 }
  0xe4   :  { %4001 = vst [vmem:[#allocation18_spill] sm:$0xff] %v3260_v29 }
  0xe5   :  { %2315 = vmatpush1.bf16.msra.mxu0 %v3978_v30  ;;  %v1049_v30 = vld [vmem:[#allocation8 + $0xd0] sm:$0xff] }
  0xe6   :  { %2317 = vmatprep.subr.bf16.mxu0 %v3979_v34  ;;  %v1050_v34 = vld [vmem:[#allocation8 + $0xd8] sm:$0xff] }
  0xe9   :  { %2319 = vmatpush1.bf16.msra.mxu0 %v3980_v39  ;;  %v1134_v39 = vand.u32 4294901760, %v1049_v30 }
  0xea   :  { %2321 = vmatprep.subr.bf16.mxu0 %v3981_v43  ;;  %v1137_v43 = vand.u32 4294901760, %v1050_v34 }
  0xed   :  { %2323 = vmatpush1.bf16.msra.mxu0 %v3982_v56  ;;  %v1033_v56 = vld [vmem:[#allocation8 + $0x50] sm:$0xff] }
  0xee   :  { %2325 = vmatprep.subr.bf16.mxu0 %v3983_v58  ;;  %v1034_v58 = vld [vmem:[#allocation8 + $0x58] sm:$0xff] }
  0xf1   :  { %2327 = vmatpush1.bf16.msra.mxu0 %v3984_v7  ;;  %v1086_v7 = vand.u32 4294901760, %v1033_v56 }
  0xf2   :  { %2329 = vmatprep.subr.bf16.mxu0 %v3985_v55  ;;  %v1089_v55 = vand.u32 4294901760, %v1034_v58 }
  0xf5   :  { %2331 = vmatpush1.bf16.msra.mxu0 %v3986_v38  ;;  %v3264_v38 = vpack.c.bf16 %v1137_v43, %v1134_v39 }
  0xf6   :  { %2333 = vmatprep.subr.bf16.mxu0 %v3987_v33  ;;  %v3266_v33 = vpack.c.bf16 %v1089_v55, %v1086_v7 }
  0xf7   :  { %4002 = vst [vmem:[#allocation19_spill] sm:$0xff] %v3264_v38 }
  0xf8   :  { %4003 = vst [vmem:[#allocation20_spill] sm:$0xff] %v3266_v33 }
  0xf9   :  { %2335 = vmatpush1.bf16.msra.mxu0 %v3988_v13  ;;  %v1051_v13 = vld [vmem:[#allocation8 + $0xe0] sm:$0xff] }
  0xfa   :  { %v1140_v28 = vand.u32 4294901760, %v1051_v13 }
  0xfc   :  { %985 = vmatmul.mubr.f32.vlgmr.msra.gmra.mrb[0].mxu0 %v2810_v54  ;;  %v1059_v54 = vand.u32 4294901760, %v3182_v32  ;;  %v3275_v26 = vpack.c.bf16 %v1143_v11, %v1140_v28 }
  0xfd   :  { %990 = vmatprep.mubr.f32.mxu0 %v3937_v25  ;;  %v3190_v25 = vpack.c.bf16 %v1107_v50, %v1104_v63  ;;  %v3297_v63 = vsub.f32 %v3198_v10, %v4006_v46  ;;  %v3302_v50 = vsub.f32 %v3200_v51, %v4007_v6  ;;  %v4010_v10 = vand.u32 4294901760, %v3224_v8 }
  0xfe   :  { %4004 = vst [vmem:[#allocation21_spill] sm:$0xff] %v3275_v26  ;;  %v4011_v51 = vand.u32 4294901760, %v3226_v22 }
  0xff   :  { %3992 = vst [vmem:[#allocation27_spill] sm:$0xff] %v3190_v25  ;;  %2337 = vmatprep.subr.bf16.mxu1 %v3190_v25  ;;  %v3318_v46 = vsub.f32 %v3224_v8, %v4010_v10  ;;  %v3338_v8 = vsub.f32 %v1046_v36, %v1125_v41  ;;  %v3340_v10 = vsub.f32 %v1029_v42, %v1074_v48 }
 0x100   :  { %992 = vmatmul.mubr.f32.gmra.mrb[2].mxu0 %v2971_v57  ;;  %v3196_v57 = vpack.c.bf16 %v1059_v54, %v1056_v61  ;;  %v3307_v61 = vsub.f32 %v3205_v16, %v4008_v15  ;;  %v3323_v6 = vsub.f32 %v3226_v22, %v4011_v51  ;;  %v4012_v16 = vand.u32 4294901760, %v3231_v44  ;;  %v1053_v51 = vld [vmem:[#allocation8 + $0xf0] sm:$0xff] }
 0x101   :  { %v3342_v22 = vsub.f32 %v1030_v47, %v1077_v52  ;;  %v3354_v36 = vsub.f32 %v1050_v34, %v1137_v43  ;;  %v3358_v41 = vsub.f32 %v1034_v58, %v1089_v55  ;;  %v3360_v42 = vsub.f32 %v1051_v13, %v1140_v28 }
 0x102   :  { %3993 = vst [vmem:[#allocation30_spill] sm:$0xff] %v3196_v57  ;;  %2339 = vmatpush3.bf16.msra.mxu1 %v3196_v57  ;;  %v3328_v15 = vsub.f32 %v3231_v44, %v4012_v16  ;;  %v3346_v44 = vsub.f32 %v1048_v3, %v1131_v12  ;;  %v3348_v16 = vsub.f32 %v1031_v17, %v1080_v19  ;;  %v3869_v17 = vand.u32 4294901760, %v3273_v14 }
 0x103   :  { %2341 = vmatprep.subr.bf16.mxu1 %v3216_v53  ;;  %v3362_v47 = vsub.f32 %v1052_v0, %v1143_v11  ;;  %v3364_v48 = vsub.f32 %v1035_v49, %v1092_v20  ;;  %v3366_v52 = vsub.f32 %v1036_v62, %v1095_v27  ;;  %v3863_v19 = vand.u32 4294901760, %v3285_v5 }
 0x104   :  { %v3853_v55 = vand.u32 4294901760, %v3302_v50  ;;  %v3854_v0 = vand.u32 4294901760, %v3307_v61 }
 0x106   :  { %2343 = vmatpush3.bf16.msra.mxu1 %v3222_v21 }
 0x107   :  { %2345 = vmatprep.subr.bf16.mxu1 %v3242_v45 }
 0x10a   :  { %2347 = vmatpush3.bf16.msra.mxu1 %v3248_v31 }
 0x10b   :  { %2349 = vmatprep.subr.bf16.mxu1 %v3252_v59 }
 0x10e   :  { %2351 = vmatpush3.bf16.msra.mxu1 %v3254_v60 }
 0x10f   :  { %2353 = vmatprep.subr.bf16.mxu1 %v3258_v24  ;;  %v3350_v24 = vsub.f32 %v1032_v18, %v1083_v23  ;;  %v3864_v18 = vand.u32 4294901760, %v3280_v40 }
 0x111   :  { %v1290_v43 = vsub.f32 %v3280_v40, %v3864_v18 }
 0x112   :  { %2355 = vmatpush3.bf16.msra.mxu1 %v3260_v29  ;;  %v3344_v29 = vsub.f32 %v1047_v2, %v1128_v4  ;;  %v1146_v2 = vand.u32 4294901760, %v1053_v51 }
 0x113   :  { %2357 = vmatprep.subr.bf16.mxu1 %v3264_v38  ;;  %v3292_v38 = vpack.c.bf16 %v1095_v27, %v1092_v20  ;;  %v1291_v13 = vand.u32 4294901760, %v1290_v43 }
 0x114   :  { %v3374_v34 = vsub.f32 %v1053_v51, %v1146_v2 }
 0x115   :  { %4005 = vst [vmem:[#allocation22_spill] sm:$0xff] %v3292_v38 }
 0x116   :  { %2359 = vmatpush3.bf16.msra.mxu1 %v3266_v33  ;;  %v3290_v33 = vsub.f32 %v3182_v32, %v1059_v54  ;;  %v4009_v32 = vand.u32 4294901760, %v3207_v9  ;;  %4015 = vst [vmem:[#allocation24_spill] sm:$0xff] %v3374_v34 }
 0x117   :  { %2361 = vmatprep.subr.bf16.mxu1 %v3275_v26  ;;  %v3336_v26 = vsub.f32 %v1045_v35, %v1122_v37  ;;  %v3352_v35 = vsub.f32 %v1049_v30, %v1134_v39  ;;  %v3356_v37 = vsub.f32 %v1033_v56, %v1086_v7  ;;  %v1283_v39 = vsub.f32 %v3273_v14, %v3869_v17 }
 0x118   :  { %v3312_v54 = vsub.f32 %v3207_v9, %v4009_v32  ;;  %v4013_v9 = vand.u32 4294901760, %v3233_v1  ;;  %v3859_v23 = vand.u32 4294901760, %v3290_v33  ;;  %v1171_v56 = vsub.f32 %v3285_v5, %v3863_v19 }
 0x119   :  { %v3852_v7 = vand.u32 4294901760, %v3297_v63  ;;  %v3868_v19 = vand.u32 4294901760, %v3346_v44 }
 0x11a   :  { %v3333_v32 = vsub.f32 %v3233_v1, %v4013_v9  ;;  %2363 = vmatpush3.bf16.msra.mxu1 %v3292_v38  ;;  %v1054_v1 = vld [vmem:[#allocation8 + $0xf8] sm:$0xff]  ;;  %v1037_v9 = vld [vmem:[#allocation8 + $0x70] sm:$0xff]  ;;  %v1178_v58 = vsub.f32 %v3290_v33, %v3859_v23  ;;  %v3858_v28 = vand.u32 4294901760, %v3312_v54  ;;  %v1172_v11 = vand.u32 4294901760, %v1171_v56 }
 0x11b   :  { %v1038_v38 = vld [vmem:[#allocation8 + $0x78] sm:$0xff]  ;;  %v1149_v3 = vand.u32 4294901760, %v1054_v1  ;;  %v1098_v4 = vand.u32 4294901760, %v1037_v9 }
 0x11c   :  { %v1101_v12 = vand.u32 4294901760, %v1038_v38  ;;  %v1179_v51 = vand.u32 4294901760, %v1178_v58  ;;  %v3856_v58 = vand.u32 4294901760, %v3323_v6 }
 0x11d   :  { %v3372_v30 = vpack.c.bf16 %v1149_v3, %v1146_v2  ;;  %v3376_v20 = vsub.f32 %v1054_v1, %v1149_v3  ;;  %v3380_v62 = vsub.f32 %v1037_v9, %v1098_v4  ;;  %v1297_v1 = vsub.f32 %v3297_v63, %v3852_v7 }
 0x11e   :  { %v3378_v27 = vpack.c.bf16 %v1101_v12, %v1098_v4  ;;  %v3382_v49 = vsub.f32 %v1038_v38, %v1101_v12  ;;  %v1284_v38 = vand.u32 4294901760, %v1283_v39  ;;  %v1304_v9 = vsub.f32 %v3302_v50, %v3853_v55 }
 0x11f   :  { %4014 = vst [vmem:[#allocation23_spill] sm:$0xff] %v3372_v30  ;;  %4016 = vst [vmem:[#allocation25_spill] sm:$0xff] %v3376_v20  ;;  %2365 = vmatprep.subr.bf16.mxu1 %v3372_v30  ;;  %v1185_v3 = vsub.f32 %v3307_v61, %v3854_v0  ;;  %v1192_v4 = vsub.f32 %v3312_v54, %v3858_v28  ;;  %v3855_v12 = vand.u32 4294901760, %v3318_v46  ;;  %v1298_v43 = vand.u32 4294901760, %v1297_v1 }
 0x120   :  { %4017 = vst [vmem:[#allocation26_spill] sm:$0xff] %v3378_v27  ;;  %4018 = vst [vmem:[#allocation29_spill] sm:$0xff] %v3380_v62  ;;  %2367 = vmatpush3.bf16.msra.mxu1 %v3378_v27  ;;  %v2368_v2 = vpack.c.bf16 %v1291_v13, %v1284_v38  ;;  %v3415_v39 = vpack.c.bf16 %v1179_v51, %v1172_v11  ;;  %v1305_v56 = vand.u32 4294901760, %v1304_v9  ;;  %v3857_v13 = vand.u32 4294901760, %v3328_v15 }
 0x121   :  { %4019 = vst [vmem:[#allocation32_spill] sm:$0xff] %v3382_v49  ;;  %v1186_v7 = vand.u32 4294901760, %v1185_v3  ;;  %v1193_v55 = vand.u32 4294901760, %v1192_v4  ;;  %v1311_v38 = vsub.f32 %v3318_v46, %v3855_v12  ;;  %v1318_v11 = vsub.f32 %v3323_v6, %v3856_v58 }
 0x122   :  { %2369 = vmatprep.subr.bf16.mxu1 %v2368_v2  ;;  %v3422_v0 = vpack.c.bf16 %v1305_v56, %v1298_v43  ;;  %v3860_v51 = vand.u32 4294901760, %v3333_v32  ;;  %v3861_v1 = vand.u32 4294901760, %v3336_v26  ;;  %v1199_v3 = vsub.f32 %v3328_v15, %v3857_v13 }
 0x123   :  { %v3429_v9 = vpack.c.bf16 %v1193_v55, %v1186_v7  ;;  %v1312_v2 = vand.u32 4294901760, %v1311_v38  ;;  %v3862_v4 = vand.u32 4294901760, %v3338_v8  ;;  %v1319_v12 = vand.u32 4294901760, %v1318_v11 }
 0x124   :  { %v1206_v43 = vsub.f32 %v3333_v32, %v3860_v51  ;;  %v1325_v56 = vsub.f32 %v3336_v26, %v3861_v1  ;;  %v3865_v58 = vand.u32 4294901760, %v3340_v10  ;;  %v1200_v7 = vand.u32 4294901760, %v1199_v3 }
 0x125   :  { %v1332_v55 = vsub.f32 %v3338_v8, %v3862_v4  ;;  %v3866_v38 = vand.u32 4294901760, %v3342_v22  ;;  %v3867_v13 = vand.u32 4294901760, %v3344_v29  ;;  %v3447_v11 = vpack.c.bf16 %v1319_v12, %v1312_v2 }
 0x126   :  { %v1207_v28 = vand.u32 4294901760, %v1206_v43  ;;  %v1326_v23 = vand.u32 4294901760, %v1325_v56  ;;  %v1213_v51 = vsub.f32 %v3340_v10, %v3865_v58  ;;  %v3870_v2 = vand.u32 4294901760, %v3348_v16 }
 0x127   :  { %v1333_v1 = vand.u32 4294901760, %v1332_v55  ;;  %v1220_v3 = vsub.f32 %v3342_v22, %v3866_v38  ;;  %v1339_v4 = vsub.f32 %v3344_v29, %v3867_v13  ;;  %v3871_v43 = vand.u32 4294901760, %v3350_v24 }
 0x128   :  { %v3459_v18 = vpack.c.bf16 %v1207_v28, %v1200_v7  ;;  %v1214_v12 = vand.u32 4294901760, %v1213_v51  ;;  %v1346_v38 = vsub.f32 %v3346_v44, %v3868_v19  ;;  %v1227_v13 = vsub.f32 %v3348_v16, %v3870_v2 }
 0x129   :  { %v3463_v56 = vpack.c.bf16 %v1333_v1, %v1326_v23  ;;  %v1221_v55 = vand.u32 4294901760, %v1220_v3  ;;  %v1340_v58 = vand.u32 4294901760, %v1339_v4  ;;  %v1234_v28 = vsub.f32 %v3350_v24, %v3871_v43 }
 0x12a   :  { %v3874_v51 = vand.u32 4294901760, %v3352_v35  ;;  %v3879_v7 = vand.u32 4294901760, %v3354_v36  ;;  %v1347_v1 = vand.u32 4294901760, %v1346_v38  ;;  %v3880_v4 = vand.u32 4294901760, %v3356_v37 }
 0x12b   :  { %v3476_v23 = vpack.c.bf16 %v1221_v55, %v1214_v12  ;;  %v3881_v3 = vand.u32 4294901760, %v3358_v41  ;;  %v1228_v19 = vand.u32 4294901760, %v1227_v13  ;;  %v1235_v17 = vand.u32 4294901760, %v1234_v28 }
 0x12c   :  { %v1353_v2 = vsub.f32 %v3352_v35, %v3874_v51  ;;  %v1360_v43 = vsub.f32 %v3354_v36, %v3879_v7  ;;  %v3486_v27 = vpack.c.bf16 %v1347_v1, %v1340_v58  ;;  %v1241_v38 = vsub.f32 %v3356_v37, %v3880_v4 }
 0x12d   :  { %v1248_v12 = vsub.f32 %v3358_v41, %v3881_v3  ;;  %v3882_v13 = vand.u32 4294901760, %v3360_v42  ;;  %v3495_v55 = vpack.c.bf16 %v1235_v17, %v1228_v19  ;;  %v3883_v30 = vand.u32 4294901760, %v3362_v47 }
 0x12e   :  { %v1354_v28 = vand.u32 4294901760, %v1353_v2  ;;  %v1361_v51 = vand.u32 4294901760, %v1360_v43  ;;  %v1242_v60 = vand.u32 4294901760, %v1241_v38  ;;  %v3884_v1 = vand.u32 4294901760, %v3364_v48 }
 0x12f   :  { %v1249_v7 = vand.u32 4294901760, %v1248_v12  ;;  %v1367_v58 = vsub.f32 %v3360_v42, %v3882_v13  ;;  %v1374_v3 = vsub.f32 %v3362_v47, %v3883_v30  ;;  %v3887_v17 = vand.u32 4294901760, %v3366_v52 }
 0x130   :  { %v3502_v4 = vpack.c.bf16 %v1361_v51, %v1354_v28  ;;  %v3890_v19 = vand.u32 4294901760, %v3374_v34  ;;  %v1255_v38 = vsub.f32 %v3364_v48, %v3884_v1  ;;  %v3895_v12 = vand.u32 4294901760, %v3376_v20 }
 0x131   :  { %v3509_v2 = vpack.c.bf16 %v1249_v7, %v1242_v60  ;;  %v1368_v43 = vand.u32 4294901760, %v1367_v58  ;;  %v1375_v13 = vand.u32 4294901760, %v1374_v3  ;;  %v1262_v51 = vsub.f32 %v3366_v52, %v3887_v17 }
 0x132   :  { %v1381_v28 = vsub.f32 %v3374_v34, %v3890_v19  ;;  %v3899_v30 = vand.u32 4294901760, %v3380_v62  ;;  %v1256_v60 = vand.u32 4294901760, %v1255_v38  ;;  %v1388_v7 = vsub.f32 %v3376_v20, %v3895_v12 }
 0x133   :  { %v3898_v58 = vand.u32 4294901760, %v3382_v49  ;;  %v3526_v1 = vpack.c.bf16 %v1375_v13, %v1368_v43  ;;  %v1263_v3 = vand.u32 4294901760, %v1262_v51 }
 0x134   :  { %v1382_v59 = vand.u32 4294901760, %v1381_v28  ;;  %v1269_v17 = vsub.f32 %v3380_v62, %v3899_v30  ;;  %v1389_v31 = vand.u32 4294901760, %v1388_v7 }
 0x135   :  { %v1276_v19 = vsub.f32 %v3382_v49, %v3898_v58  ;;  %v3534_v38 = vpack.c.bf16 %v1263_v3, %v1256_v60 }
 0x136   :  { %v1270_v45 = vand.u32 4294901760, %v1269_v17  ;;  %v3536_v21 = vpack.c.bf16 %v1389_v31, %v1382_v59 }
 0x137   :  { %v1277_v12 = vand.u32 4294901760, %v1276_v19 }
 0x139   :  { %v3538_v53 = vpack.c.bf16 %v1277_v12, %v1270_v45 }
 0x1cf   :  { %v986_v59 = vpop.f32.mrb[0].mxu0 }
 0x1d0   :  { %v988_v12 = vpop.f32.mrb[1].mxu0 }
 0x1d3   :  { %v993_v45 = vpop.f32.mrb[2].mxu0 }
 0x1d4   :  { %v998_v31 = vmul.f32 %v993_v45, %v986_v59  ;;  %v1001_v60 = vmul.f32 %v993_v45, %v988_v12  ;;  %v995_v17 = vpop.f32.mrb[3].mxu0 }
 0x1d5   :  { %v999_v28 = vmul.f32 %v995_v17, %v988_v12  ;;  %v1002_v7 = vmul.f32 %v995_v17, %v986_v59 }
 0x1d7   :  { %v1000_v51 = vadd.f32 %v999_v28, %v998_v31  ;;  %v1003_v43 = vsub.f32 %v1001_v60, %v1002_v7  ;;  %v4041_v60 = vld [vmem:[#allocation30_spill] sm:$0xff]  ;;  %v4042_v7 = vld [vmem:[#allocation31_spill] sm:$0xff] }
 0x1d9   :  { %v1004_v3 = vmul.f32 %v1000_v51, %v1000_v51  ;;  %v1005_v13 = vmul.f32 %v1003_v43, %v1003_v43 }
 0x1db   :  { %v1006_v57 = vadd.f32 %v1005_v13, %v1004_v3  ;;  %v4043_v3 = vld [vmem:[#allocation13_spill] sm:$0xff] }
 0x1dd   :  { %2557 = vrsqrt.f32 %v1006_v57  ;;  %vm1009_vm0 = vcmp.eq.f32.partialorder %v1006_v57, inf  ;;  %v1012_v30 = vand.u32 2147483648, %v1006_v57  ;;  %vm1011_vm1 = vcmp.eq.f32.partialorder %v1006_v57, 0.0 }
 0x1e7   :  { %v2558_v58 = vpop.eup %2557 }
 0x1e8   :  { %v1008_v25 = vmul.f32 %v2558_v58, %v1006_v57 }
 0x1ea   :  { %v1010_v34 = vsel %vm1009_vm0, %v1006_v57, %v1008_v25 }
 0x1eb   :  { %v1013_v19 = vsel %vm1011_vm1, %v1012_v30, %v1010_v34 }
 0x1ec   :  { %v1014_v62 = vadd.f32 0.001, %v1013_v19  ;;  %v4040_v19 = vld [vmem:[#allocation27_spill] sm:$0xff] }
 0x1ee   :  { %v1015_v49 = vmax.f32 %v1014_v62, 1e-30 }
 0x1f0   :  { %2559 = vrcp.f32 %v1015_v49  ;;  %v4025_v49 = vpack.c.bf16 %v3333_v32, %v3328_v15 }
 0x1fa   :  { %v2560_v45 = vpop.eup %2559 }
 0x1fb   :  { %v1017_v20 = vmul.f32 %v2560_v45, %v1000_v51  ;;  %v1019_v12 = vmul.f32 %v2560_v45, %v1003_v43  ;;  %v4037_v43 = vld [vmem:[#allocation32_spill] sm:$0xff]  ;;  %v4038_v51 = vld [vmem:[#allocation29_spill] sm:$0xff] }
 0x1fc   :  { %v4039_v59 = vpack.c.bf16 %v4037_v43, %v4038_v51  ;;  %v4044_v45 = vld [vmem:[#allocation28_spill] sm:$0xff] }
 0x1fd   :  { %v3572_v17 = vand.u32 4294901760, %v1019_v12  ;;  %v3574_v28 = vand.u32 4294901760, %v1017_v20 }
 0x1ff   :  { %v3577_v13 = vsub.f32 %v1017_v20, %v3574_v28  ;;  %v1152_v58 = vsub.f32 %v1019_v12, %v3572_v17  ;;  %v4021_v20 = vpack.c.bf16 %v3290_v33, %v3285_v5  ;;  %v4045_v12 = vld [vmem:[#allocation14_spill] sm:$0xff] }
 0x201   :  { %v1153_v31 = vand.u32 4294901760, %v1152_v58  ;;  %v1159_v25 = vand.u32 4294901760, %v3577_v13 }
 0x203   :  { %v1154_v57 = vsub.f32 %v1152_v58, %v1153_v31  ;;  %v1160_v30 = vsub.f32 %v3577_v13, %v1159_v25 }
 0x205   :  { %v1155_v34 = vand.u32 4294901760, %v1154_v57  ;;  %v1161_v62 = vand.u32 4294901760, %v1160_v30  ;;  %v4047_v57 = vld [vmem:[#allocation16_spill] sm:$0xff]  ;;  %v4048_v30 = vld [vmem:[#allocation17_spill] sm:$0xff] }
 0x207   :  { %1156 = vmatprep.mubr.f32.mxu1 %v1155_v34  ;;  %v4049_v34 = vld [vmem:[#allocation18_spill] sm:$0xff] }
 0x208   :  { %1162 = vmatmul.mubr.f32.vlgmr.msra.gmra.mrb[0].mxu1 %v1161_v62  ;;  %v4050_v62 = vld [vmem:[#allocation19_spill] sm:$0xff] }
 0x209   :  { %2371 = vmatpush3.bf16.msra.mxu1 %v3415_v39  ;;  %1392 = vmatprep.mubr.f32.mxu1 %v3572_v17  ;;  %v4027_v39 = vpack.c.bf16 %v3342_v22, %v3340_v10 }
 0x20a   :  { %2373 = vmatprep.subr.bf16.mxu1 %v3422_v0  ;;  %v4026_v0 = vpack.c.bf16 %v3338_v8, %v3336_v26 }
 0x20d   :  { %2375 = vmatpush3.bf16.msra.mxu1 %v3429_v9  ;;  %v4028_v9 = vpack.c.bf16 %v3346_v44, %v3344_v29 }
 0x20e   :  { %2377 = vmatprep.subr.bf16.mxu1 %v3447_v11  ;;  %v4029_v11 = vpack.c.bf16 %v3350_v24, %v3348_v16 }
 0x211   :  { %2379 = vmatpush3.bf16.msra.mxu1 %v3459_v18  ;;  %v4020_v18 = vpack.c.bf16 %v3280_v40, %v3273_v14 }
 0x212   :  { %2381 = vmatprep.subr.bf16.mxu1 %v3463_v56  ;;  %v4030_v56 = vpack.c.bf16 %v3354_v36, %v3352_v35 }
 0x215   :  { %2383 = vmatpush3.bf16.msra.mxu1 %v3476_v23  ;;  %v4031_v23 = vpack.c.bf16 %v3358_v41, %v3356_v37 }
 0x216   :  { %2385 = vmatprep.subr.bf16.mxu1 %v3486_v27  ;;  %v4022_v27 = vpack.c.bf16 %v3302_v50, %v3297_v63 }
 0x219   :  { %2387 = vmatpush3.bf16.msra.mxu1 %v3495_v55  ;;  %v4033_v55 = vpack.c.bf16 %v3366_v52, %v3364_v48 }
 0x21a   :  { %2389 = vmatprep.subr.bf16.mxu1 %v3502_v4  ;;  %v4032_v4 = vpack.c.bf16 %v3362_v47, %v3360_v42 }
 0x21d   :  { %2391 = vmatpush3.bf16.msra.mxu1 %v3509_v2  ;;  %v4035_v2 = vld [vmem:[#allocation24_spill] sm:$0xff] }
 0x21e   :  { %2393 = vmatprep.subr.bf16.mxu1 %v3526_v1  ;;  %v4034_v1 = vld [vmem:[#allocation25_spill] sm:$0xff] }
 0x221   :  { %2395 = vmatpush3.bf16.msra.mxu1 %v3534_v38  ;;  %v4036_v38 = vpack.c.bf16 %v4034_v1, %v4035_v2 }
 0x222   :  { %2397 = vmatprep.subr.bf16.mxu1 %v3536_v21  ;;  %v4023_v21 = vpack.c.bf16 %v3312_v54, %v3307_v61 }
 0x225   :  { %2399 = vmatpush3.bf16.msra.mxu1 %v3538_v53  ;;  %v4024_v53 = vpack.c.bf16 %v3323_v6, %v3318_v46 }
 0x226   :  { %2401 = vmatprep.subr.bf16.mxu1 %v4020_v18  ;;  %v4051_v18 = vld [vmem:[#allocation20_spill] sm:$0xff] }
 0x228   :  { %1394 = vmatmul.mubr.f32.vlgmr.msra.gmra.mrb[2].mxu1 %v3574_v28 }
 0x229   :  { %2403 = vmatpush3.bf16.msra.mxu1 %v4021_v20  ;;  %1529 = vmatprep.mubr.f32.mxu1 %v1152_v58  ;;  %v4046_v58 = vld [vmem:[#allocation15_spill] sm:$0xff]  ;;  %v4053_v20 = vld [vmem:[#allocation22_spill] sm:$0xff] }
 0x22a   :  { %2405 = vmatprep.subr.bf16.mxu1 %v4022_v27  ;;  %v4054_v27 = vld [vmem:[#allocation23_spill] sm:$0xff] }
 0x22d   :  { %2407 = vmatpush3.bf16.msra.mxu1 %v4023_v21  ;;  %v4055_v21 = vand.u32 4294901760, %v3273_v14  ;;  %v4063_v14 = vand.u32 4294901760, %v3312_v54  ;;  %v4070_v54 = vand.u32 4294901760, %v3340_v10  ;;  %v4077_v10 = vand.u32 4294901760, %v3354_v36 }
 0x22e   :  { %2409 = vmatprep.subr.bf16.mxu1 %v4024_v53  ;;  %v4056_v53 = vand.u32 4294901760, %v3280_v40  ;;  %v4062_v40 = vand.u32 4294901760, %v3307_v61  ;;  %v4069_v61 = vand.u32 4294901760, %v3338_v8  ;;  %v4076_v8 = vand.u32 4294901760, %v3352_v35 }
 0x22f   :  { %v4083_v35 = vand.u32 4294901760, %v3366_v52  ;;  %v4084_v36 = vand.u32 4294901760, %v4035_v2 }
 0x231   :  { %2411 = vmatpush3.bf16.msra.mxu1 %v4025_v49  ;;  %v2464_v49 = vpack.c.bf16 %v4056_v53, %v4055_v21 }
 0x232   :  { %2413 = vmatprep.subr.bf16.mxu1 %v4026_v0  ;;  %v4057_v0 = vld [vmem:[#allocation26_spill] sm:$0xff] }
 0x235   :  { %2415 = vmatpush3.bf16.msra.mxu1 %v4027_v39  ;;  %v4058_v39 = vand.u32 4294901760, %v3285_v5  ;;  %v2470_v5 = vpack.c.bf16 %v4063_v14, %v4062_v40 }
 0x236   :  { %2417 = vmatprep.subr.bf16.mxu1 %v4028_v9  ;;  %v4059_v9 = vand.u32 4294901760, %v3290_v33  ;;  %v4064_v33 = vand.u32 4294901760, %v3318_v46  ;;  %v4071_v46 = vand.u32 4294901760, %v3342_v22  ;;  %v4078_v22 = vand.u32 4294901760, %v3356_v37 }
 0x237   :  { %v4085_v37 = vand.u32 4294901760, %v4034_v1 }
 0x238   :  { %v2478_v21 = vpack.c.bf16 %v4071_v46, %v4070_v54 }
 0x239   :  { %2419 = vmatpush3.bf16.msra.mxu1 %v4029_v11  ;;  %v2466_v11 = vpack.c.bf16 %v4059_v9, %v4058_v39  ;;  %v2484_v39 = vpack.c.bf16 %v4077_v10, %v4076_v8 }
 0x23a   :  { %2421 = vmatprep.subr.bf16.mxu1 %v4030_v56  ;;  %v4060_v56 = vand.u32 4294901760, %v3297_v63 }
 0x23d   :  { %2423 = vmatpush3.bf16.msra.mxu1 %v4031_v23  ;;  %v4061_v23 = vand.u32 4294901760, %v3302_v50  ;;  %v4066_v50 = vand.u32 4294901760, %v3328_v15  ;;  %v4073_v15 = vand.u32 4294901760, %v3346_v44  ;;  %v4080_v44 = vand.u32 4294901760, %v3360_v42 }
 0x23e   :  { %2425 = vmatprep.subr.bf16.mxu1 %v4032_v4  ;;  %v4087_v42 = vand.u32 4294901760, %v4037_v43 }
 0x23f   :  { %v2468_v4 = vpack.c.bf16 %v4061_v23, %v4060_v56  ;;  %v2492_v23 = vpack.c.bf16 %v4085_v37, %v4084_v36 }
 0x241   :  { %2427 = vmatpush3.bf16.msra.mxu1 %v4033_v55  ;;  %v4065_v55 = vand.u32 4294901760, %v3323_v6  ;;  %v4072_v6 = vand.u32 4294901760, %v3344_v29  ;;  %v4079_v29 = vand.u32 4294901760, %v3358_v41  ;;  %v4086_v41 = vand.u32 4294901760, %v4038_v51 }
 0x242   :  { %2429 = vmatprep.subr.bf16.mxu1 %v4036_v38  ;;  %v4068_v38 = vand.u32 4294901760, %v3336_v26  ;;  %v4075_v26 = vand.u32 4294901760, %v3350_v24  ;;  %v4082_v24 = vand.u32 4294901760, %v3364_v48 }
 0x243   :  { %v2472_v63 = vpack.c.bf16 %v4065_v55, %v4064_v33  ;;  %v2480_v53 = vpack.c.bf16 %v4073_v15, %v4072_v6  ;;  %v2486_v9 = vpack.c.bf16 %v4079_v29, %v4078_v22 }
 0x244   :  { %v2490_v56 = vpack.c.bf16 %v4083_v35, %v4082_v24 }
 0x245   :  { %2431 = vmatpush3.bf16.msra.mxu1 %v4039_v59  ;;  %v2476_v59 = vpack.c.bf16 %v4069_v61, %v4068_v38 }
 0x246   :  { %2433 = vmatprep.subr.bf16.mxu1 %v4040_v19 }
 0x248   :  { %1532 = vmatmul.mubr.f32.vlgmr.msra.gmra.mrb[4].mxu1 %v3577_v13  ;;  %v4067_v13 = vand.u32 4294901760, %v3333_v32  ;;  %v4074_v32 = vand.u32 4294901760, %v3348_v16  ;;  %v4081_v16 = vand.u32 4294901760, %v3362_v47 }
 0x249   :  { %2435 = vmatpush3.bf16.msra.mxu1 %v4041_v60  ;;  %1636 = vmatprep.mubr.f32.mxu1 %v1153_v31  ;;  %v4052_v31 = vld [vmem:[#allocation21_spill] sm:$0xff] }
 0x24a   :  { %2437 = vmatprep.subr.bf16.mxu1 %v4042_v7 }
 0x24d   :  { %2439 = vmatpush3.bf16.msra.mxu1 %v4043_v3 }
 0x24e   :  { %2441 = vmatprep.subr.bf16.mxu1 %v4044_v45 }
 0x251   :  { %2443 = vmatpush3.bf16.msra.mxu1 %v4045_v12 }
 0x252   :  { %2445 = vmatprep.subr.bf16.mxu1 %v4046_v58 }
 0x255   :  { %2447 = vmatpush3.bf16.msra.mxu1 %v4047_v57 }
 0x256   :  { %2449 = vmatprep.subr.bf16.mxu1 %v4048_v30 }
 0x259   :  { %2451 = vmatpush3.bf16.msra.mxu1 %v4049_v34 }
 0x25a   :  { %2453 = vmatprep.subr.bf16.mxu1 %v4050_v62 }
 0x25d   :  { %2455 = vmatpush3.bf16.msra.mxu1 %v4051_v18 }
 0x25e   :  { %2457 = vmatprep.subr.bf16.mxu1 %v4052_v31 }
 0x261   :  { %2459 = vmatpush3.bf16.msra.mxu1 %v4053_v20 }
 0x262   :  { %2461 = vmatprep.subr.bf16.mxu1 %v4054_v27 }
 0x265   :  { %2463 = vmatpush3.bf16.msra.mxu1 %v4057_v0 }
 0x266   :  { %2465 = vmatprep.subr.bf16.mxu1 %v2464_v49  ;;  %v2482_v49 = vpack.c.bf16 %v4075_v26, %v4074_v32 }
 0x268   :  { %1640 = vmatmul.mubr.f32.vlgmr.msra.gmra.mrb[6].mxu1 %v1159_v25  ;;  %v2474_v25 = vpack.c.bf16 %v4067_v13, %v4066_v50 }
 0x269   :  { %2467 = vmatpush3.bf16.msra.mxu1 %v2466_v11  ;;  %1806 = vmatprep.mubr.f32.mxu1 %v3572_v17  ;;  %v2488_v11 = vpack.c.bf16 %v4081_v16, %v4080_v44 }
 0x26a   :  { %2469 = vmatprep.subr.bf16.mxu1 %v2468_v4  ;;  %v2494_v4 = vpack.c.bf16 %v4087_v42, %v4086_v41 }
 0x26d   :  { %2471 = vmatpush3.bf16.msra.mxu1 %v2470_v5 }
 0x26e   :  { %2473 = vmatprep.subr.bf16.mxu1 %v2472_v63 }
 0x271   :  { %2475 = vmatpush3.bf16.msra.mxu1 %v2474_v25 }
 0x272   :  { %2477 = vmatprep.subr.bf16.mxu1 %v2476_v59 }
 0x275   :  { %2479 = vmatpush3.bf16.msra.mxu1 %v2478_v21 }
 0x276   :  { %2481 = vmatprep.subr.bf16.mxu1 %v2480_v53 }
 0x279   :  { %2483 = vmatpush3.bf16.msra.mxu1 %v2482_v49 }
 0x27a   :  { %2485 = vmatprep.subr.bf16.mxu1 %v2484_v39 }
 0x27d   :  { %2487 = vmatpush3.bf16.msra.mxu1 %v2486_v9 }
 0x27e   :  { %2489 = vmatprep.subr.bf16.mxu1 %v2488_v11 }
 0x281   :  { %2491 = vmatpush3.bf16.msra.mxu1 %v2490_v56 }
 0x282   :  { %2493 = vmatprep.subr.bf16.mxu1 %v2492_v23 }
 0x285   :  { %2495 = vmatpush3.bf16.msra.mxu1 %v2494_v4 }
 0x286   :  { %2497 = vmatprep.subr.bf16.mxu1 %v4040_v19 }
 0x288   :  { %1808 = vmatmul.mubr.f32.vlgmr.msra.gmra.mrb[8].mxu1 %v3574_v28 }
 0x289   :  { %2499 = vmatpush3.bf16.msra.mxu1 %v4041_v60  ;;  %1910 = vmatprep.mubr.f32.mxu1 %v3572_v17 }
 0x28a   :  { %2501 = vmatprep.subr.bf16.mxu1 %v4042_v7 }
 0x28d   :  { %2503 = vmatpush3.bf16.msra.mxu1 %v4043_v3 }
 0x28e   :  { %2505 = vmatprep.subr.bf16.mxu1 %v4044_v45 }
 0x291   :  { %2507 = vmatpush3.bf16.msra.mxu1 %v4045_v12 }
 0x292   :  { %2509 = vmatprep.subr.bf16.mxu1 %v4046_v58 }
 0x295   :  { %2511 = vmatpush3.bf16.msra.mxu1 %v4047_v57 }
 0x296   :  { %2513 = vmatprep.subr.bf16.mxu1 %v4048_v30 }
 0x299   :  { %2515 = vmatpush3.bf16.msra.mxu1 %v4049_v34 }
 0x29a   :  { %2517 = vmatprep.subr.bf16.mxu1 %v4050_v62 }
 0x29d   :  { %2519 = vmatpush3.bf16.msra.mxu1 %v4051_v18 }
 0x29e   :  { %2521 = vmatprep.subr.bf16.mxu1 %v4052_v31 }
 0x2a1   :  { %2523 = vmatpush3.bf16.msra.mxu1 %v4053_v20 }
 0x2a2   :  { %2525 = vmatprep.subr.bf16.mxu1 %v4054_v27 }
 0x2a5   :  { %2527 = vmatpush3.bf16.msra.mxu1 %v4057_v0 }
 0x2a8   :  { %1912 = vmatmul.mubr.f32.vlgmr.msra.gmra.mrb[10].mxu1 %v3574_v28 }
 0x2db   :  { %v1966_v47 = vpop.f32.mrb[0].mxu1 }
 0x2dc   :  { %v1967_v48 = vpop.f32.mrb[1].mxu1 }
 0x2dd   :  { %v1968_v52 = vadd.f32 %v1967_v48, %v1966_v47 }
 0x2fb   :  { %v2001_v17 = vpop.f32.mrb[2].mxu1 }
 0x2fc   :  { %v2002_v1 = vpop.f32.mrb[3].mxu1 }
 0x2fd   :  { %v2003_v2 = vadd.f32 %v2002_v1, %v2001_v17 }
 0x2ff   :  { %v1396_v43 = vadd.f32 %v2003_v2, %v1968_v52 }
 0x31b   :  { %v2036_v51 = vpop.f32.mrb[4].mxu1 }
 0x31c   :  { %v2037_v19 = vpop.f32.mrb[5].mxu1 }
 0x31d   :  { %v2038_v60 = vadd.f32 %v2037_v19, %v2036_v51 }
 0x31f   :  { %v1534_v7 = vadd.f32 %v2038_v60, %v1396_v43 }
 0x33b   :  { %v2071_v3 = vpop.f32.mrb[6].mxu1 }
 0x33c   :  { %v2072_v45 = vpop.f32.mrb[7].mxu1 }
 0x33d   :  { %v2073_v12 = vadd.f32 %v2072_v45, %v2071_v3 }
 0x33f   :  { %v1642_v58 = vadd.f32 %v2073_v12, %v1534_v7 }
 0x35b   :  { %v2106_v57 = vpop.f32.mrb[8].mxu1 }
 0x35c   :  { %v2107_v30 = vpop.f32.mrb[9].mxu1 }
 0x35d   :  { %v2108_v34 = vadd.f32 %v2107_v30, %v2106_v57 }
 0x35f   :  { %v1810_v62 = vadd.f32 %v2108_v34, %v1642_v58 }
 0x37b   :  { %v2141_v28 = vpop.f32.mrb[10].mxu1 }
 0x37c   :  { %v2142_v18 = vpop.f32.mrb[11].mxu1 }
 0x37d   :  { %v2143_v31 = vadd.f32 %v2142_v18, %v2141_v28 }
 0x37f   :  { %v1914_v20 = vadd.f32 %v2143_v31, %v1810_v62 }
 0x381   :  { %1917 = vst [vmem:[#allocation9] sm:$0xff] %v1914_v20 }
 0x382   :  { %2638 = shalt.err (!%p2635_p0)
}
 0x383   :  { %s2639_s27 = scalar_lea.hbm %s3767_s3, 128 }
 0x384   :  { %p2640_p1 = scmp.ne.s32.totalorder %s3767_s3, %s2639_s27  ;;  %p2643_p2 = scmp.lt.u32.totalorder %s2639_s27, %s3767_s3 }
 0x386   :  { %p2645_p3 = pnand %p2643_p2, %p2640_p1 }
 0x388   :  { %2648 = shalt.err (!%p2645_p3)
}
 0x389   :  { %1927 = dma.vmem_to_hbm [thread:$0]  %s1925_s23, 128, %s3767_s3, [#allocation5]  }
 0x38a   :  { %2653 = dma.done.wait [#allocation5], 128  }
 0x38b   :  { %2654 = vsyncadd [#allocation5], 4294967168 }
 0x38c   :  { %1931 = vsyncpa [#allocation4], 1 }
 0x38d   :  { %1932 = vsyncpa [#allocation7], 1 }
 0x38e   :  { %1933 = vsyncpa [#allocation5], 1 }

// kernel: tpu_custom_call.1
= control target key start
LH: loop header
LB: loop body
LE: loop exit
PB: predicated region body
PF: predicated region fallthrough
CT: control target
= control target key end

     0   :  { %8 = vsyncpa [#allocation4], 0  ;;  %s3764_s0 = inlined_call_operand.hbm [shape: f32[16,128], index: 0, kind: input, shape index: {}]   ;;  %s3765_s1 = inlined_call_operand.hbm [shape: f32[128,256], index: 1, kind: input, shape index: {}]   ;;  %s3766_s2 = inlined_call_operand.hbm [shape: f32[256,128], index: 2, kind: input, shape index: {}]   ;;  %s3767_s3 = inlined_call_operand.hbm [shape: f32[8,128], index: 3, kind: output, shape index: {}]  }
   0x1   :  { %9 = vsyncpa [#allocation7], 0 }
   0x2   :  { %10 = vsyncpa [#allocation5], 0  ;;  %s2655_s12 = smov [#allocation6]   ;;  %s2561_s16 = scalar_lea.hbm %s3765_s1, 4096 }
   0x3   :  { %s28_s13 = sshll.u32 %s2655_s12, 4  ;;  %p2562_p0 = scmp.ne.s32.totalorder %s3765_s1, %s2561_s16  ;;  %s29_s13 = int_to_ptr.vmem [resolvable:$true] %s28_s13 }
   0x4   :  { %p2565_p1 = scmp.lt.u32.totalorder %s2561_s16, %s3765_s1 }
   0x6   :  { %p2567_p2 = pnand %p2565_p1, %p2562_p0 }
   0x8   :  { %2570 = shalt.err (!%p2567_p2)
}
   0x9   :  { %s2571_s21 = scalar_lea.vmem %s29_s13, 4096  ;;  %p2576_p4 = scmp.lt.s32.totalorder %s29_s13, %s29_s13 }
   0xa   :  { %p2572_p3 = scmp.ne.s32.totalorder %s29_s13, %s2571_s21  ;;  %p2577_p5 = scmp.lt.s32.totalorder %s2571_s21, %s2571_s21 }
   0xc   :  { %p2578_p6 = por %p2577_p5, %p2576_p4 }
   0xe   :  { %p2579_p7 = pnand %p2578_p6, %p2572_p3 }
  0x10   :  { %2582 = shalt.err (!%p2579_p7)
}
  0x11   :  { %s2656_s22 = smov 256   ;;  %s2657_s23 = smov 16  }
  0x12   :  { %34 = dma.hbm_to_vmem [thread:$0]  %s3765_s1, 4096, %s29_s13, [#allocation7], %s2656_s22, %s2656_s22, %s2657_s23  }
  0x13   :  { %s2658_s26 = smov [#allocation3]   ;;  %s2583_s30 = scalar_lea.hbm %s3764_s0, 256 }
  0x14   :  { %s16_s27 = sshll.u32 %s2658_s26, 4  ;;  %p2584_p8 = scmp.ne.s32.totalorder %s3764_s0, %s2583_s30  ;;  %s17_s27 = int_to_ptr.vmem [resolvable:$true] %s16_s27 }
  0x15   :  { %p2587_p9 = scmp.lt.u32.totalorder %s2583_s30, %s3764_s0 }
  0x17   :  { %p2589_p10 = pnand %p2587_p9, %p2584_p8 }
  0x19   :  { %2592 = shalt.err (!%p2589_p10)
}
  0x1a   :  { %s2593_s8 = scalar_lea.vmem %s17_s27, 256  ;;  %p2598_p12 = scmp.lt.s32.totalorder %s17_s27, %s17_s27 }
  0x1b   :  { %p2594_p11 = scmp.ne.s32.totalorder %s17_s27, %s2593_s8  ;;  %p2599_p13 = scmp.lt.s32.totalorder %s2593_s8, %s2593_s8 }
  0x1d   :  { %p2600_p0 = por %p2599_p13, %p2598_p12 }
  0x1f   :  { %p2601_p1 = pnand %p2600_p0, %p2594_p11 }
  0x21   :  { %2604 = shalt.err (!%p2601_p1)
}
  0x22   :  { %s2659_s1 = smov 128   ;;  %s2660_s9 = smov 8  }
  0x23   :  { %22 = dma.hbm_to_vmem [thread:$0]  %s3764_s0, 256, %s17_s27, [#allocation4], %s2659_s1, %s2659_s1, %s2660_s9  }
  0x24   :  { %s2661_s12 = smov [#allocation8]   ;;  %s2605_s16 = scalar_lea.hbm %s3766_s2, 4096 }
  0x25   :  { %s40_s13 = sshll.u32 %s2661_s12, 4  ;;  %p2606_p2 = scmp.ne.s32.totalorder %s3766_s2, %s2605_s16  ;;  %s41_s13 = int_to_ptr.vmem [resolvable:$true] %s40_s13 }
  0x26   :  { %p2609_p3 = scmp.lt.u32.totalorder %s2605_s16, %s3766_s2 }
  0x28   :  { %p2611_p4 = pnand %p2609_p3, %p2606_p2 }
  0x2a   :  { %2614 = shalt.err (!%p2611_p4)
}
  0x2b   :  { %s2615_s21 = scalar_lea.vmem %s41_s13, 4096  ;;  %p2620_p6 = scmp.lt.s32.totalorder %s41_s13, %s41_s13 }
  0x2c   :  { %p2616_p5 = scmp.ne.s32.totalorder %s41_s13, %s2615_s21  ;;  %p2621_p7 = scmp.lt.s32.totalorder %s2615_s21, %s2615_s21 }
  0x2e   :  { %p2622_p8 = por %p2621_p7, %p2620_p6 }
  0x30   :  { %p2623_p9 = pnand %p2622_p8, %p2616_p5 }
  0x32   :  { %2626 = shalt.err (!%p2623_p9)
}
  0x33   :  { %46 = dma.hbm_to_vmem [thread:$0]  %s3766_s2, 4096, %s41_s13, [#allocation7], %s2659_s1, %s2659_s1, %s2660_s9  }
  0x34   :  { %2649 = dma.done.wait [#allocation4], 256  }
  0x35   :  { %2650 = vsyncadd [#allocation4], 4294967040 }
  0x36   :  { %2651 = dma.done.wait [#allocation7], 8192  }
  0x37   :  { %2652 = vsyncadd [#allocation7], 4294959104  ;;  %v3770_v0 = vmov 0.0   ;;  %v63_v1 = vld [vmem:[#allocation6 + $0x8] sm:$0xff]  ;;  %v65_v2 = vld [vmem:[#allocation6 + $0x18] sm:$0xff]  ;;  %s2663_s2 = smov [#allocation9]  }
  0x38   :  { %190 = vmatprep.mubr.f32.mxu0 %v3770_v0  ;;  %v62_v3 = vld [vmem:[#allocation6] sm:$0xff]  ;;  %v94_v4 = vand.u32 4294901760, %v63_v1  ;;  %v98_v5 = vand.u32 4294901760, %v65_v2  ;;  %v64_v6 = vld [vmem:[#allocation6 + $0x10] sm:$0xff]  ;;  %v67_v8 = vld [vmem:[#allocation6 + $0x28] sm:$0xff]  ;;  %s1924_s23 = sshll.u32 %s2663_s2, 4  ;;  %s1925_s23 = int_to_ptr.vmem [resolvable:$true] %s1924_s23 }
  0x39   :  { %v96_v7 = vand.u32 4294901760, %v62_v3  ;;  %v69_v9 = vld [vmem:[#allocation6 + $0x38] sm:$0xff]  ;;  %v100_v10 = vand.u32 4294901760, %v64_v6  ;;  %v102_v11 = vand.u32 4294901760, %v67_v8  ;;  %v66_v13 = vld [vmem:[#allocation6 + $0x20] sm:$0xff]  ;;  %v68_v14 = vld [vmem:[#allocation6 + $0x30] sm:$0xff]  ;;  %p2632_p11 = scmp.lt.s32.totalorder %s1925_s23, %s1925_s23 }
  0x3a   :  { %v106_v12 = vand.u32 4294901760, %v69_v9  ;;  %v71_v15 = vld [vmem:[#allocation6 + $0x48] sm:$0xff]  ;;  %v2721_v16 = vpack.c.bf16 %v98_v5, %v94_v4  ;;  %v73_v17 = vld [vmem:[#allocation6 + $0x58] sm:$0xff]  ;;  %v70_v18 = vld [vmem:[#allocation6 + $0x40] sm:$0xff]  ;;  %v104_v23 = vand.u32 4294901760, %v66_v13  ;;  %v108_v24 = vand.u32 4294901760, %v68_v14 }
  0x3b   :  { %v72_v19 = vld [vmem:[#allocation6 + $0x50] sm:$0xff]  ;;  %v2723_v20 = vpack.c.bf16 %v100_v10, %v96_v7  ;;  %v75_v22 = vld [vmem:[#allocation6 + $0x68] sm:$0xff]  ;;  %v110_v25 = vand.u32 4294901760, %v71_v15  ;;  %v114_v26 = vand.u32 4294901760, %v73_v17  ;;  %v112_v27 = vand.u32 4294901760, %v70_v18  ;;  %v77_v29 = vld [vmem:[#allocation6 + $0x78] sm:$0xff] }
  0x3c   :  { %3912 = vst [vmem:[#allocation13_spill] sm:$0xff] %v2721_v16  ;;  %v2725_v21 = vpack.c.bf16 %v106_v12, %v102_v11  ;;  %2145 = vmatprep.subr.bf16.mxu0 %v2721_v16  ;;  %v116_v28 = vand.u32 4294901760, %v72_v19  ;;  %v74_v30 = vld [vmem:[#allocation6 + $0x60] sm:$0xff]  ;;  %v2729_v31 = vsub.f32 %v63_v1, %v94_v4  ;;  %v2732_v32 = vpack.c.bf16 %v108_v24, %v104_v23  ;;  %v76_v34 = vld [vmem:[#allocation6 + $0x70] sm:$0xff]  ;;  %v79_v39 = vld [vmem:[#allocation6 + $0x88] sm:$0xff]  ;;  %s2627_s24 = scalar_lea.vmem %s1925_s23, 128 }
  0x3d   :  { %3913 = vst [vmem:[#allocation14_spill] sm:$0xff] %v2723_v20  ;;  %2147 = vmatpush1.bf16.msra.mxu0 %v2723_v20  ;;  %v118_v33 = vand.u32 4294901760, %v75_v22  ;;  %v2734_v35 = vsub.f32 %v65_v2, %v98_v5  ;;  %v2736_v36 = vsub.f32 %v62_v3, %v96_v7  ;;  %v2738_v37 = vsub.f32 %v64_v6, %v100_v10  ;;  %v81_v40 = vld [vmem:[#allocation6 + $0x98] sm:$0xff]  ;;  %v78_v45 = vld [vmem:[#allocation6 + $0x80] sm:$0xff]  ;;  %v80_v46 = vld [vmem:[#allocation6 + $0x90] sm:$0xff]  ;;  %p2628_p10 = scmp.ne.s32.totalorder %s1925_s23, %s2627_s24  ;;  %p2633_p12 = scmp.lt.s32.totalorder %s2627_s24, %s2627_s24 }
  0x3e   :  { %3914 = vst [vmem:[#allocation15_spill] sm:$0xff] %v2725_v21  ;;  %2149 = vmatprep.subr.bf16.mxu0 %v2725_v21  ;;  %3915 = vst [vmem:[#allocation16_spill] sm:$0xff] %v2732_v32  ;;  %v2740_v38 = vpack.c.bf16 %v114_v26, %v110_v25  ;;  %v2742_v41 = vsub.f32 %v67_v8, %v102_v11  ;;  %v2744_v42 = vsub.f32 %v69_v9, %v106_v12  ;;  %v83_v51 = vld [vmem:[#allocation6 + $0xa8] sm:$0xff]  ;;  %v85_v56 = vld [vmem:[#allocation6 + $0xb8] sm:$0xff] }
  0x3f   :  { %v122_v43 = vand.u32 4294901760, %v77_v29  ;;  %v120_v44 = vand.u32 4294901760, %v74_v30  ;;  %v2747_v47 = vsub.f32 %v66_v13, %v104_v23  ;;  %v2749_v48 = vsub.f32 %v68_v14, %v108_v24  ;;  %v82_v57 = vld [vmem:[#allocation6 + $0xa0] sm:$0xff]  ;;  %v84_v58 = vld [vmem:[#allocation6 + $0xb0] sm:$0xff]  ;;  %v87_v63 = vld [vmem:[#allocation6 + $0xc8] sm:$0xff]  ;;  %p2634_p13 = por %p2633_p12, %p2632_p11 }
  0x40   :  { %3916 = vst [vmem:[#allocation17_spill] sm:$0xff] %v2740_v38  ;;  %v2751_v49 = vpack.c.bf16 %v116_v28, %v112_v27  ;;  %v124_v50 = vand.u32 4294901760, %v76_v34  ;;  %v2754_v52 = vsub.f32 %v71_v15, %v110_v25  ;;  %v126_v54 = vand.u32 4294901760, %v79_v39  ;;  %v89_v1 = vld [vmem:[#allocation6 + $0xd8] sm:$0xff]  ;;  %v86_v10 = vld [vmem:[#allocation6 + $0xc0] sm:$0xff]  ;;  %v88_v11 = vld [vmem:[#allocation6 + $0xd0] sm:$0xff] }
  0x41   :  { %2151 = vmatpush1.bf16.msra.mxu0 %v2732_v32  ;;  %v2756_v53 = vpack.c.bf16 %v122_v43, %v118_v33  ;;  %v130_v55 = vand.u32 4294901760, %v81_v40  ;;  %v2758_v59 = vsub.f32 %v73_v17, %v114_v26  ;;  %v2760_v60 = vsub.f32 %v70_v18, %v112_v27  ;;  %v60_v27 = vld [vmem:[#allocation3] sm:$0xff]  ;;  %v61_v20 = vld [vmem:[#allocation3 + $0x8] sm:$0xff]  ;;  %p2635_p0 = pnand %p2634_p13, %p2628_p10 }
  0x42   :  { %3917 = vst [vmem:[#allocation18_spill] sm:$0xff] %v2751_v49  ;;  %2153 = vmatprep.subr.bf16.mxu0 %v2740_v38  ;;  %v128_v61 = vand.u32 4294901760, %v78_v45  ;;  %v132_v62 = vand.u32 4294901760, %v80_v46  ;;  %v2762_v2 = vsub.f32 %v72_v19, %v116_v28  ;;  %v2764_v3 = vsub.f32 %v75_v22, %v118_v33 }
  0x43   :  { %3918 = vst [vmem:[#allocation19_spill] sm:$0xff] %v2756_v53  ;;  %v2766_v4 = vsub.f32 %v77_v29, %v122_v43  ;;  %v2768_v5 = vpack.c.bf16 %v124_v50, %v120_v44  ;;  %v134_v6 = vand.u32 4294901760, %v83_v51  ;;  %v138_v7 = vand.u32 4294901760, %v85_v56 }
  0x44   :  { %v136_v8 = vand.u32 4294901760, %v82_v57  ;;  %v140_v9 = vand.u32 4294901760, %v84_v58  ;;  %v2772_v12 = vsub.f32 %v74_v30, %v120_v44  ;;  %v2774_v13 = vpack.c.bf16 %v130_v55, %v126_v54  ;;  %v91_v44 = vld [vmem:[#allocation6 + $0xe8] sm:$0xff] }
  0x45   :  { %3919 = vst [vmem:[#allocation20_spill] sm:$0xff] %v2768_v5  ;;  %2155 = vmatpush1.bf16.msra.mxu0 %v2751_v49  ;;  %v142_v14 = vand.u32 4294901760, %v87_v63  ;;  %v146_v15 = vand.u32 4294901760, %v89_v1  ;;  %v2776_v17 = vsub.f32 %v76_v34, %v124_v50  ;;  %v2778_v18 = vsub.f32 %v79_v39, %v126_v54 }
  0x46   :  { %2157 = vmatprep.subr.bf16.mxu0 %v2756_v53  ;;  %3920 = vst [vmem:[#allocation21_spill] sm:$0xff] %v2774_v13  ;;  %v2780_v19 = vsub.f32 %v81_v40, %v130_v55  ;;  %v2782_v22 = vpack.c.bf16 %v132_v62, %v128_v61  ;;  %v2784_v23 = vsub.f32 %v78_v45, %v128_v61  ;;  %v144_v25 = vand.u32 4294901760, %v86_v10  ;;  %v93_v45 = vld [vmem:[#allocation6 + $0xf8] sm:$0xff] }
  0x47   :  { %v2786_v24 = vsub.f32 %v80_v46, %v132_v62  ;;  %v148_v26 = vand.u32 4294901760, %v88_v11  ;;  %v2789_v28 = vpack.c.bf16 %v138_v7, %v134_v6  ;;  %v2791_v29 = vsub.f32 %v83_v51, %v134_v6  ;;  %v2806_v46 = vld [vmem:[#allocation6 + $0xe0] sm:$0xff]  ;;  %v2821_v62 = vld [vmem:[#allocation6 + $0xf0] sm:$0xff] }
  0x48   :  { %3921 = vst [vmem:[#allocation22_spill] sm:$0xff] %v2782_v22  ;;  %v2793_v30 = vsub.f32 %v85_v56, %v138_v7  ;;  %v2795_v33 = vpack.c.bf16 %v140_v9, %v136_v8  ;;  %v2798_v34 = vsub.f32 %v82_v57, %v136_v8  ;;  %v2800_v39 = vsub.f32 %v84_v58, %v140_v9 }
  0x49   :  { %2159 = vmatpush1.bf16.msra.mxu0 %v2768_v5  ;;  %3922 = vst [vmem:[#allocation23_spill] sm:$0xff] %v2789_v28  ;;  %v2802_v40 = vpack.c.bf16 %v146_v15, %v142_v14  ;;  %v2804_v43 = vsub.f32 %v87_v63, %v142_v14  ;;  %v3769_v50 = vand.u32 4294901760, %v2729_v31  ;;  %v3768_v51 = vand.u32 4294901760, %v2734_v35 }
  0x4a   :  { %3923 = vst [vmem:[#allocation24_spill] sm:$0xff] %v2795_v33  ;;  %2161 = vmatprep.subr.bf16.mxu0 %v2774_v13  ;;  %v2810_v54 = vand.u32 4294901760, %v60_v27  ;;  %v3772_v55 = vand.u32 4294901760, %v2736_v36  ;;  %v2813_v56 = vsub.f32 %v89_v1, %v146_v15  ;;  %v2815_v57 = vpack.c.bf16 %v148_v26, %v144_v25 }
  0x4b   :  { %3924 = vst [vmem:[#allocation25_spill] sm:$0xff] %v2802_v40  ;;  %v2817_v58 = vsub.f32 %v86_v10, %v144_v25  ;;  %v2819_v61 = vsub.f32 %v88_v11, %v148_v26  ;;  %v150_v63 = vand.u32 4294901760, %v91_v44  ;;  %v154_v6 = vand.u32 4294901760, %v93_v45 }
  0x4c   :  { %3925 = vst [vmem:[#allocation26_spill] sm:$0xff] %v2815_v57  ;;  %v216_v7 = vsub.f32 %v2729_v31, %v3769_v50  ;;  %v228_v1 = vsub.f32 %v2734_v35, %v3768_v51  ;;  %v2833_v9 = vsub.f32 %v60_v27, %v2810_v54  ;;  %v3773_v10 = vand.u32 4294901760, %v2738_v37 }
  0x4d   :  { %3926 = vst [vmem:[#allocation27_spill] sm:$0xff] %v2819_v61  ;;  %2163 = vmatpush1.bf16.msra.mxu0 %v2782_v22  ;;  %v3774_v11 = vand.u32 4294901760, %v2742_v41  ;;  %v222_v15 = vsub.f32 %v2736_v36, %v3772_v55  ;;  %v3777_v25 = vand.u32 4294901760, %v2744_v42  ;;  %v3782_v26 = vand.u32 4294901760, %v2747_v47 }
  0x4e   :  { %2165 = vmatprep.subr.bf16.mxu0 %v2789_v28  ;;  %3927 = vst [vmem:[#allocation28_spill] sm:$0xff] %v2833_v9  ;;  %v217_v51 = vand.u32 4294901760, %v216_v7  ;;  %v229_v50 = vand.u32 4294901760, %v228_v1  ;;  %v234_v27 = vsub.f32 %v2738_v37, %v3773_v10  ;;  %v3787_v1 = vand.u32 4294901760, %v2749_v48 }
  0x4f   :  { %v240_v14 = vsub.f32 %v2742_v41, %v3774_v11  ;;  %v252_v55 = vsub.f32 %v2744_v42, %v3777_v25  ;;  %v246_v7 = vsub.f32 %v2747_v47, %v3782_v26  ;;  %v2859_v0 = vpack.c.bf16 %v154_v6, %v150_v63 }
  0x50   :  { %v2861_v10 = vsub.f32 %v91_v44, %v150_v63  ;;  %v2863_v8 = vsub.f32 %v93_v45, %v154_v6  ;;  %v3932_v25 = vand.u32 4294901760, %v2821_v62  ;;  %v223_v22 = vand.u32 4294901760, %v222_v15 }
  0x51   :  { %2167 = vmatpush1.bf16.msra.mxu0 %v2795_v33  ;;  %3928 = vst [vmem:[#allocation29_spill] sm:$0xff] %v2859_v0  ;;  %v3931_v33 = vand.u32 4294901760, %v2806_v46  ;;  %v258_v26 = vsub.f32 %v2749_v48, %v3787_v1  ;;  %v2176_v13 = vpack.c.bf16 %v229_v50, %v217_v51  ;;  %v3934_v44 = vand.u32 4294901760, %v2833_v9 }
  0x52   :  { %2169 = vmatprep.subr.bf16.mxu0 %v2802_v40  ;;  %3929 = vst [vmem:[#allocation30_spill] sm:$0xff] %v2861_v10  ;;  %3930 = vst [vmem:[#allocation31_spill] sm:$0xff] %v2863_v8  ;;  %v3790_v40 = vand.u32 4294901760, %v2758_v59  ;;  %v235_v63 = vand.u32 4294901760, %v234_v27  ;;  %v241_v11 = vand.u32 4294901760, %v240_v14  ;;  %v3795_v15 = vand.u32 4294901760, %v2762_v2 }
  0x53   :  { %v2870_v28 = vpack.c.bf16 %v3932_v25, %v3931_v33  ;;  %v194_v45 = vsub.f32 %v2833_v9, %v3934_v44  ;;  %v253_v33 = vand.u32 4294901760, %v252_v55  ;;  %v247_v25 = vand.u32 4294901760, %v246_v7 }
  0x54   :  { %v3935_v1 = vand.u32 4294901760, %v2754_v52  ;;  %v276_v51 = vsub.f32 %v2758_v59, %v3790_v40  ;;  %v3800_v27 = vand.u32 4294901760, %v2764_v3  ;;  %v3801_v44 = vand.u32 4294901760, %v2766_v4 }
  0x55   :  { %3933 = vst [vmem:[#allocation32_spill] sm:$0xff] %v2870_v28  ;;  %2171 = vmatpush1.bf16.msra.mxu0 %v2815_v57  ;;  %v259_v6 = vand.u32 4294901760, %v258_v26  ;;  %v3936_v55 = vand.u32 4294901760, %v2760_v60  ;;  %v282_v7 = vsub.f32 %v2762_v2, %v3795_v15  ;;  %v3815_v26 = vand.u32 4294901760, %v2776_v17 }
  0x56   :  { %2173 = vmatprep.subr.bf16.mxu0 %v2859_v0  ;;  %v264_v50 = vsub.f32 %v2754_v52, %v3935_v1  ;;  %v3808_v0 = vand.u32 4294901760, %v2772_v12  ;;  %v195_v1 = vand.u32 4294901760, %v194_v45  ;;  %v288_v40 = vsub.f32 %v2764_v3, %v3800_v27 }
  0x57   :  { %v270_v14 = vsub.f32 %v2760_v60, %v3936_v55  ;;  %v300_v57 = vsub.f32 %v2766_v4, %v3801_v44  ;;  %v2178_v55 = vpack.c.bf16 %v235_v63, %v223_v22  ;;  %v2180_v5 = vpack.c.bf16 %v253_v33, %v241_v11 }
  0x58   :  { %v294_v15 = vsub.f32 %v2772_v12, %v3808_v0  ;;  %v3813_v45 = vand.u32 4294901760, %v2778_v18  ;;  %v265_v53 = vand.u32 4294901760, %v264_v50  ;;  %v277_v49 = vand.u32 4294901760, %v276_v51 }
  0x59   :  { %2175 = vmatpush1.bf16.msra.mxu0 %v2870_v28  ;;  %v306_v27 = vsub.f32 %v2776_v17, %v3815_v26  ;;  %v3811_v44 = vand.u32 4294901760, %v2780_v19  ;;  %v2182_v38 = vpack.c.bf16 %v259_v6, %v247_v25  ;;  %v271_v32 = vand.u32 4294901760, %v270_v14 }
  0x5a   :  { %2177 = vmatprep.subr.bf16.mxu0 %v2176_v13  ;;  %v283_v28 = vand.u32 4294901760, %v282_v7  ;;  %v3810_v22 = vand.u32 4294901760, %v2784_v23  ;;  %v289_v11 = vand.u32 4294901760, %v288_v40  ;;  %v301_v63 = vand.u32 4294901760, %v300_v57 }
  0x5b   :  { %v295_v33 = vand.u32 4294901760, %v294_v15  ;;  %v3809_v0 = vand.u32 4294901760, %v2786_v24  ;;  %v307_v13 = vand.u32 4294901760, %v306_v27  ;;  %v312_v50 = vsub.f32 %v2778_v18, %v3813_v45 }
  0x5c   :  { %196 = vmatmul.mubr.f32.vlgmr.msra.gmra.mrb[0].mxu0 %v195_v1  ;;  %v3812_v51 = vand.u32 4294901760, %v2791_v29  ;;  %v3814_v6 = vand.u32 4294901760, %v2793_v30  ;;  %v3937_v25 = vmov 0.0   ;;  %v2184_v14 = vpack.c.bf16 %v277_v49, %v265_v53 }
  0x5d   :  { %2179 = vmatpush1.bf16.msra.mxu0 %v2178_v55  ;;  %201 = vmatprep.mubr.f32.mxu0 %v3937_v25  ;;  %v324_v40 = vsub.f32 %v2780_v19, %v3811_v44  ;;  %v318_v57 = vsub.f32 %v2784_v23, %v3810_v22  ;;  %v330_v15 = vsub.f32 %v2786_v24, %v3809_v0  ;;  %v3938_v27 = vand.u32 4294901760, %v2806_v46 }
  0x5e   :  { %2181 = vmatprep.subr.bf16.mxu0 %v2180_v5  ;;  %v336_v49 = vsub.f32 %v2791_v29, %v3812_v51  ;;  %v348_v53 = vsub.f32 %v2793_v30, %v3814_v6  ;;  %v3939_v1 = vand.u32 4294901760, %v2821_v62  ;;  %v2186_v0 = vpack.c.bf16 %v283_v28, %v271_v32 }
  0x5f   :  { %v2934_v7 = vsub.f32 %v2806_v46, %v3938_v27  ;;  %v3822_v22 = vand.u32 4294901760, %v2800_v39  ;;  %v3820_v46 = vand.u32 4294901760, %v2804_v43  ;;  %v2188_v27 = vpack.c.bf16 %v301_v63, %v289_v11 }
  0x60   :  { %v2946_v55 = vsub.f32 %v2821_v62, %v3939_v1  ;;  %v2190_v44 = vpack.c.bf16 %v307_v13, %v295_v33  ;;  %v313_v51 = vand.u32 4294901760, %v312_v50  ;;  %v3821_v45 = vand.u32 4294901760, %v2813_v56 }
  0x61   :  { %2183 = vmatpush1.bf16.msra.mxu0 %v2182_v38  ;;  %v325_v6 = vand.u32 4294901760, %v324_v40  ;;  %v319_v26 = vand.u32 4294901760, %v318_v57  ;;  %v331_v5 = vand.u32 4294901760, %v330_v15  ;;  %v3823_v21 = vand.u32 4294901760, %v2817_v58 }
  0x62   :  { %2185 = vmatprep.subr.bf16.mxu0 %v2184_v14  ;;  %v337_v62 = vand.u32 4294901760, %v336_v49  ;;  %v349_v1 = vand.u32 4294901760, %v348_v53  ;;  %v3940_v32 = vand.u32 4294901760, %v2798_v34  ;;  %v377_v38 = vand.u32 4294901760, %v2819_v61 }
  0x63   :  { %v354_v11 = vsub.f32 %v2800_v39, %v3822_v22  ;;  %v360_v63 = vsub.f32 %v2804_v43, %v3820_v46  ;;  %v383_v33 = vand.u32 4294901760, %v2861_v10  ;;  %v395_v13 = vand.u32 4294901760, %v2863_v8 }
  0x64   :  { %v342_v28 = vsub.f32 %v2798_v34, %v3940_v32  ;;  %v372_v50 = vsub.f32 %v2813_v56, %v3821_v45  ;;  %v366_v14 = vsub.f32 %v2817_v58, %v3823_v21  ;;  %v378_v40 = vsub.f32 %v2819_v61, %v377_v38 }
  0x65   :  { %2187 = vmatpush1.bf16.msra.mxu0 %v2186_v0  ;;  %v2971_v57 = vand.u32 4294901760, %v61_v20  ;;  %v2192_v15 = vpack.c.bf16 %v325_v6, %v313_v51  ;;  %v384_v49 = vsub.f32 %v2861_v10, %v383_v33  ;;  %v396_v53 = vsub.f32 %v2863_v8, %v395_v13 }
  0x66   :  { %2189 = vmatprep.subr.bf16.mxu0 %v2188_v27  ;;  %v389_v0 = vand.u32 4294901760, %v2934_v7  ;;  %v2194_v32 = vpack.c.bf16 %v331_v5, %v319_v26  ;;  %v401_v45 = vand.u32 4294901760, %v2946_v55  ;;  %v2196_v22 = vpack.c.bf16 %v349_v1, %v337_v62 }
  0x67   :  { %v2977_v46 = vsub.f32 %v61_v20, %v2971_v57  ;;  %v343_v21 = vand.u32 4294901760, %v342_v28  ;;  %v355_v9 = vand.u32 4294901760, %v354_v11  ;;  %v361_v16 = vand.u32 4294901760, %v360_v63 }
  0x68   :  { %v373_v61 = vand.u32 4294901760, %v372_v50  ;;  %v367_v27 = vand.u32 4294901760, %v366_v14  ;;  %v379_v51 = vand.u32 4294901760, %v378_v40  ;;  %v385_v8 = vand.u32 4294901760, %v384_v49 }
  0x69   :  { %2191 = vmatpush1.bf16.msra.mxu0 %v2190_v44  ;;  %v3831_v6 = vand.u32 4294901760, %v2977_v46  ;;  %v397_v10 = vand.u32 4294901760, %v396_v53  ;;  %v390_v26 = vsub.f32 %v2934_v7, %v389_v0  ;;  %v402_v20 = vsub.f32 %v2946_v55, %v401_v45 }
  0x6a   :  { %2193 = vmatprep.subr.bf16.mxu0 %v2192_v15  ;;  %v2198_v62 = vpack.c.bf16 %v355_v9, %v343_v21  ;;  %v2200_v1 = vpack.c.bf16 %v373_v61, %v361_v16  ;;  %v2202_v28 = vpack.c.bf16 %v379_v51, %v367_v27  ;;  %v3941_v14 = vand.u32 4294901760, %v2729_v31 }
  0x6b   :  { %v205_v5 = vsub.f32 %v2977_v46, %v3831_v6  ;;  %v2204_v11 = vpack.c.bf16 %v397_v10, %v385_v8  ;;  %v391_v63 = vand.u32 4294901760, %v390_v26  ;;  %v403_v50 = vand.u32 4294901760, %v402_v20 }
  0x6c   :  { %v3942_v40 = vand.u32 4294901760, %v2734_v35  ;;  %v3943_v49 = vand.u32 4294901760, %v2736_v36  ;;  %v3944_v53 = vand.u32 4294901760, %v2738_v37  ;;  %v3945_v16 = vand.u32 4294901760, %v2742_v41 }
  0x6d   :  { %2195 = vmatpush1.bf16.msra.mxu0 %v2194_v32  ;;  %v206_v44 = vand.u32 4294901760, %v205_v5  ;;  %v3946_v21 = vand.u32 4294901760, %v2744_v42  ;;  %v3947_v8 = vand.u32 4294901760, %v2747_v47  ;;  %v3948_v9 = vand.u32 4294901760, %v2749_v48 }
  0x6e   :  { %2197 = vmatprep.subr.bf16.mxu0 %v2196_v22  ;;  %v2990_v15 = vpack.c.bf16 %v3942_v40, %v3941_v14  ;;  %v2996_v32 = vpack.c.bf16 %v3944_v53, %v3943_v49  ;;  %v3949_v22 = vand.u32 4294901760, %v2754_v52  ;;  %v3950_v27 = vand.u32 4294901760, %v2758_v59 }
  0x6f   :  { %207 = vmatmul.mubr.f32.gmra.mrb[2].mxu0 %v206_v44  ;;  %v3002_v61 = vpack.c.bf16 %v3946_v21, %v3945_v16  ;;  %v3008_v10 = vpack.c.bf16 %v3948_v9, %v3947_v8  ;;  %v3951_v26 = vand.u32 4294901760, %v2760_v60  ;;  %v3952_v20 = vand.u32 4294901760, %v2762_v2 }
  0x70   :  { %437 = vmatprep.mubr.f32.mxu0 %v3937_v25  ;;  %v3015_v51 = vpack.c.bf16 %v3950_v27, %v3949_v22  ;;  %v3953_v44 = vand.u32 4294901760, %v2764_v3  ;;  %v3954_v14 = vand.u32 4294901760, %v2766_v4  ;;  %v3955_v49 = vand.u32 4294901760, %v2772_v12 }
  0x71   :  { %v3021_v5 = vpack.c.bf16 %v3952_v20, %v3951_v26  ;;  %v3956_v53 = vand.u32 4294901760, %v2776_v17  ;;  %2199 = vmatpush1.bf16.msra.mxu0 %v2198_v62  ;;  %v3957_v21 = vand.u32 4294901760, %v2778_v18  ;;  %v3958_v8 = vand.u32 4294901760, %v2780_v19 }
  0x72   :  { %v3027_v40 = vpack.c.bf16 %v3954_v14, %v3953_v44  ;;  %v3959_v22 = vand.u32 4294901760, %v2784_v23  ;;  %v3960_v27 = vand.u32 4294901760, %v2786_v24  ;;  %v3962_v20 = vand.u32 4294901760, %v2791_v29  ;;  %2201 = vmatprep.subr.bf16.mxu0 %v2200_v1 }
  0x73   :  { %v3033_v16 = vpack.c.bf16 %v3956_v53, %v3955_v49  ;;  %v3039_v9 = vpack.c.bf16 %v3958_v8, %v3957_v21  ;;  %v3963_v44 = vand.u32 4294901760, %v2793_v30  ;;  %v3964_v62 = vand.u32 4294901760, %v2798_v34 }
  0x74   :  { %v3045_v26 = vpack.c.bf16 %v3960_v27, %v3959_v22  ;;  %v3965_v49 = vand.u32 4294901760, %v2800_v39  ;;  %v3966_v21 = vand.u32 4294901760, %v2804_v43  ;;  %v3967_v8 = vand.u32 4294901760, %v2813_v56 }
  0x75   :  { %v3051_v14 = vpack.c.bf16 %v3963_v44, %v3962_v20  ;;  %v3968_v22 = vand.u32 4294901760, %v2817_v58  ;;  %v3071_v20 = vpack.c.bf16 %v401_v45, %v389_v0  ;;  %2203 = vmatpush1.bf16.msra.mxu0 %v2202_v28  ;;  %v2206_v44 = vpack.c.bf16 %v403_v50, %v391_v63 }
  0x76   :  { %3961 = vst [vmem:[#allocation33_spill] sm:$0xff] %v3045_v26  ;;  %v3057_v53 = vpack.c.bf16 %v3965_v49, %v3964_v62  ;;  %v3063_v6 = vpack.c.bf16 %v3967_v8, %v3966_v21  ;;  %v3069_v26 = vpack.c.bf16 %v395_v13, %v383_v33  ;;  %2205 = vmatprep.subr.bf16.mxu0 %v2204_v11  ;;  %v3987_v33 = vld [vmem:[#allocation29_spill] sm:$0xff]  ;;  %v3988_v13 = vld [vmem:[#allocation32_spill] sm:$0xff]  ;;  %v3990_v28 = vand.u32 4294901760, %v2977_v46 }
  0x77   :  { %v3067_v27 = vpack.c.bf16 %v377_v38, %v3968_v22  ;;  %v2208_v1 = vpack.c.bf16 %v2734_v35, %v2729_v31  ;;  %v2210_v62 = vpack.c.bf16 %v2738_v37, %v2736_v36  ;;  %v2212_v49 = vpack.c.bf16 %v2744_v42, %v2742_v41  ;;  %v3986_v38 = vld [vmem:[#allocation26_spill] sm:$0xff]  ;;  %v3224_v8 = vld [vmem:[#allocation8 + $0xa0] sm:$0xff]  ;;  %v3226_v22 = vld [vmem:[#allocation8 + $0xa8] sm:$0xff] }
  0x78   :  { %v2214_v45 = vpack.c.bf16 %v2749_v48, %v2747_v47  ;;  %v2216_v31 = vpack.c.bf16 %v2758_v59, %v2754_v52  ;;  %v2218_v35 = vpack.c.bf16 %v2762_v2, %v2760_v60  ;;  %v2220_v36 = vpack.c.bf16 %v2766_v4, %v2764_v3  ;;  %v3969_v59 = vld [vmem:[#allocation27_spill] sm:$0xff]  ;;  %v3970_v2 = vld [vmem:[#allocation30_spill] sm:$0xff] }
  0x79   :  { %2207 = vmatpush1.bf16.msra.mxu0 %v2206_v44  ;;  %v2222_v37 = vpack.c.bf16 %v2776_v17, %v2772_v12  ;;  %v2224_v41 = vpack.c.bf16 %v2780_v19, %v2778_v18  ;;  %v2226_v42 = vpack.c.bf16 %v2786_v24, %v2784_v23  ;;  %v2228_v47 = vpack.c.bf16 %v2793_v30, %v2791_v29  ;;  %v3971_v3 = vld [vmem:[#allocation31_spill] sm:$0xff]  ;;  %v3972_v17 = vld [vmem:[#allocation13_spill] sm:$0xff]  ;;  %v3973_v18 = vld [vmem:[#allocation28_spill] sm:$0xff] }
  0x7a   :  { %2209 = vmatprep.subr.bf16.mxu0 %v2208_v1  ;;  %v2230_v48 = vpack.c.bf16 %v2800_v39, %v2798_v34  ;;  %v2232_v52 = vpack.c.bf16 %v2813_v56, %v2804_v43  ;;  %v2234_v60 = vpack.c.bf16 %v3969_v59, %v2817_v58  ;;  %v2236_v4 = vpack.c.bf16 %v3971_v3, %v3970_v2  ;;  %v3974_v19 = vld [vmem:[#allocation14_spill] sm:$0xff]  ;;  %v3975_v23 = vld [vmem:[#allocation15_spill] sm:$0xff]  ;;  %v3976_v24 = vld [vmem:[#allocation16_spill] sm:$0xff] }
  0x7b   :  { %v2238_v12 = vpack.c.bf16 %v2946_v55, %v2934_v7  ;;  %v3977_v29 = vld [vmem:[#allocation17_spill] sm:$0xff]  ;;  %v3978_v30 = vld [vmem:[#allocation18_spill] sm:$0xff]  ;;  %v3979_v34 = vld [vmem:[#allocation19_spill] sm:$0xff]  ;;  %v3989_v0 = vand.u32 4294901760, %v3973_v18 }
  0x7c   :  { %439 = vmatmul.mubr.f32.vlgmr.msra.gmra.mrb[0].mxu0 %v2810_v54  ;;  %v3980_v39 = vld [vmem:[#allocation20_spill] sm:$0xff]  ;;  %v3981_v43 = vld [vmem:[#allocation21_spill] sm:$0xff]  ;;  %v3982_v56 = vld [vmem:[#allocation22_spill] sm:$0xff] }
  0x7d   :  { %2211 = vmatpush1.bf16.msra.mxu0 %v2210_v62  ;;  %444 = vmatprep.mubr.f32.mxu0 %v3937_v25  ;;  %v3983_v58 = vld [vmem:[#allocation23_spill] sm:$0xff]  ;;  %v3984_v7 = vld [vmem:[#allocation24_spill] sm:$0xff]  ;;  %v3985_v55 = vld [vmem:[#allocation25_spill] sm:$0xff] }
  0x7e   :  { %2213 = vmatprep.subr.bf16.mxu0 %v2212_v49  ;;  %v3991_v11 = vld [vmem:[#allocation33_spill] sm:$0xff]  ;;  %v3231_v44 = vld [vmem:[#allocation8 + $0x20] sm:$0xff] }
  0x7f   :  { %v3233_v1 = vld [vmem:[#allocation8 + $0x28] sm:$0xff]  ;;  %v3833_v62 = vand.u32 4294901760, %v3231_v44  ;;  %v1047_v2 = vld [vmem:[#allocation8 + $0xc0] sm:$0xff] }
  0x80   :  { %446 = vmatmul.mubr.f32.gmra.mrb[2].mxu0 %v2971_v57  ;;  %v3832_v49 = vand.u32 4294901760, %v3233_v1  ;;  %v1048_v3 = vld [vmem:[#allocation8 + $0xc8] sm:$0xff] }
  0x81   :  { %2215 = vmatpush1.bf16.msra.mxu0 %v2214_v45  ;;  %580 = vmatprep.mubr.f32.mxu0 %v3937_v25 }
  0x82   :  { %2217 = vmatprep.subr.bf16.mxu0 %v2216_v31  ;;  %v3248_v31 = vpack.c.bf16 %v3832_v49, %v3833_v62  ;;  %v1035_v49 = vld [vmem:[#allocation8 + $0x60] sm:$0xff]  ;;  %v1036_v62 = vld [vmem:[#allocation8 + $0x68] sm:$0xff] }
  0x84   :  { %3997 = vst [vmem:[#allocation14_spill] sm:$0xff] %v3248_v31 }
  0x85   :  { %2219 = vmatpush1.bf16.msra.mxu0 %v2218_v35  ;;  %v1045_v35 = vld [vmem:[#allocation8 + $0xb0] sm:$0xff] }
  0x86   :  { %2221 = vmatprep.subr.bf16.mxu0 %v2220_v36  ;;  %v1046_v36 = vld [vmem:[#allocation8 + $0xb8] sm:$0xff] }
  0x89   :  { %2223 = vmatpush1.bf16.msra.mxu0 %v2222_v37  ;;  %v1122_v37 = vand.u32 4294901760, %v1045_v35 }
  0x8a   :  { %2225 = vmatprep.subr.bf16.mxu0 %v2224_v41  ;;  %v1125_v41 = vand.u32 4294901760, %v1046_v36 }
  0x8c   :  { %v3252_v59 = vpack.c.bf16 %v1125_v41, %v1122_v37 }
  0x8d   :  { %2227 = vmatpush1.bf16.msra.mxu0 %v2226_v42  ;;  %v1029_v42 = vld [vmem:[#allocation8 + $0x30] sm:$0xff] }
  0x8e   :  { %2229 = vmatprep.subr.bf16.mxu0 %v2228_v47  ;;  %v1030_v47 = vld [vmem:[#allocation8 + $0x38] sm:$0xff]  ;;  %3998 = vst [vmem:[#allocation15_spill] sm:$0xff] %v3252_v59 }
  0x91   :  { %2231 = vmatpush1.bf16.msra.mxu0 %v2230_v48  ;;  %v1074_v48 = vand.u32 4294901760, %v1029_v42 }
  0x92   :  { %2233 = vmatprep.subr.bf16.mxu0 %v2232_v52  ;;  %v1077_v52 = vand.u32 4294901760, %v1030_v47 }
  0x95   :  { %2235 = vmatpush1.bf16.msra.mxu0 %v2234_v60  ;;  %v3254_v60 = vpack.c.bf16 %v1077_v52, %v1074_v48 }
  0x96   :  { %2237 = vmatprep.subr.bf16.mxu0 %v2236_v4  ;;  %v1128_v4 = vand.u32 4294901760, %v1047_v2 }
  0x97   :  { %3999 = vst [vmem:[#allocation16_spill] sm:$0xff] %v3254_v60 }
  0x99   :  { %2239 = vmatpush1.bf16.msra.mxu0 %v2238_v12  ;;  %v1131_v12 = vand.u32 4294901760, %v1048_v3 }
  0x9a   :  { %2241 = vmatprep.subr.bf16.mxu0 %v3972_v17 }
  0x9c   :  { %583 = vmatmul.mubr.f32.vlgmr.msra.gmra.mrb[0].mxu0 %v3973_v18  ;;  %v1032_v18 = vld [vmem:[#allocation8 + $0x48] sm:$0xff] }
  0x9d   :  { %2243 = vmatpush1.bf16.msra.mxu0 %v3974_v19  ;;  %588 = vmatprep.mubr.f32.mxu0 %v3937_v25 }
  0x9e   :  { %2245 = vmatprep.subr.bf16.mxu0 %v3975_v23 }
  0xa0   :  { %591 = vmatmul.mubr.f32.gmra.mrb[2].mxu0 %v2977_v46  ;;  %v3174_v46 = vld [vmem:[#allocation8 + $0x80] sm:$0xff] }
  0xa1   :  { %2247 = vmatpush1.bf16.msra.mxu0 %v3976_v24  ;;  %693 = vmatprep.mubr.f32.mxu0 %v3937_v25  ;;  %v1104_v63 = vand.u32 4294901760, %v3174_v46 }
  0xa2   :  { %2249 = vmatprep.subr.bf16.mxu0 %v3977_v29 }
  0xa5   :  { %2251 = vmatpush1.bf16.msra.mxu0 %v3978_v30 }
  0xa6   :  { %2253 = vmatprep.subr.bf16.mxu0 %v3979_v34 }
  0xa9   :  { %2255 = vmatpush1.bf16.msra.mxu0 %v3980_v39 }
  0xaa   :  { %2257 = vmatprep.subr.bf16.mxu0 %v3981_v43 }
  0xad   :  { %2259 = vmatpush1.bf16.msra.mxu0 %v3982_v56 }
  0xae   :  { %2261 = vmatprep.subr.bf16.mxu0 %v3983_v58 }
  0xb1   :  { %2263 = vmatpush1.bf16.msra.mxu0 %v3984_v7 }
  0xb2   :  { %2265 = vmatprep.subr.bf16.mxu0 %v3985_v55 }
  0xb5   :  { %2267 = vmatpush1.bf16.msra.mxu0 %v3986_v38 }
  0xb6   :  { %2269 = vmatprep.subr.bf16.mxu0 %v3987_v33 }
  0xb9   :  { %2271 = vmatpush1.bf16.msra.mxu0 %v3988_v13 }
  0xba   :  { %2273 = vmatprep.subr.bf16.mxu0 %v2990_v15  ;;  %v3180_v15 = vld [vmem:[#allocation8] sm:$0xff] }
  0xbc   :  { %697 = vmatmul.mubr.f32.vlgmr.msra.gmra.mrb[0].mxu0 %v3989_v0  ;;  %v1052_v0 = vld [vmem:[#allocation8 + $0xe8] sm:$0xff] }
  0xbd   :  { %2275 = vmatpush1.bf16.msra.mxu0 %v2996_v32  ;;  %702 = vmatprep.mubr.f32.mxu0 %v3937_v25  ;;  %v3182_v32 = vld [vmem:[#allocation8 + $0x8] sm:$0xff] }
  0xbe   :  { %2277 = vmatprep.subr.bf16.mxu0 %v3002_v61  ;;  %v1056_v61 = vand.u32 4294901760, %v3180_v15 }
  0xc0   :  { %706 = vmatmul.mubr.f32.gmra.mrb[2].mxu0 %v3990_v28 }
  0xc1   :  { %2279 = vmatpush1.bf16.msra.mxu0 %v3008_v10  ;;  %872 = vmatprep.mubr.f32.mxu0 %v3937_v25  ;;  %v3198_v10 = vld [vmem:[#allocation8 + $0x90] sm:$0xff] }
  0xc2   :  { %2281 = vmatprep.subr.bf16.mxu0 %v3015_v51  ;;  %v3200_v51 = vld [vmem:[#allocation8 + $0x98] sm:$0xff] }
  0xc5   :  { %2283 = vmatpush1.bf16.msra.mxu0 %v3021_v5  ;;  %v3839_v5 = vand.u32 4294901760, %v3198_v10 }
  0xc6   :  { %2285 = vmatprep.subr.bf16.mxu0 %v3027_v40  ;;  %v3838_v40 = vand.u32 4294901760, %v3200_v51 }
  0xc9   :  { %2287 = vmatpush1.bf16.msra.mxu0 %v3033_v16  ;;  %v3205_v16 = vld [vmem:[#allocation8 + $0x10] sm:$0xff] }
  0xca   :  { %2289 = vmatprep.subr.bf16.mxu0 %v3039_v9  ;;  %v3207_v9 = vld [vmem:[#allocation8 + $0x18] sm:$0xff] }
  0xcd   :  { %2291 = vmatpush1.bf16.msra.mxu0 %v3991_v11  ;;  %v1143_v11 = vand.u32 4294901760, %v1052_v0 }
  0xce   :  { %2293 = vmatprep.subr.bf16.mxu0 %v3051_v14  ;;  %v3836_v14 = vand.u32 4294901760, %v3207_v9 }
  0xd1   :  { %2295 = vmatpush1.bf16.msra.mxu0 %v3057_v53  ;;  %v3216_v53 = vpack.c.bf16 %v3838_v40, %v3839_v5  ;;  %v3285_v5 = vsub.f32 %v3180_v15, %v1056_v61  ;;  %v4008_v15 = vand.u32 4294901760, %v3205_v16 }
  0xd2   :  { %2297 = vmatprep.subr.bf16.mxu0 %v3063_v6  ;;  %v3176_v6 = vld [vmem:[#allocation8 + $0x88] sm:$0xff] }
  0xd3   :  { %v1107_v50 = vand.u32 4294901760, %v3176_v6  ;;  %3994 = vst [vmem:[#allocation31_spill] sm:$0xff] %v3216_v53 }
  0xd5   :  { %2299 = vmatpush1.bf16.msra.mxu0 %v3067_v27  ;;  %v3835_v27 = vand.u32 4294901760, %v3224_v8  ;;  %v3280_v40 = vsub.f32 %v3176_v6, %v1107_v50  ;;  %v4007_v6 = vand.u32 4294901760, %v3200_v51 }
  0xd6   :  { %2301 = vmatprep.subr.bf16.mxu0 %v3069_v26  ;;  %v3837_v26 = vand.u32 4294901760, %v3205_v16 }
  0xd8   :  { %v3222_v21 = vpack.c.bf16 %v3836_v14, %v3837_v26  ;;  %v3273_v14 = vsub.f32 %v3174_v46, %v1104_v63  ;;  %v4006_v46 = vand.u32 4294901760, %v3198_v10 }
  0xd9   :  { %2303 = vmatpush1.bf16.msra.mxu0 %v3071_v20  ;;  %v3834_v20 = vand.u32 4294901760, %v3226_v22 }
  0xda   :  { %2305 = vmatprep.subr.bf16.mxu0 %v3972_v17  ;;  %3995 = vst [vmem:[#allocation13_spill] sm:$0xff] %v3222_v21  ;;  %v1031_v17 = vld [vmem:[#allocation8 + $0x40] sm:$0xff] }
  0xdb   :  { %v3242_v45 = vpack.c.bf16 %v3834_v20, %v3835_v27  ;;  %v1092_v20 = vand.u32 4294901760, %v1035_v49  ;;  %v1095_v27 = vand.u32 4294901760, %v1036_v62 }
  0xdc   :  { %874 = vmatmul.mubr.f32.vlgmr.msra.gmra.mrb[0].mxu0 %v2810_v54 }
  0xdd   :  { %2307 = vmatpush1.bf16.msra.mxu0 %v3974_v19  ;;  %879 = vmatprep.mubr.f32.mxu0 %v3937_v25  ;;  %3996 = vst [vmem:[#allocation28_spill] sm:$0xff] %v3242_v45  ;;  %v1080_v19 = vand.u32 4294901760, %v1031_v17 }
  0xde   :  { %2309 = vmatprep.subr.bf16.mxu0 %v3975_v23  ;;  %v1083_v23 = vand.u32 4294901760, %v1032_v18 }
  0xe0   :  { %881 = vmatmul.mubr.f32.gmra.mrb[2].mxu0 %v2971_v57 }
  0xe1   :  { %2311 = vmatpush1.bf16.msra.mxu0 %v3976_v24  ;;  %983 = vmatprep.mubr.f32.mxu0 %v3937_v25  ;;  %v3258_v24 = vpack.c.bf16 %v1131_v12, %v1128_v4 }
  0xe2   :  { %2313 = vmatprep.subr.bf16.mxu0 %v3977_v29  ;;  %v3260_v29 = vpack.c.bf16 %v1083_v23, %v1080_v19 }
  0xe3   :  { %4000 = vst [vmem:[#allocation17_spill] sm:$0xff] %v3258_v24 }
  0xe4   :  { %4001 = vst [vmem:[#allocation18_spill] sm:$0xff] %v3260_v29 }
  0xe5   :  { %2315 = vmatpush1.bf16.msra.mxu0 %v3978_v30  ;;  %v1049_v30 = vld [vmem:[#allocation8 + $0xd0] sm:$0xff] }
  0xe6   :  { %2317 = vmatprep.subr.bf16.mxu0 %v3979_v34  ;;  %v1050_v34 = vld [vmem:[#allocation8 + $0xd8] sm:$0xff] }
  0xe9   :  { %2319 = vmatpush1.bf16.msra.mxu0 %v3980_v39  ;;  %v1134_v39 = vand.u32 4294901760, %v1049_v30 }
  0xea   :  { %2321 = vmatprep.subr.bf16.mxu0 %v3981_v43  ;;  %v1137_v43 = vand.u32 4294901760, %v1050_v34 }
  0xed   :  { %2323 = vmatpush1.bf16.msra.mxu0 %v3982_v56  ;;  %v1033_v56 = vld [vmem:[#allocation8 + $0x50] sm:$0xff] }
  0xee   :  { %2325 = vmatprep.subr.bf16.mxu0 %v3983_v58  ;;  %v1034_v58 = vld [vmem:[#allocation8 + $0x58] sm:$0xff] }
  0xf1   :  { %2327 = vmatpush1.bf16.msra.mxu0 %v3984_v7  ;;  %v1086_v7 = vand.u32 4294901760, %v1033_v56 }
  0xf2   :  { %2329 = vmatprep.subr.bf16.mxu0 %v3985_v55  ;;  %v1089_v55 = vand.u32 4294901760, %v1034_v58 }
  0xf5   :  { %2331 = vmatpush1.bf16.msra.mxu0 %v3986_v38  ;;  %v3264_v38 = vpack.c.bf16 %v1137_v43, %v1134_v39 }
  0xf6   :  { %2333 = vmatprep.subr.bf16.mxu0 %v3987_v33  ;;  %v3266_v33 = vpack.c.bf16 %v1089_v55, %v1086_v7 }
  0xf7   :  { %4002 = vst [vmem:[#allocation19_spill] sm:$0xff] %v3264_v38 }
  0xf8   :  { %4003 = vst [vmem:[#allocation20_spill] sm:$0xff] %v3266_v33 }
  0xf9   :  { %2335 = vmatpush1.bf16.msra.mxu0 %v3988_v13  ;;  %v1051_v13 = vld [vmem:[#allocation8 + $0xe0] sm:$0xff] }
  0xfa   :  { %v1140_v28 = vand.u32 4294901760, %v1051_v13 }
  0xfc   :  { %985 = vmatmul.mubr.f32.vlgmr.msra.gmra.mrb[0].mxu0 %v2810_v54  ;;  %v1059_v54 = vand.u32 4294901760, %v3182_v32  ;;  %v3275_v26 = vpack.c.bf16 %v1143_v11, %v1140_v28 }
  0xfd   :  { %990 = vmatprep.mubr.f32.mxu0 %v3937_v25  ;;  %v3190_v25 = vpack.c.bf16 %v1107_v50, %v1104_v63  ;;  %v3297_v63 = vsub.f32 %v3198_v10, %v4006_v46  ;;  %v3302_v50 = vsub.f32 %v3200_v51, %v4007_v6  ;;  %v4010_v10 = vand.u32 4294901760, %v3224_v8 }
  0xfe   :  { %4004 = vst [vmem:[#allocation21_spill] sm:$0xff] %v3275_v26  ;;  %v4011_v51 = vand.u32 4294901760, %v3226_v22 }
  0xff   :  { %3992 = vst [vmem:[#allocation27_spill] sm:$0xff] %v3190_v25  ;;  %2337 = vmatprep.subr.bf16.mxu1 %v3190_v25  ;;  %v3318_v46 = vsub.f32 %v3224_v8, %v4010_v10  ;;  %v3338_v8 = vsub.f32 %v1046_v36, %v1125_v41  ;;  %v3340_v10 = vsub.f32 %v1029_v42, %v1074_v48 }
 0x100   :  { %992 = vmatmul.mubr.f32.gmra.mrb[2].mxu0 %v2971_v57  ;;  %v3196_v57 = vpack.c.bf16 %v1059_v54, %v1056_v61  ;;  %v3307_v61 = vsub.f32 %v3205_v16, %v4008_v15  ;;  %v3323_v6 = vsub.f32 %v3226_v22, %v4011_v51  ;;  %v4012_v16 = vand.u32 4294901760, %v3231_v44  ;;  %v1053_v51 = vld [vmem:[#allocation8 + $0xf0] sm:$0xff] }
 0x101   :  { %v3342_v22 = vsub.f32 %v1030_v47, %v1077_v52  ;;  %v3354_v36 = vsub.f32 %v1050_v34, %v1137_v43  ;;  %v3358_v41 = vsub.f32 %v1034_v58, %v1089_v55  ;;  %v3360_v42 = vsub.f32 %v1051_v13, %v1140_v28 }
 0x102   :  { %3993 = vst [vmem:[#allocation30_spill] sm:$0xff] %v3196_v57  ;;  %2339 = vmatpush3.bf16.msra.mxu1 %v3196_v57  ;;  %v3328_v15 = vsub.f32 %v3231_v44, %v4012_v16  ;;  %v3346_v44 = vsub.f32 %v1048_v3, %v1131_v12  ;;  %v3348_v16 = vsub.f32 %v1031_v17, %v1080_v19  ;;  %v3869_v17 = vand.u32 4294901760, %v3273_v14 }
 0x103   :  { %2341 = vmatprep.subr.bf16.mxu1 %v3216_v53  ;;  %v3362_v47 = vsub.f32 %v1052_v0, %v1143_v11  ;;  %v3364_v48 = vsub.f32 %v1035_v49, %v1092_v20  ;;  %v3366_v52 = vsub.f32 %v1036_v62, %v1095_v27  ;;  %v3863_v19 = vand.u32 4294901760, %v3285_v5 }
 0x104   :  { %v3853_v55 = vand.u32 4294901760, %v3302_v50  ;;  %v3854_v0 = vand.u32 4294901760, %v3307_v61 }
 0x106   :  { %2343 = vmatpush3.bf16.msra.mxu1 %v3222_v21 }
 0x107   :  { %2345 = vmatprep.subr.bf16.mxu1 %v3242_v45 }
 0x10a   :  { %2347 = vmatpush3.bf16.msra.mxu1 %v3248_v31 }
 0x10b   :  { %2349 = vmatprep.subr.bf16.mxu1 %v3252_v59 }
 0x10e   :  { %2351 = vmatpush3.bf16.msra.mxu1 %v3254_v60 }
 0x10f   :  { %2353 = vmatprep.subr.bf16.mxu1 %v3258_v24  ;;  %v3350_v24 = vsub.f32 %v1032_v18, %v1083_v23  ;;  %v3864_v18 = vand.u32 4294901760, %v3280_v40 }
 0x111   :  { %v1290_v43 = vsub.f32 %v3280_v40, %v3864_v18 }
 0x112   :  { %2355 = vmatpush3.bf16.msra.mxu1 %v3260_v29  ;;  %v3344_v29 = vsub.f32 %v1047_v2, %v1128_v4  ;;  %v1146_v2 = vand.u32 4294901760, %v1053_v51 }
 0x113   :  { %2357 = vmatprep.subr.bf16.mxu1 %v3264_v38  ;;  %v3292_v38 = vpack.c.bf16 %v1095_v27, %v1092_v20  ;;  %v1291_v13 = vand.u32 4294901760, %v1290_v43 }
 0x114   :  { %v3374_v34 = vsub.f32 %v1053_v51, %v1146_v2 }
 0x115   :  { %4005 = vst [vmem:[#allocation22_spill] sm:$0xff] %v3292_v38 }
 0x116   :  { %2359 = vmatpush3.bf16.msra.mxu1 %v3266_v33  ;;  %v3290_v33 = vsub.f32 %v3182_v32, %v1059_v54  ;;  %v4009_v32 = vand.u32 4294901760, %v3207_v9  ;;  %4015 = vst [vmem:[#allocation24_spill] sm:$0xff] %v3374_v34 }
 0x117   :  { %2361 = vmatprep.subr.bf16.mxu1 %v3275_v26  ;;  %v3336_v26 = vsub.f32 %v1045_v35, %v1122_v37  ;;  %v3352_v35 = vsub.f32 %v1049_v30, %v1134_v39  ;;  %v3356_v37 = vsub.f32 %v1033_v56, %v1086_v7  ;;  %v1283_v39 = vsub.f32 %v3273_v14, %v3869_v17 }
 0x118   :  { %v3312_v54 = vsub.f32 %v3207_v9, %v4009_v32  ;;  %v4013_v9 = vand.u32 4294901760, %v3233_v1  ;;  %v3859_v23 = vand.u32 4294901760, %v3290_v33  ;;  %v1171_v56 = vsub.f32 %v3285_v5, %v3863_v19 }
 0x119   :  { %v3852_v7 = vand.u32 4294901760, %v3297_v63  ;;  %v3868_v19 = vand.u32 4294901760, %v3346_v44 }
 0x11a   :  { %v3333_v32 = vsub.f32 %v3233_v1, %v4013_v9  ;;  %2363 = vmatpush3.bf16.msra.mxu1 %v3292_v38  ;;  %v1054_v1 = vld [vmem:[#allocation8 + $0xf8] sm:$0xff]  ;;  %v1037_v9 = vld [vmem:[#allocation8 + $0x70] sm:$0xff]  ;;  %v1178_v58 = vsub.f32 %v3290_v33, %v3859_v23  ;;  %v3858_v28 = vand.u32 4294901760, %v3312_v54  ;;  %v1172_v11 = vand.u32 4294901760, %v1171_v56 }
 0x11b   :  { %v1038_v38 = vld [vmem:[#allocation8 + $0x78] sm:$0xff]  ;;  %v1149_v3 = vand.u32 4294901760, %v1054_v1  ;;  %v1098_v4 = vand.u32 4294901760, %v1037_v9 }
 0x11c   :  { %v1101_v12 = vand.u32 4294901760, %v1038_v38  ;;  %v1179_v51 = vand.u32 4294901760, %v1178_v58  ;;  %v3856_v58 = vand.u32 4294901760, %v3323_v6 }
 0x11d   :  { %v3372_v30 = vpack.c.bf16 %v1149_v3, %v1146_v2  ;;  %v3376_v20 = vsub.f32 %v1054_v1, %v1149_v3  ;;  %v3380_v62 = vsub.f32 %v1037_v9, %v1098_v4  ;;  %v1297_v1 = vsub.f32 %v3297_v63, %v3852_v7 }
 0x11e   :  { %v3378_v27 = vpack.c.bf16 %v1101_v12, %v1098_v4  ;;  %v3382_v49 = vsub.f32 %v1038_v38, %v1101_v12  ;;  %v1284_v38 = vand.u32 4294901760, %v1283_v39  ;;  %v1304_v9 = vsub.f32 %v3302_v50, %v3853_v55 }
 0x11f   :  { %4014 = vst [vmem:[#allocation23_spill] sm:$0xff] %v3372_v30  ;;  %4016 = vst [vmem:[#allocation25_spill] sm:$0xff] %v3376_v20  ;;  %2365 = vmatprep.subr.bf16.mxu1 %v3372_v30  ;;  %v1185_v3 = vsub.f32 %v3307_v61, %v3854_v0  ;;  %v1192_v4 = vsub.f32 %v3312_v54, %v3858_v28  ;;  %v3855_v12 = vand.u32 4294901760, %v3318_v46  ;;  %v1298_v43 = vand.u32 4294901760, %v1297_v1 }
 0x120   :  { %4017 = vst [vmem:[#allocation26_spill] sm:$0xff] %v3378_v27  ;;  %4018 = vst [vmem:[#allocation29_spill] sm:$0xff] %v3380_v62  ;;  %2367 = vmatpush3.bf16.msra.mxu1 %v3378_v27  ;;  %v2368_v2 = vpack.c.bf16 %v1291_v13, %v1284_v38  ;;  %v3415_v39 = vpack.c.bf16 %v1179_v51, %v1172_v11  ;;  %v1305_v56 = vand.u32 4294901760, %v1304_v9  ;;  %v3857_v13 = vand.u32 4294901760, %v3328_v15 }
 0x121   :  { %4019 = vst [vmem:[#allocation32_spill] sm:$0xff] %v3382_v49  ;;  %v1186_v7 = vand.u32 4294901760, %v1185_v3  ;;  %v1193_v55 = vand.u32 4294901760, %v1192_v4  ;;  %v1311_v38 = vsub.f32 %v3318_v46, %v3855_v12  ;;  %v1318_v11 = vsub.f32 %v3323_v6, %v3856_v58 }
 0x122   :  { %2369 = vmatprep.subr.bf16.mxu1 %v2368_v2  ;;  %v3422_v0 = vpack.c.bf16 %v1305_v56, %v1298_v43  ;;  %v3860_v51 = vand.u32 4294901760, %v3333_v32  ;;  %v3861_v1 = vand.u32 4294901760, %v3336_v26  ;;  %v1199_v3 = vsub.f32 %v3328_v15, %v3857_v13 }
 0x123   :  { %v3429_v9 = vpack.c.bf16 %v1193_v55, %v1186_v7  ;;  %v1312_v2 = vand.u32 4294901760, %v1311_v38  ;;  %v3862_v4 = vand.u32 4294901760, %v3338_v8  ;;  %v1319_v12 = vand.u32 4294901760, %v1318_v11 }
 0x124   :  { %v1206_v43 = vsub.f32 %v3333_v32, %v3860_v51  ;;  %v1325_v56 = vsub.f32 %v3336_v26, %v3861_v1  ;;  %v3865_v58 = vand.u32 4294901760, %v3340_v10  ;;  %v1200_v7 = vand.u32 4294901760, %v1199_v3 }
 0x125   :  { %v1332_v55 = vsub.f32 %v3338_v8, %v3862_v4  ;;  %v3866_v38 = vand.u32 4294901760, %v3342_v22  ;;  %v3867_v13 = vand.u32 4294901760, %v3344_v29  ;;  %v3447_v11 = vpack.c.bf16 %v1319_v12, %v1312_v2 }
 0x126   :  { %v1207_v28 = vand.u32 4294901760, %v1206_v43  ;;  %v1326_v23 = vand.u32 4294901760, %v1325_v56  ;;  %v1213_v51 = vsub.f32 %v3340_v10, %v3865_v58  ;;  %v3870_v2 = vand.u32 4294901760, %v3348_v16 }
 0x127   :  { %v1333_v1 = vand.u32 4294901760, %v1332_v55  ;;  %v1220_v3 = vsub.f32 %v3342_v22, %v3866_v38  ;;  %v1339_v4 = vsub.f32 %v3344_v29, %v3867_v13  ;;  %v3871_v43 = vand.u32 4294901760, %v3350_v24 }
 0x128   :  { %v3459_v18 = vpack.c.bf16 %v1207_v28, %v1200_v7  ;;  %v1214_v12 = vand.u32 4294901760, %v1213_v51  ;;  %v1346_v38 = vsub.f32 %v3346_v44, %v3868_v19  ;;  %v1227_v13 = vsub.f32 %v3348_v16, %v3870_v2 }
 0x129   :  { %v3463_v56 = vpack.c.bf16 %v1333_v1, %v1326_v23  ;;  %v1221_v55 = vand.u32 4294901760, %v1220_v3  ;;  %v1340_v58 = vand.u32 4294901760, %v1339_v4  ;;  %v1234_v28 = vsub.f32 %v3350_v24, %v3871_v43 }
 0x12a   :  { %v3874_v51 = vand.u32 4294901760, %v3352_v35  ;;  %v3879_v7 = vand.u32 4294901760, %v3354_v36  ;;  %v1347_v1 = vand.u32 4294901760, %v1346_v38  ;;  %v3880_v4 = vand.u32 4294901760, %v3356_v37 }
 0x12b   :  { %v3476_v23 = vpack.c.bf16 %v1221_v55, %v1214_v12  ;;  %v3881_v3 = vand.u32 4294901760, %v3358_v41  ;;  %v1228_v19 = vand.u32 4294901760, %v1227_v13  ;;  %v1235_v17 = vand.u32 4294901760, %v1234_v28 }
 0x12c   :  { %v1353_v2 = vsub.f32 %v3352_v35, %v3874_v51  ;;  %v1360_v43 = vsub.f32 %v3354_v36, %v3879_v7  ;;  %v3486_v27 = vpack.c.bf16 %v1347_v1, %v1340_v58  ;;  %v1241_v38 = vsub.f32 %v3356_v37, %v3880_v4 }
 0x12d   :  { %v1248_v12 = vsub.f32 %v3358_v41, %v3881_v3  ;;  %v3882_v13 = vand.u32 4294901760, %v3360_v42  ;;  %v3495_v55 = vpack.c.bf16 %v1235_v17, %v1228_v19  ;;  %v3883_v30 = vand.u32 4294901760, %v3362_v47 }
 0x12e   :  { %v1354_v28 = vand.u32 4294901760, %v1353_v2  ;;  %v1361_v51 = vand.u32 4294901760, %v1360_v43  ;;  %v1242_v60 = vand.u32 4294901760, %v1241_v38  ;;  %v3884_v1 = vand.u32 4294901760, %v3364_v48 }
 0x12f   :  { %v1249_v7 = vand.u32 4294901760, %v1248_v12  ;;  %v1367_v58 = vsub.f32 %v3360_v42, %v3882_v13  ;;  %v1374_v3 = vsub.f32 %v3362_v47, %v3883_v30  ;;  %v3887_v17 = vand.u32 4294901760, %v3366_v52 }
 0x130   :  { %v3502_v4 = vpack.c.bf16 %v1361_v51, %v1354_v28  ;;  %v3890_v19 = vand.u32 4294901760, %v3374_v34  ;;  %v1255_v38 = vsub.f32 %v3364_v48, %v3884_v1  ;;  %v3895_v12 = vand.u32 4294901760, %v3376_v20 }
 0x131   :  { %v3509_v2 = vpack.c.bf16 %v1249_v7, %v1242_v60  ;;  %v1368_v43 = vand.u32 4294901760, %v1367_v58  ;;  %v1375_v13 = vand.u32 4294901760, %v1374_v3  ;;  %v1262_v51 = vsub.f32 %v3366_v52, %v3887_v17 }
 0x132   :  { %v1381_v28 = vsub.f32 %v3374_v34, %v3890_v19  ;;  %v3899_v30 = vand.u32 4294901760, %v3380_v62  ;;  %v1256_v60 = vand.u32 4294901760, %v1255_v38  ;;  %v1388_v7 = vsub.f32 %v3376_v20, %v3895_v12 }
 0x133   :  { %v3898_v58 = vand.u32 4294901760, %v3382_v49  ;;  %v3526_v1 = vpack.c.bf16 %v1375_v13, %v1368_v43  ;;  %v1263_v3 = vand.u32 4294901760, %v1262_v51 }
 0x134   :  { %v1382_v59 = vand.u32 4294901760, %v1381_v28  ;;  %v1269_v17 = vsub.f32 %v3380_v62, %v3899_v30  ;;  %v1389_v31 = vand.u32 4294901760, %v1388_v7 }
 0x135   :  { %v1276_v19 = vsub.f32 %v3382_v49, %v3898_v58  ;;  %v3534_v38 = vpack.c.bf16 %v1263_v3, %v1256_v60 }
 0x136   :  { %v1270_v45 = vand.u32 4294901760, %v1269_v17  ;;  %v3536_v21 = vpack.c.bf16 %v1389_v31, %v1382_v59 }
 0x137   :  { %v1277_v12 = vand.u32 4294901760, %v1276_v19 }
 0x139   :  { %v3538_v53 = vpack.c.bf16 %v1277_v12, %v1270_v45 }
 0x1cf   :  { %v986_v59 = vpop.f32.mrb[0].mxu0 }
 0x1d0   :  { %v988_v12 = vpop.f32.mrb[1].mxu0 }
 0x1d3   :  { %v993_v45 = vpop.f32.mrb[2].mxu0 }
 0x1d4   :  { %v998_v31 = vmul.f32 %v993_v45, %v986_v59  ;;  %v1001_v60 = vmul.f32 %v993_v45, %v988_v12  ;;  %v995_v17 = vpop.f32.mrb[3].mxu0 }
 0x1d5   :  { %v999_v28 = vmul.f32 %v995_v17, %v988_v12  ;;  %v1002_v7 = vmul.f32 %v995_v17, %v986_v59 }
 0x1d7   :  { %v1000_v51 = vadd.f32 %v999_v28, %v998_v31  ;;  %v1003_v43 = vsub.f32 %v1001_v60, %v1002_v7  ;;  %v4041_v60 = vld [vmem:[#allocation30_spill] sm:$0xff]  ;;  %v4042_v7 = vld [vmem:[#allocation31_spill] sm:$0xff] }
 0x1d9   :  { %v1004_v3 = vmul.f32 %v1000_v51, %v1000_v51  ;;  %v1005_v13 = vmul.f32 %v1003_v43, %v1003_v43 }
 0x1db   :  { %v1006_v57 = vadd.f32 %v1005_v13, %v1004_v3  ;;  %v4043_v3 = vld [vmem:[#allocation13_spill] sm:$0xff] }
 0x1dd   :  { %2557 = vrsqrt.f32 %v1006_v57  ;;  %vm1009_vm0 = vcmp.eq.f32.partialorder %v1006_v57, inf  ;;  %v1012_v30 = vand.u32 2147483648, %v1006_v57  ;;  %vm1011_vm1 = vcmp.eq.f32.partialorder %v1006_v57, 0.0 }
 0x1e7   :  { %v2558_v58 = vpop.eup %2557 }
 0x1e8   :  { %v1008_v25 = vmul.f32 %v2558_v58, %v1006_v57 }
 0x1ea   :  { %v1010_v34 = vsel %vm1009_vm0, %v1006_v57, %v1008_v25 }
 0x1eb   :  { %v1013_v19 = vsel %vm1011_vm1, %v1012_v30, %v1010_v34 }
 0x1ec   :  { %v1014_v62 = vadd.f32 0.001, %v1013_v19  ;;  %v4040_v19 = vld [vmem:[#allocation27_spill] sm:$0xff] }
 0x1ee   :  { %v1015_v49 = vmax.f32 %v1014_v62, 1e-30 }
 0x1f0   :  { %2559 = vrcp.f32 %v1015_v49  ;;  %v4025_v49 = vpack.c.bf16 %v3333_v32, %v3328_v15 }
 0x1fa   :  { %v2560_v45 = vpop.eup %2559 }
 0x1fb   :  { %v1017_v20 = vmul.f32 %v2560_v45, %v1000_v51  ;;  %v1019_v12 = vmul.f32 %v2560_v45, %v1003_v43  ;;  %v4037_v43 = vld [vmem:[#allocation32_spill] sm:$0xff]  ;;  %v4038_v51 = vld [vmem:[#allocation29_spill] sm:$0xff] }
 0x1fc   :  { %v4039_v59 = vpack.c.bf16 %v4037_v43, %v4038_v51  ;;  %v4044_v45 = vld [vmem:[#allocation28_spill] sm:$0xff] }
 0x1fd   :  { %v3572_v17 = vand.u32 4294901760, %v1019_v12  ;;  %v3574_v28 = vand.u32 4294901760, %v1017_v20 }
 0x1ff   :  { %v3577_v13 = vsub.f32 %v1017_v20, %v3574_v28  ;;  %v1152_v58 = vsub.f32 %v1019_v12, %v3572_v17  ;;  %v4021_v20 = vpack.c.bf16 %v3290_v33, %v3285_v5  ;;  %v4045_v12 = vld [vmem:[#allocation14_spill] sm:$0xff] }
 0x201   :  { %v1153_v31 = vand.u32 4294901760, %v1152_v58  ;;  %v1159_v25 = vand.u32 4294901760, %v3577_v13 }
 0x203   :  { %v1154_v57 = vsub.f32 %v1152_v58, %v1153_v31  ;;  %v1160_v30 = vsub.f32 %v3577_v13, %v1159_v25 }
 0x205   :  { %v1155_v34 = vand.u32 4294901760, %v1154_v57  ;;  %v1161_v62 = vand.u32 4294901760, %v1160_v30  ;;  %v4047_v57 = vld [vmem:[#allocation16_spill] sm:$0xff]  ;;  %v4048_v30 = vld [vmem:[#allocation17_spill] sm:$0xff] }
 0x207   :  { %1156 = vmatprep.mubr.f32.mxu1 %v1155_v34  ;;  %v4049_v34 = vld [vmem:[#allocation18_spill] sm:$0xff] }
 0x208   :  { %1162 = vmatmul.mubr.f32.vlgmr.msra.gmra.mrb[0].mxu1 %v1161_v62  ;;  %v4050_v62 = vld [vmem:[#allocation19_spill] sm:$0xff] }
 0x209   :  { %2371 = vmatpush3.bf16.msra.mxu1 %v3415_v39  ;;  %1392 = vmatprep.mubr.f32.mxu1 %v3572_v17  ;;  %v4027_v39 = vpack.c.bf16 %v3342_v22, %v3340_v10 }
 0x20a   :  { %2373 = vmatprep.subr.bf16.mxu1 %v3422_v0  ;;  %v4026_v0 = vpack.c.bf16 %v3338_v8, %v3336_v26 }
 0x20d   :  { %2375 = vmatpush3.bf16.msra.mxu1 %v3429_v9  ;;  %v4028_v9 = vpack.c.bf16 %v3346_v44, %v3344_v29 }
 0x20e   :  { %2377 = vmatprep.subr.bf16.mxu1 %v3447_v11  ;;  %v4029_v11 = vpack.c.bf16 %v3350_v24, %v3348_v16 }
 0x211   :  { %2379 = vmatpush3.bf16.msra.mxu1 %v3459_v18  ;;  %v4020_v18 = vpack.c.bf16 %v3280_v40, %v3273_v14 }
 0x212   :  { %2381 = vmatprep.subr.bf16.mxu1 %v3463_v56  ;;  %v4030_v56 = vpack.c.bf16 %v3354_v36, %v3352_v35 }
 0x215   :  { %2383 = vmatpush3.bf16.msra.mxu1 %v3476_v23  ;;  %v4031_v23 = vpack.c.bf16 %v3358_v41, %v3356_v37 }
 0x216   :  { %2385 = vmatprep.subr.bf16.mxu1 %v3486_v27  ;;  %v4022_v27 = vpack.c.bf16 %v3302_v50, %v3297_v63 }
 0x219   :  { %2387 = vmatpush3.bf16.msra.mxu1 %v3495_v55  ;;  %v4033_v55 = vpack.c.bf16 %v3366_v52, %v3364_v48 }
 0x21a   :  { %2389 = vmatprep.subr.bf16.mxu1 %v3502_v4  ;;  %v4032_v4 = vpack.c.bf16 %v3362_v47, %v3360_v42 }
 0x21d   :  { %2391 = vmatpush3.bf16.msra.mxu1 %v3509_v2  ;;  %v4035_v2 = vld [vmem:[#allocation24_spill] sm:$0xff] }
 0x21e   :  { %2393 = vmatprep.subr.bf16.mxu1 %v3526_v1  ;;  %v4034_v1 = vld [vmem:[#allocation25_spill] sm:$0xff] }
 0x221   :  { %2395 = vmatpush3.bf16.msra.mxu1 %v3534_v38  ;;  %v4036_v38 = vpack.c.bf16 %v4034_v1, %v4035_v2 }
 0x222   :  { %2397 = vmatprep.subr.bf16.mxu1 %v3536_v21  ;;  %v4023_v21 = vpack.c.bf16 %v3312_v54, %v3307_v61 }
 0x225   :  { %2399 = vmatpush3.bf16.msra.mxu1 %v3538_v53  ;;  %v4024_v53 = vpack.c.bf16 %v3323_v6, %v3318_v46 }
 0x226   :  { %2401 = vmatprep.subr.bf16.mxu1 %v4020_v18  ;;  %v4051_v18 = vld [vmem:[#allocation20_spill] sm:$0xff] }
 0x228   :  { %1394 = vmatmul.mubr.f32.vlgmr.msra.gmra.mrb[2].mxu1 %v3574_v28 }
 0x229   :  { %2403 = vmatpush3.bf16.msra.mxu1 %v4021_v20  ;;  %1529 = vmatprep.mubr.f32.mxu1 %v1152_v58  ;;  %v4046_v58 = vld [vmem:[#allocation15_spill] sm:$0xff]  ;;  %v4053_v20 = vld [vmem:[#allocation22_spill] sm:$0xff] }
 0x22a   :  { %2405 = vmatprep.subr.bf16.mxu1 %v4022_v27  ;;  %v4054_v27 = vld [vmem:[#allocation23_spill] sm:$0xff] }
 0x22d   :  { %2407 = vmatpush3.bf16.msra.mxu1 %v4023_v21  ;;  %v4055_v21 = vand.u32 4294901760, %v3273_v14  ;;  %v4063_v14 = vand.u32 4294901760, %v3312_v54  ;;  %v4070_v54 = vand.u32 4294901760, %v3340_v10  ;;  %v4077_v10 = vand.u32 4294901760, %v3354_v36 }
 0x22e   :  { %2409 = vmatprep.subr.bf16.mxu1 %v4024_v53  ;;  %v4056_v53 = vand.u32 4294901760, %v3280_v40  ;;  %v4062_v40 = vand.u32 4294901760, %v3307_v61  ;;  %v4069_v61 = vand.u32 4294901760, %v3338_v8  ;;  %v4076_v8 = vand.u32 4294901760, %v3352_v35 }
 0x22f   :  { %v4083_v35 = vand.u32 4294901760, %v3366_v52  ;;  %v4084_v36 = vand.u32 4294901760, %v4035_v2 }
 0x231   :  { %2411 = vmatpush3.bf16.msra.mxu1 %v4025_v49  ;;  %v2464_v49 = vpack.c.bf16 %v4056_v53, %v4055_v21 }
 0x232   :  { %2413 = vmatprep.subr.bf16.mxu1 %v4026_v0  ;;  %v4057_v0 = vld [vmem:[#allocation26_spill] sm:$0xff] }
 0x235   :  { %2415 = vmatpush3.bf16.msra.mxu1 %v4027_v39  ;;  %v4058_v39 = vand.u32 4294901760, %v3285_v5  ;;  %v2470_v5 = vpack.c.bf16 %v4063_v14, %v4062_v40 }
 0x236   :  { %2417 = vmatprep.subr.bf16.mxu1 %v4028_v9  ;;  %v4059_v9 = vand.u32 4294901760, %v3290_v33  ;;  %v4064_v33 = vand.u32 4294901760, %v3318_v46  ;;  %v4071_v46 = vand.u32 4294901760, %v3342_v22  ;;  %v4078_v22 = vand.u32 4294901760, %v3356_v37 }
 0x237   :  { %v4085_v37 = vand.u32 4294901760, %v4034_v1 }
 0x238   :  { %v2478_v21 = vpack.c.bf16 %v4071_v46, %v4070_v54 }
 0x239   :  { %2419 = vmatpush3.bf16.msra.mxu1 %v4029_v11  ;;  %v2466_v11 = vpack.c.bf16 %v4059_v9, %v4058_v39  ;;  %v2484_v39 = vpack.c.bf16 %v4077_v10, %v4076_v8 }
 0x23a   :  { %2421 = vmatprep.subr.bf16.mxu1 %v4030_v56  ;;  %v4060_v56 = vand.u32 4294901760, %v3297_v63 }
 0x23d   :  { %2423 = vmatpush3.bf16.msra.mxu1 %v4031_v23  ;;  %v4061_v23 = vand.u32 4294901760, %v3302_v50  ;;  %v4066_v50 = vand.u32 4294901760, %v3328_v15  ;;  %v4073_v15 = vand.u32 4294901760, %v3346_v44  ;;  %v4080_v44 = vand.u32 4294901760, %v3360_v42 }
 0x23e   :  { %2425 = vmatprep.subr.bf16.mxu1 %v4032_v4  ;;  %v4087_v42 = vand.u32 4294901760, %v4037_v43 }
 0x23f   :  { %v2468_v4 = vpack.c.bf16 %v4061_v23, %v4060_v56  ;;  %v2492_v23 = vpack.c.bf16 %v4085_v37, %v4084_v36 }
 0x241   :  { %2427 = vmatpush3.bf16.msra.mxu1 %v4033_v55  ;;  %v4065_v55 = vand.u32 4294901760, %v3323_v6  ;;  %v4072_v6 = vand.u32 4294901760, %v3344_v29  ;;  %v4079_v29 = vand.u32 4294901760, %v3358_v41  ;;  %v4086_v41 = vand.u32 4294901760, %v4038_v51 }
 0x242   :  { %2429 = vmatprep.subr.bf16.mxu1 %v4036_v38  ;;  %v4068_v38 = vand.u32 4294901760, %v3336_v26  ;;  %v4075_v26 = vand.u32 4294901760, %v3350_v24  ;;  %v4082_v24 = vand.u32 4294901760, %v3364_v48 }
 0x243   :  { %v2472_v63 = vpack.c.bf16 %v4065_v55, %v4064_v33  ;;  %v2480_v53 = vpack.c.bf16 %v4073_v15, %v4072_v6  ;;  %v2486_v9 = vpack.c.bf16 %v4079_v29, %v4078_v22 }
 0x244   :  { %v2490_v56 = vpack.c.bf16 %v4083_v35, %v4082_v24 }
 0x245   :  { %2431 = vmatpush3.bf16.msra.mxu1 %v4039_v59  ;;  %v2476_v59 = vpack.c.bf16 %v4069_v61, %v4068_v38 }
 0x246   :  { %2433 = vmatprep.subr.bf16.mxu1 %v4040_v19 }
 0x248   :  { %1532 = vmatmul.mubr.f32.vlgmr.msra.gmra.mrb[4].mxu1 %v3577_v13  ;;  %v4067_v13 = vand.u32 4294901760, %v3333_v32  ;;  %v4074_v32 = vand.u32 4294901760, %v3348_v16  ;;  %v4081_v16 = vand.u32 4294901760, %v3362_v47 }
 0x249   :  { %2435 = vmatpush3.bf16.msra.mxu1 %v4041_v60  ;;  %1636 = vmatprep.mubr.f32.mxu1 %v1153_v31  ;;  %v4052_v31 = vld [vmem:[#allocation21_spill] sm:$0xff] }
 0x24a   :  { %2437 = vmatprep.subr.bf16.mxu1 %v4042_v7 }
 0x24d   :  { %2439 = vmatpush3.bf16.msra.mxu1 %v4043_v3 }
 0x24e   :  { %2441 = vmatprep.subr.bf16.mxu1 %v4044_v45 }
 0x251   :  { %2443 = vmatpush3.bf16.msra.mxu1 %v4045_v12 }
 0x252   :  { %2445 = vmatprep.subr.bf16.mxu1 %v4046_v58 }
 0x255   :  { %2447 = vmatpush3.bf16.msra.mxu1 %v4047_v57 }
 0x256   :  { %2449 = vmatprep.subr.bf16.mxu1 %v4048_v30 }
 0x259   :  { %2451 = vmatpush3.bf16.msra.mxu1 %v4049_v34 }
 0x25a   :  { %2453 = vmatprep.subr.bf16.mxu1 %v4050_v62 }
 0x25d   :  { %2455 = vmatpush3.bf16.msra.mxu1 %v4051_v18 }
 0x25e   :  { %2457 = vmatprep.subr.bf16.mxu1 %v4052_v31 }
 0x261   :  { %2459 = vmatpush3.bf16.msra.mxu1 %v4053_v20 }
 0x262   :  { %2461 = vmatprep.subr.bf16.mxu1 %v4054_v27 }
 0x265   :  { %2463 = vmatpush3.bf16.msra.mxu1 %v4057_v0 }
 0x266   :  { %2465 = vmatprep.subr.bf16.mxu1 %v2464_v49  ;;  %v2482_v49 = vpack.c.bf16 %v4075_v26, %v4074_v32 }
 0x268   :  { %1640 = vmatmul.mubr.f32.vlgmr.msra.gmra.mrb[6].mxu1 %v1159_v25  ;;  %v2474_v25 = vpack.c.bf16 %v4067_v13, %v4066_v50 }
 0x269   :  { %2467 = vmatpush3.bf16.msra.mxu1 %v2466_v11  ;;  %1806 = vmatprep.mubr.f32.mxu1 %v3572_v17  ;;  %v2488_v11 = vpack.c.bf16 %v4081_v16, %v4080_v44 }
 0x26a   :  { %2469 = vmatprep.subr.bf16.mxu1 %v2468_v4  ;;  %v2494_v4 = vpack.c.bf16 %v4087_v42, %v4086_v41 }
 0x26d   :  { %2471 = vmatpush3.bf16.msra.mxu1 %v2470_v5 }
 0x26e   :  { %2473 = vmatprep.subr.bf16.mxu1 %v2472_v63 }
 0x271   :  { %2475 = vmatpush3.bf16.msra.mxu1 %v2474_v25 }
 0x272   :  { %2477 = vmatprep.subr.bf16.mxu1 %v2476_v59 }
 0x275   :  { %2479 = vmatpush3.bf16.msra.mxu1 %v2478_v21 }
 0x276   :  { %2481 = vmatprep.subr.bf16.mxu1 %v2480_v53 }
 0x279   :  { %2483 = vmatpush3.bf16.msra.mxu1 %v2482_v49 }
 0x27a   :  { %2485 = vmatprep.subr.bf16.mxu1 %v2484_v39 }
 0x27d   :  { %2487 = vmatpush3.bf16.msra.mxu1 %v2486_v9 }
 0x27e   :  { %2489 = vmatprep.subr.bf16.mxu1 %v2488_v11 }
 0x281   :  { %2491 = vmatpush3.bf16.msra.mxu1 %v2490_v56 }
 0x282   :  { %2493 = vmatprep.subr.bf16.mxu1 %v2492_v23 }
 0x285   :  { %2495 = vmatpush3.bf16.msra.mxu1 %v2494_v4 }
 0x286   :  { %2497 = vmatprep.subr.bf16.mxu1 %v4040_v19 }
 0x288   :  { %1808 = vmatmul.mubr.f32.vlgmr.msra.gmra.mrb[8].mxu1 %v3574_v28 }
 0x289   :  { %2499 = vmatpush3.bf16.msra.mxu1 %v4041_v60  ;;  %1910 = vmatprep.mubr.f32.mxu1 %v3572_v17 }
 0x28a   :  { %2501 = vmatprep.subr.bf16.mxu1 %v4042_v7 }
 0x28d   :  { %2503 = vmatpush3.bf16.msra.mxu1 %v4043_v3 }
 0x28e   :  { %2505 = vmatprep.subr.bf16.mxu1 %v4044_v45 }
 0x291   :  { %2507 = vmatpush3.bf16.msra.mxu1 %v4045_v12 }
 0x292   :  { %2509 = vmatprep.subr.bf16.mxu1 %v4046_v58 }
 0x295   :  { %2511 = vmatpush3.bf16.msra.mxu1 %v4047_v57 }
 0x296   :  { %2513 = vmatprep.subr.bf16.mxu1 %v4048_v30 }
 0x299   :  { %2515 = vmatpush3.bf16.msra.mxu1 %v4049_v34 }
 0x29a   :  { %2517 = vmatprep.subr.bf16.mxu1 %v4050_v62 }
 0x29d   :  { %2519 = vmatpush3.bf16.msra.mxu1 %v4051_v18 }
 0x29e   :  { %2521 = vmatprep.subr.bf16.mxu1 %v4052_v31 }
 0x2a1   :  { %2523 = vmatpush3.bf16.msra.mxu1 %v4053_v20 }
 0x2a2   :  { %2525 = vmatprep.subr.bf16.mxu1 %v4054_v27 }
 0x2a5   :  { %2527 = vmatpush3.bf16.msra.mxu1 %v4057_v0 }
 0x2a8   :  { %1912 = vmatmul.mubr.f32.vlgmr.msra.gmra.mrb[10].mxu1 %v3574_v28 }
 0x2db   :  { %v1966_v47 = vpop.f32.mrb[0].mxu1 }
 0x2dc   :  { %v1967_v48 = vpop.f32.mrb[1].mxu1 }
 0x2dd   :  { %v1968_v52 = vadd.f32 %v1967_v48, %v1966_v47 }
 0x2fb   :  { %v2001_v17 = vpop.f32.mrb[2].mxu1 }
 0x2fc   :  { %v2002_v1 = vpop.f32.mrb[3].mxu1 }
 0x2fd   :  { %v2003_v2 = vadd.f32 %v2002_v1, %v2001_v17 }
 0x2ff   :  { %v1396_v43 = vadd.f32 %v2003_v2, %v1968_v52 }
 0x31b   :  { %v2036_v51 = vpop.f32.mrb[4].mxu1 }
 0x31c   :  { %v2037_v19 = vpop.f32.mrb[5].mxu1 }
 0x31d   :  { %v2038_v60 = vadd.f32 %v2037_v19, %v2036_v51 }
 0x31f   :  { %v1534_v7 = vadd.f32 %v2038_v60, %v1396_v43 }
 0x33b   :  { %v2071_v3 = vpop.f32.mrb[6].mxu1 }
 0x33c   :  { %v2072_v45 = vpop.f32.mrb[7].mxu1 }
 0x33d   :  { %v2073_v12 = vadd.f32 %v2072_v45, %v2071_v3 }
 0x33f   :  { %v1642_v58 = vadd.f32 %v2073_v12, %v1534_v7 }
 0x35b   :  { %v2106_v57 = vpop.f32.mrb[8].mxu1 }
 0x35c   :  { %v2107_v30 = vpop.f32.mrb[9].mxu1 }
 0x35d   :  { %v2108_v34 = vadd.f32 %v2107_v30, %v2106_v57 }
 0x35f   :  { %v1810_v62 = vadd.f32 %v2108_v34, %v1642_v58 }
 0x37b   :  { %v2141_v28 = vpop.f32.mrb[10].mxu1 }
 0x37c   :  { %v2142_v18 = vpop.f32.mrb[11].mxu1 }
 0x37d   :  { %v2143_v31 = vadd.f32 %v2142_v18, %v2141_v28 }
 0x37f   :  { %v1914_v20 = vadd.f32 %v2143_v31, %v1810_v62 }
 0x381   :  { %1917 = vst [vmem:[#allocation9] sm:$0xff] %v1914_v20 }
 0x382   :  { %2638 = shalt.err (!%p2635_p0)
}
 0x383   :  { %s2639_s27 = scalar_lea.hbm %s3767_s3, 128 }
 0x384   :  { %p2640_p1 = scmp.ne.s32.totalorder %s3767_s3, %s2639_s27  ;;  %p2643_p2 = scmp.lt.u32.totalorder %s2639_s27, %s3767_s3 }
 0x386   :  { %p2645_p3 = pnand %p2643_p2, %p2640_p1 }
 0x388   :  { %2648 = shalt.err (!%p2645_p3)
}
 0x389   :  { %1927 = dma.vmem_to_hbm [thread:$0]  %s1925_s23, 128, %s3767_s3, [#allocation5]  }
 0x38a   :  { %2653 = dma.done.wait [#allocation5], 128  }
 0x38b   :  { %2654 = vsyncadd [#allocation5], 4294967168 }
 0x38c   :  { %1931 = vsyncpa [#allocation4], 1 }
 0x38d   :  { %1932 = vsyncpa [#allocation7], 1 }
 0x38e   :  { %1933 = vsyncpa [#allocation5], 1 }

</bundles_post_ra>
